<compile_context>
chip_gen: v6e
topology: v6e:2x2x1
jax: 0.10.0
libtpu: 0.0.40
codegen_flags: <defaults>
</compile_context>

<pallas_src>
import functools
import math

import numpy as np

import jax
import jax.numpy as jnp
from jax.experimental import pallas as pl
from jax.experimental.pallas import tpu as pltpu

# MXU operands are bf16 with f32 accumulation.  Weights are cast once at prep
# time and activations are emitted in bf16 by the producing kernel, so the bf16
# bytes are what actually moves over HBM.
_MXU_DTYPE = jnp.bfloat16
# Conservative per-call working-set budget (double-buffered tiles + accumulator);
# fits comfortably inside v5e/v6e scoped VMEM and v7x's 64 MiB physical VMEM.
_VMEM_TILE_BUDGET = 24 * 1024 * 1024


def _itemsize(dt):
    return np.dtype(dt).itemsize


def _pick_tile(dim, candidates):
    """Largest candidate tile that evenly divides `dim`, else the full extent."""
    for c in candidates:
        if dim >= c and dim % c == 0:
            return c
    return dim


# ------------------------------ linear (matmul) ------------------------------
# Fused: [optional LayerNorm prologue on x] -> x @ w -> +bias -> [GELU] ->
#        [+residual] -> store (optionally in bf16).

def _linear_kernel(*refs, activation, has_residual, has_ln, ln_eps):
    it = iter(refs)
    x_ref = next(it)
    w_ref = next(it)
    b_ref = next(it)
    lnw_ref = lnb_ref = r_ref = None
    if has_ln:
        lnw_ref = next(it)
        lnb_ref = next(it)
    if has_residual:
        r_ref = next(it)
    o_ref = next(it)
    acc_ref = next(it)

    @pl.when(pl.program_id(2) == 0)
    def _():
        acc_ref[...] = jnp.zeros_like(acc_ref)

    if has_ln:
        # LayerNorm fused into the matmul prologue (requires tk == K).
        x = x_ref[...].astype(jnp.float32)
        mean = jnp.mean(x, axis=-1, keepdims=True)
        var = jnp.mean(jnp.square(x - mean), axis=-1, keepdims=True)
        x = (x - mean) * jax.lax.rsqrt(var + ln_eps)
        x = x * lnw_ref[...].astype(jnp.float32) + lnb_ref[...].astype(jnp.float32)
        x = x.astype(_MXU_DTYPE)
    else:
        x = x_ref[...].astype(_MXU_DTYPE)          # no-op when x is already bf16

    acc_ref[...] += jnp.dot(x, w_ref[...].astype(_MXU_DTYPE),
                            preferred_element_type=jnp.float32)

    @pl.when(pl.program_id(2) == pl.num_programs(2) - 1)
    def _():
        y = acc_ref[...] + b_ref[...].astype(jnp.float32)
        if activation == "gelu":
            # exact GELU (PyTorch nn.GELU default): 0.5*x*(1+erf(x/sqrt(2)))
            # (a tanh approximation would move this to the EUP slot on v6e/v7x)
            y = 0.5 * y * (1.0 + jax.lax.erf(y * (1.0 / math.sqrt(2.0))))
        if has_residual:
            y = y + r_ref[...].astype(jnp.float32)
        o_ref[...] = y.astype(o_ref.dtype)


def linear(x, w, b, *, activation=None, residual=None,
           ln_w=None, ln_b=None, ln_eps=1e-5, out_dtype=None):
    """y = act(LN?(x) @ w + b) (+ residual).

    x:(N,K) w:(K,M) b:(M,) residual:(N,M) ln_w/ln_b:(K,).  If ln_w is given the
    LayerNorm over K is fused into the matmul prologue (K must fit one tk tile,
    which always holds for ViT widths)."""
    N, K = x.shape
    M = w.shape[1]
    out_dtype = x.dtype if out_dtype is None else out_dtype
    has_ln = ln_w is not None
    has_res = residual is not None

    xb = _itemsize(x.dtype)
    wb = _itemsize(w.dtype)
    ob = _itemsize(out_dtype)
    rb = _itemsize(residual.dtype) if has_res else 0

    tm = _pick_tile(N, (512, 256, 128))
    tn = _pick_tile(M, (1024, 512, 256, 128))
    tk = K if has_ln else _pick_tile(K, (1024, 512, 256, 128))

    def vmem_bytes(tm_, tn_, tk_):
        per = (tm_ * tk_ * xb + tk_ * tn_ * wb + tn_ * 4 + tm_ * tn_ * ob
               + tm_ * tn_ * rb + (2 * K * 4 if has_ln else 0))
        return 2 * per + tm_ * tn_ * 4          # double-buffered tiles + f32 acc

    # Shrink (only candidate-derived, lane-aligned tiles) until we fit the budget.
    while vmem_bytes(tm, tn, tk) > _VMEM_TILE_BUDGET:
        if tm > 128 and tm % 256 == 0:
            tm //= 2
        elif tn > 128 and tn % 256 == 0:
            tn //= 2
        elif (not has_ln) and tk > 128 and tk % 256 == 0:
            tk //= 2
        else:
            break

    b2 = b.reshape(1, M).astype(jnp.float32)
    in_specs = [
        pl.BlockSpec((tm, tk), lambda i, j, k: (i, k)),
        pl.BlockSpec((tk, tn), lambda i, j, k: (k, j)),
        pl.BlockSpec((1, tn), lambda i, j, k: (0, j)),
    ]
    args = [x, w, b2]
    if has_ln:
        in_specs += [pl.BlockSpec((1, tk), lambda i, j, k: (0, 0)),
                     pl.BlockSpec((1, tk), lambda i, j, k: (0, 0))]
        args += [ln_w.reshape(1, K).astype(jnp.float32),
                 ln_b.reshape(1, K).astype(jnp.float32)]
    if has_res:
        in_specs.append(pl.BlockSpec((tm, tn), lambda i, j, k: (i, j)))
        args.append(residual)

    flops = 2 * N * M * K
    transcendentals = N * M if activation == "gelu" else 0
    bytes_accessed = (N * K * xb + K * M * wb + M * 4 + N * M * ob
                      + (N * M * rb if has_res else 0)
                      + (2 * K * 4 if has_ln else 0))
    vmem_limit = min(64 * 1024 * 1024,
                     max(32 * 1024 * 1024, int(vmem_bytes(tm, tn, tk) * 3 // 2)))

    return pl.pallas_call(
        functools.partial(_linear_kernel, activation=activation,
                          has_residual=has_res, has_ln=has_ln, ln_eps=ln_eps),
        out_shape=jax.ShapeDtypeStruct((N, M), out_dtype),
        grid=(N // tm, M // tn, K // tk),
        in_specs=in_specs,
        out_specs=pl.BlockSpec((tm, tn), lambda i, j, k: (i, j)),
        scratch_shapes=[pltpu.VMEM((tm, tn), jnp.float32)],
        compiler_params=pltpu.CompilerParams(
            dimension_semantics=("parallel", "parallel", "arbitrary"),
            vmem_limit_bytes=vmem_limit),
        cost_estimate=pl.CostEstimate(flops=flops,
                                      transcendentals=transcendentals,
                                      bytes_accessed=bytes_accessed),
    )(*args)


# --------------------------------- layernorm ---------------------------------
# Standalone LayerNorm is only used where it cannot be fused into a following
# matmul (ln_pre and ln_post); the per-block LNs are fused into qkv / c_fc.

def _layernorm_kernel(x_ref, w_ref, b_ref, o_ref, *, eps):
    x = x_ref[...].astype(jnp.float32)
    mean = jnp.mean(x, axis=-1, keepdims=True)
    var = jnp.mean(jnp.square(x - mean), axis=-1, keepdims=True)
    y = (x - mean) * jax.lax.rsqrt(var + eps)
    y = y * w_ref[...].astype(jnp.float32) + b_ref[...].astype(jnp.float32)
    o_ref[...] = y.astype(o_ref.dtype)


def layernorm(x, w, b, eps=1e-5):
    """x: (N, D); w, b: (D,) — matches torch.nn.LayerNorm(D) defaults."""
    N, D = x.shape
    tm = _pick_tile(N, (512, 256, 128, 64, 32, 16, 8))
    w2 = w.reshape(1, D).astype(jnp.float32)
    b2 = b.reshape(1, D).astype(jnp.float32)
    return pl.pallas_call(
        functools.partial(_layernorm_kernel, eps=eps),
        out_shape=jax.ShapeDtypeStruct((N, D), x.dtype),
        grid=(N // tm,),
        in_specs=[
            pl.BlockSpec((tm, D), lambda i: (i, 0)),
            pl.BlockSpec((1, D), lambda i: (0, 0)),
            pl.BlockSpec((1, D), lambda i: (0, 0)),
        ],
        out_specs=pl.BlockSpec((tm, D), lambda i: (i, 0)),
        compiler_params=pltpu.CompilerParams(dimension_semantics=("parallel",)),
    )(x, w2, b2)


# --------------------------------- attention ---------------------------------

def _choose_head_group(heads, head_dim):
    """Smallest head group (divisor of heads) whose slab width is 128-lane
    aligned; falls back to all heads when D < 128 cannot be aligned."""
    for hg in range(1, heads + 1):
        if heads % hg == 0 and (hg * head_dim) % 128 == 0:
            return hg
    return heads


def _attn_kernel(qkv_ref, o_ref, acc_ref, *, heads_per_group, head_dim, l_real):
    # qkv_ref block: (1, Lp, 3*gd) bf16, laid out [q_g | k_g | v_g] for this group.
    slab = qkv_ref[0]
    Lp = slab.shape[0]
    gd = heads_per_group * head_dim

    mask_cols = None
    if l_real < Lp:                                # mask padded key columns
        key_ids = jax.lax.broadcasted_iota(jnp.int32, (Lp, Lp), 1)
        mask_cols = key_ids < l_real

    for h in range(heads_per_group):               # static unroll over group heads
        lo = h * head_dim
        q = slab[:, lo:lo + head_dim]               # scale already folded into q
        k = slab[:, gd + lo: gd + lo + head_dim]
        v = slab[:, 2 * gd + lo: 2 * gd + lo + head_dim]
        # contract on Dh directly — no explicit (L,Dh)->(Dh,L) transpose
        s = jax.lax.dot_general(q, k, (((1,), (1,)), ((), ())),
                                preferred_element_type=jnp.float32)   # (Lp, Lp)
        if mask_cols is not None:
            s = jnp.where(mask_cols, s, jnp.float32(-1e30))
        s = s - jnp.max(s, axis=-1, keepdims=True)
        p = jnp.exp(s)
        p = p * pl.reciprocal(jnp.sum(p, axis=-1, keepdims=True), approx=True)
        # each head's result goes straight into VMEM scratch (bounds live vregs
        # to one head; no list + concat at the end)
        acc_ref[:, lo:lo + head_dim] = jnp.dot(
            p.astype(slab.dtype), v, preferred_element_type=jnp.float32)

    # one lane-dense store of the whole group slab
    o_ref[0] = acc_ref[...].astype(o_ref.dtype)


def attention_core(qkv, heads, l_real):
    """qkv: (B, Lp, 3D) bf16 in grouped [q_g|k_g|v_g] layout -> (B, Lp, D) bf16."""
    B, Lp, threeD = qkv.shape
    D = threeD // 3
    Dh = D // heads
    hg = _choose_head_group(heads, Dh)
    ng = heads // hg
    gd = hg * Dh

    itms = _itemsize(qkv.dtype)
    flops = 4 * B * heads * Lp * Lp * Dh
    bytes_accessed = (B * Lp * threeD + B * Lp * D) * itms

    return pl.pallas_call(
        functools.partial(_attn_kernel, heads_per_group=hg, head_dim=Dh,
                          l_real=l_real),
        out_shape=jax.ShapeDtypeStruct((B, Lp, D), qkv.dtype),
        grid=(B, ng),
        in_specs=[pl.BlockSpec((1, Lp, 3 * gd), lambda b, g: (b, 0, g))],
        out_specs=pl.BlockSpec((1, Lp, gd), lambda b, g: (b, 0, g)),
        scratch_shapes=[pltpu.VMEM((Lp, gd), jnp.float32)],
        compiler_params=pltpu.CompilerParams(
            dimension_semantics=("parallel", "parallel"),
            vmem_limit_bytes=64 * 1024 * 1024),
        cost_estimate=pl.CostEstimate(flops=flops,
                                      transcendentals=B * heads * Lp * Lp,
                                      bytes_accessed=bytes_accessed),
    )(qkv)


# --------------------------- parameters & prep --------------------------------

def init_params(key, *, width, layers, patch_size, grid_size, output_dim):
    D = width
    scale = D ** -0.5
    keys = jax.random.split(key, 4 + layers)
    params = {
        "conv_w": 0.02 * jax.random.normal(keys[0], (D, 3, patch_size, patch_size), jnp.float32),
        "cls": scale * jax.random.normal(keys[1], (D,), jnp.float32),
        "pos": scale * jax.random.normal(keys[2], (grid_size * grid_size + 1, D), jnp.float32),
        "ln_pre_w": jnp.ones((D,), jnp.float32), "ln_pre_b": jnp.zeros((D,), jnp.float32),
        "ln_post_w": jnp.ones((D,), jnp.float32), "ln_post_b": jnp.zeros((D,), jnp.float32),
        "proj": scale * jax.random.normal(keys[3], (D, output_dim), jnp.float32),
        "blocks": [],
    }
    mlp = 4 * D
    for l in range(layers):
        k = jax.random.split(keys[4 + l], 4)
        params["blocks"].append({
            "ln1_w": jnp.ones((D,), jnp.float32), "ln1_b": jnp.zeros((D,), jnp.float32),
            "ln2_w": jnp.ones((D,), jnp.float32), "ln2_b": jnp.zeros((D,), jnp.float32),
            # stored in math layout (in_features, out_features): y = x @ W + b
            "qkv_w": 0.02 * jax.random.normal(k[0], (D, 3 * D), jnp.float32),
            "qkv_b": jnp.zeros((3 * D,), jnp.float32),
            "out_w": 0.02 * jax.random.normal(k[1], (D, D), jnp.float32),
            "out_b": jnp.zeros((D,), jnp.float32),
            "fc_w": 0.02 * jax.random.normal(k[2], (D, mlp), jnp.float32),
            "fc_b": jnp.zeros((mlp,), jnp.float32),
            "cproj_w": 0.02 * jax.random.normal(k[3], (mlp, D), jnp.float32),
            "cproj_b": jnp.zeros((D,), jnp.float32),
        })
    return params


def _prep_qkv_params(qkv_w, qkv_b, heads):
    """Fold the 1/sqrt(Dh) attention scale into q and reorder the fused-qkv
    columns into per-head-group contiguous [q_g | k_g | v_g] slabs."""
    D = qkv_w.shape[0]
    Dh = D // heads
    hg = _choose_head_group(heads, Dh)
    ng = heads // hg
    gd = hg * Dh
    scale = 1.0 / math.sqrt(Dh)

    qw, kw, vw = qkv_w[:, :D] * scale, qkv_w[:, D:2 * D], qkv_w[:, 2 * D:]
    qb, kb, vb = qkv_b[:D] * scale, qkv_b[D:2 * D], qkv_b[2 * D:]
    w_cols, b_cols = [], []
    for g in range(ng):
        sl = slice(g * gd, (g + 1) * gd)
        w_cols += [qw[:, sl], kw[:, sl], vw[:, sl]]
        b_cols += [qb[sl], kb[sl], vb[sl]]
    return (jnp.concatenate(w_cols, axis=1).astype(_MXU_DTYPE),
            jnp.concatenate(b_cols).astype(jnp.float32))


def prepare_params(params, heads):
    """One-time prep: MXU weights pre-cast to bf16 (so bf16 bytes are what get
    DMA'd), qkv columns reordered per head group with the scale folded in."""
    D = params["conv_w"].shape[0]
    fast = {
        "patch_w": params["conv_w"].reshape(D, -1).T.astype(_MXU_DTYPE),  # (C*p*p, D)
        "cls": params["cls"],
        "pos": params["pos"],
        "ln_pre_w": params["ln_pre_w"], "ln_pre_b": params["ln_pre_b"],
        "ln_post_w": params["ln_post_w"], "ln_post_b": params["ln_post_b"],
        "proj": params["proj"].astype(_MXU_DTYPE),
        "blocks": [],
    }
    for blk in params["blocks"]:
        qkv_w, qkv_b = _prep_qkv_params(blk["qkv_w"], blk["qkv_b"], heads)
        fast["blocks"].append({
            "ln1_w": blk["ln1_w"], "ln1_b": blk["ln1_b"],
            "ln2_w": blk["ln2_w"], "ln2_b": blk["ln2_b"],
            "qkv_w": qkv_w, "qkv_b": qkv_b,
            "out_w": blk["out_w"].astype(_MXU_DTYPE), "out_b": blk["out_b"],
            "fc_w": blk["fc_w"].astype(_MXU_DTYPE), "fc_b": blk["fc_b"],
            "cproj_w": blk["cproj_w"].astype(_MXU_DTYPE), "cproj_b": blk["cproj_b"],
        })
    return fast


# --------------------------- model (glue + calls) ----------------------------

def residual_attention_block(x, blk, heads, l_real):
    # ls_init_value=None -> LayerScale replaced by Identity; mmadapter=None.
    B, Lp, D = x.shape
    x_flat = x.reshape(B * Lp, D)                                   # f32 residual stream

    # --- attention branch: fused LN1 -> qkv (bf16) -> MHA -> out_proj (+residual) ---
    qkv = linear(x_flat, blk["qkv_w"], blk["qkv_b"],
                 ln_w=blk["ln1_w"], ln_b=blk["ln1_b"],
                 out_dtype=_MXU_DTYPE)                              # (B*Lp, 3D) bf16
    a = attention_core(qkv.reshape(B, Lp, 3 * D), heads, l_real)    # (B, Lp, D) bf16
    x_flat = linear(a.reshape(B * Lp, D), blk["out_w"], blk["out_b"],
                    residual=x_flat, out_dtype=jnp.float32)

    # --- MLP branch: fused LN2 -> fc + GELU (bf16) -> c_proj (+residual) ---
    h = linear(x_flat, blk["fc_w"], blk["fc_b"],
               ln_w=blk["ln2_w"], ln_b=blk["ln2_b"],
               activation="gelu", out_dtype=_MXU_DTYPE)             # (B*Lp, 4D) bf16
    x_flat = linear(h, blk["cproj_w"], blk["cproj_b"],
                    residual=x_flat, out_dtype=jnp.float32)
    return x_flat.reshape(B, Lp, D)


def vision_transformer_forward(x_nchw, fparams, *, patch_size, heads):
    B, C, H, W = x_nchw.shape
    p = patch_size
    gh, gw = H // p, W // p
    D = fparams["patch_w"].shape[1]

    # conv1 (stride=kernel=patch, no bias) == patch extraction + matmul.
    patches = (x_nchw.reshape(B, C, gh, p, gw, p)
               .transpose(0, 2, 4, 1, 3, 5)                  # (B, gh, gw, C, p, p)
               .reshape(B * gh * gw, C * p * p)
               .astype(_MXU_DTYPE))
    x = linear(patches, fparams["patch_w"],
               jnp.zeros((D,), jnp.float32), out_dtype=jnp.float32)
    x = x.reshape(B, gh * gw, D)

    # prepend class token, add positional embedding
    cls = jnp.broadcast_to(fparams["cls"].reshape(1, 1, D), (B, 1, D)).astype(x.dtype)
    x = jnp.concatenate([cls, x], axis=1)                     # (B, L, D), CLS at index 0
    x = x + fparams["pos"][None].astype(x.dtype)
    L = x.shape[1]

    # pad sequence to a multiple of 8 (sublane alignment); padded key columns are
    # masked inside the attention kernel, padded rows are never read back.
    Lp = ((L + 7) // 8) * 8
    if Lp != L:
        x = jnp.pad(x, ((0, 0), (0, Lp - L), (0, 0)))

    # ln_pre (standalone: cannot be fused into the per-block kernels)
    x = layernorm(x.reshape(B * Lp, D),
                  fparams["ln_pre_w"], fparams["ln_pre_b"]).reshape(B, Lp, D)

    # transformer (align_before=False path)
    for blk in fparams["blocks"]:
        x = residual_attention_block(x, blk, heads, l_real=L)

    # ln_post on CLS token, then projection
    cls_out = layernorm(x[:, 0, :], fparams["ln_post_w"], fparams["ln_post_b"])   # (B, D)
    out = linear(cls_out, fparams["proj"],
                 jnp.zeros((fparams["proj"].shape[1],), jnp.float32),
                 out_dtype=jnp.float32)
    return out                                                                     # (B, output_dim)


# ----------------------------------- main ------------------------------------

if __name__ == "__main__":
    # small config: image 16x16, patch 4 -> 4x4 grid, seq L = 17 (padded to 24)
    IMAGE, PATCH, WIDTH, LAYERS, HEADS, OUT_DIM = 16, 4, 64, 2, 4, 32
    GRID = IMAGE // PATCH

    key = jax.random.PRNGKey(0)
    k_img, k_par = jax.random.split(key)
    x = jax.random.normal(k_img, (2, 3, IMAGE, IMAGE), jnp.float32)   # NCHW like PyTorch
    params = init_params(k_par, width=WIDTH, layers=LAYERS, patch_size=PATCH,
                         grid_size=GRID, output_dim=OUT_DIM)
    fparams = prepare_params(params, heads=HEADS)                      # one-time weight prep

    fwd = jax.jit(functools.partial(vision_transformer_forward,
                                    patch_size=PATCH, heads=HEADS))
    out = fwd(x, fparams)
    jax.block_until_ready(out)
    assert out.shape == (2, OUT_DIM) and bool(jnp.all(jnp.isfinite(out)))
    print("KERNEL_OK")
</pallas_src>

<mosaic_0001>
module attributes {stable_mosaic.version = 11 : i64} {
  func.func @_linear_kernel(%arg0: i32, %arg1: i32, %arg2: i32, %arg3: memref<32x48xbf16, #tpu.memory_space<vmem>>, %arg4: memref<48x64xbf16, #tpu.memory_space<vmem>>, %arg5: memref<1x64xf32, #tpu.memory_space<vmem>>, %arg6: memref<32x64xf32, #tpu.memory_space<vmem>>, %arg7: memref<32x64xf32, #tpu.memory_space<vmem>>) attributes {dimension_semantics = [#tpu.dimension_semantics<parallel>, #tpu.dimension_semantics<parallel>, #tpu.dimension_semantics<arbitrary>], iteration_bounds = array<i64: 1, 1, 1>, scalar_prefetch = 0 : i64, scratch_operands = 1 : i64, tpu.core_type = #tpu.core_type<tc>, window_params = [{transform_indices = @transform_0, window_bounds = array<i64: 32, 48>}, {transform_indices = @transform_1, window_bounds = array<i64: 48, 64>}, {transform_indices = @transform_2, window_bounds = array<i64: 1, 64>}, {transform_indices = @transform_3, window_bounds = array<i64: 32, 64>}]} {
    %c0_i32 = arith.constant 0 : i32
    %0 = arith.cmpi eq, %arg2, %c0_i32 : i32
    %1 = arith.extui %0 : i1 to i32
    %c0_i32_0 = arith.constant 0 : i32
    %2 = arith.cmpi ne, %1, %c0_i32_0 : i32
    scf.if %2 {
      %cst_10 = arith.constant 0.000000e+00 : f32
      %12 = vector.broadcast %cst_10 : f32 to vector<32x64xf32>
      %c0_11 = arith.constant 0 : index
      %c0_12 = arith.constant 0 : index
      %13 = vector.load %arg7[%c0_11, %c0_12] : memref<32x64xf32, #tpu.memory_space<vmem>>, vector<32x64xf32>
      tpu.vector_store %arg7[%c0_11, %c0_12], %12 {strides = array<i32>} : memref<32x64xf32, #tpu.memory_space<vmem>>, vector<32x64xf32>,
    } else {
    }
    %c0 = arith.constant 0 : index
    %c0_1 = arith.constant 0 : index
    %3 = vector.load %arg3[%c0, %c0_1] : memref<32x48xbf16, #tpu.memory_space<vmem>>, vector<32x48xbf16>
    %c0_2 = arith.constant 0 : index
    %c0_3 = arith.constant 0 : index
    %4 = vector.load %arg7[%c0_2, %c0_3] : memref<32x64xf32, #tpu.memory_space<vmem>>, vector<32x64xf32>
    %c0_4 = arith.constant 0 : index
    %c0_5 = arith.constant 0 : index
    %5 = vector.load %arg4[%c0_4, %c0_5] : memref<48x64xbf16, #tpu.memory_space<vmem>>, vector<48x64xbf16>
    %cst = arith.constant dense<0.000000e+00> : vector<32x64xf32>
    %6 = tpu.matmul %3, %5, %cst {dimension_numbers = #tpu.dot_dimension_numbers<[1], [0], [0], [1], [0, 0, 1, 1], [], []>} : vector<32x48xbf16>, vector<48x64xbf16>, vector<32x64xf32> -> vector<32x64xf32>
    %7 = arith.addf %4, %6 : vector<32x64xf32>
    %c0_6 = arith.constant 0 : index
    %c0_7 = arith.constant 0 : index
    %8 = vector.load %arg7[%c0_6, %c0_7] : memref<32x64xf32, #tpu.memory_space<vmem>>, vector<32x64xf32>
    tpu.vector_store %arg7[%c0_6, %c0_7], %7 {strides = array<i32>} : memref<32x64xf32, #tpu.memory_space<vmem>>, vector<32x64xf32>,
    %c0_i32_8 = arith.constant 0 : i32
    %9 = arith.cmpi eq, %arg2, %c0_i32_8 : i32
    %10 = arith.extui %9 : i1 to i32
    %c0_i32_9 = arith.constant 0 : i32
    %11 = arith.cmpi ne, %10, %c0_i32_9 : i32
    scf.if %11 {
      %c0_10 = arith.constant 0 : index
      %c0_11 = arith.constant 0 : index
      %12 = vector.load %arg7[%c0_10, %c0_11] : memref<32x64xf32, #tpu.memory_space<vmem>>, vector<32x64xf32>
      %c0_12 = arith.constant 0 : index
      %c0_13 = arith.constant 0 : index
      %13 = vector.load %arg5[%c0_12, %c0_13] : memref<1x64xf32, #tpu.memory_space<vmem>>, vector<1x64xf32>
      %14 = vector.broadcast %13 : vector<1x64xf32> to vector<32x64xf32>
      %15 = arith.addf %12, %14 : vector<32x64xf32>
      %c0_14 = arith.constant 0 : index
      %c0_15 = arith.constant 0 : index
      %16 = vector.load %arg6[%c0_14, %c0_15] : memref<32x64xf32, #tpu.memory_space<vmem>>, vector<32x64xf32>
      tpu.vector_store %arg6[%c0_14, %c0_15], %15 {strides = array<i32>} : memref<32x64xf32, #tpu.memory_space<vmem>>, vector<32x64xf32>,
    } else {
    }
    return
  }
  func.func @transform_0(%arg0: i32, %arg1: i32, %arg2: i32) -> (i32, i32) {
    %c0_i32 = arith.constant 0 : i32
    return %arg0, %arg2 : i32, i32
  }
  func.func @transform_1(%arg0: i32, %arg1: i32, %arg2: i32) -> (i32, i32) {
    %c0_i32 = arith.constant 0 : i32
    return %arg2, %arg1 : i32, i32
  }
  func.func @transform_2(%arg0: i32, %arg1: i32, %arg2: i32) -> (i32, i32) {
    %c0_i32 = arith.constant 0 : i32
    %c0_i32_0 = arith.constant 0 : i32
    return %c0_i32, %arg1 : i32, i32
  }
  func.func @transform_3(%arg0: i32, %arg1: i32, %arg2: i32) -> (i32, i32) {
    %c0_i32 = arith.constant 0 : i32
    return %arg0, %arg1 : i32, i32
  }
}

module attributes {stable_mosaic.version = 11 : i64} {
  func.func @_layernorm_kernel(%arg0: i32, %arg1: memref<16x64xf32, #tpu.memory_space<vmem>>, %arg2: memref<1x64xf32, #tpu.memory_space<vmem>>, %arg3: memref<1x64xf32, #tpu.memory_space<vmem>>, %arg4: memref<16x64xf32, #tpu.memory_space<vmem>>) attributes {dimension_semantics = [#tpu.dimension_semantics<parallel>], iteration_bounds = array<i64: 3>, scalar_prefetch = 0 : i64, scratch_operands = 0 : i64, tpu.core_type = #tpu.core_type<tc>, window_params = [{transform_indices = @transform_0, window_bounds = array<i64: 16, 64>}, {pipeline_mode = #tpu.pipeline_mode<synchronous>, transform_indices = @transform_1, window_bounds = array<i64: 1, 64>}, {pipeline_mode = #tpu.pipeline_mode<synchronous>, transform_indices = @transform_2, window_bounds = array<i64: 1, 64>}, {transform_indices = @transform_3, window_bounds = array<i64: 16, 64>}]} {
    %c0 = arith.constant 0 : index
    %c0_0 = arith.constant 0 : index
    %0 = vector.load %arg1[%c0, %c0_0] : memref<16x64xf32, #tpu.memory_space<vmem>>, vector<16x64xf32>
    %cst = arith.constant dense<0.000000e+00> : vector<16xf32>
    %1 = vector.multi_reduction <add>, %0, %cst [1] : vector<16x64xf32> to vector<16xf32>
    %2 = vector.shape_cast %1 : vector<16xf32> to vector<16x1xf32>
    %cst_1 = arith.constant 6.400000e+01 : f32
    %3 = vector.broadcast %cst_1 : f32 to vector<16x1xf32>
    %4 = arith.divf %2, %3 : vector<16x1xf32>
    %5 = vector.broadcast %4 : vector<16x1xf32> to vector<16x64xf32>
    %6 = arith.subf %0, %5 : vector<16x64xf32>
    %7 = arith.mulf %6, %6 : vector<16x64xf32>
    %cst_2 = arith.constant dense<0.000000e+00> : vector<16xf32>
    %8 = vector.multi_reduction <add>, %7, %cst_2 [1] : vector<16x64xf32> to vector<16xf32>
    %9 = vector.shape_cast %8 : vector<16xf32> to vector<16x1xf32>
    %cst_3 = arith.constant 6.400000e+01 : f32
    %10 = vector.broadcast %cst_3 : f32 to vector<16x1xf32>
    %11 = arith.divf %9, %10 : vector<16x1xf32>
    %12 = vector.broadcast %4 : vector<16x1xf32> to vector<16x64xf32>
    %13 = arith.subf %0, %12 : vector<16x64xf32>
    %cst_4 = arith.constant 9.99999974E-6 : f32
    %14 = vector.broadcast %cst_4 : f32 to vector<16x1xf32>
    %15 = arith.addf %11, %14 : vector<16x1xf32>
    %16 = math.rsqrt %15 : vector<16x1xf32>
    %17 = vector.broadcast %16 : vector<16x1xf32> to vector<16x64xf32>
    %18 = arith.mulf %13, %17 : vector<16x64xf32>
    %c0_5 = arith.constant 0 : index
    %c0_6 = arith.constant 0 : index
    %19 = vector.load %arg2[%c0_5, %c0_6] : memref<1x64xf32, #tpu.memory_space<vmem>>, vector<1x64xf32>
    %20 = vector.broadcast %19 : vector<1x64xf32> to vector<16x64xf32>
    %21 = arith.mulf %18, %20 : vector<16x64xf32>
    %c0_7 = arith.constant 0 : index
    %c0_8 = arith.constant 0 : index
    %22 = vector.load %arg3[%c0_7, %c0_8] : memref<1x64xf32, #tpu.memory_space<vmem>>, vector<1x64xf32>
    %23 = vector.broadcast %22 : vector<1x64xf32> to vector<16x64xf32>
    %24 = arith.addf %21, %23 : vector<16x64xf32>
    %c0_9 = arith.constant 0 : index
    %c0_10 = arith.constant 0 : index
    %25 = vector.load %arg4[%c0_9, %c0_10] : memref<16x64xf32, #tpu.memory_space<vmem>>, vector<16x64xf32>
    tpu.vector_store %arg4[%c0_9, %c0_10], %24 {strides = array<i32>} : memref<16x64xf32, #tpu.memory_space<vmem>>, vector<16x64xf32>,
    return
  }
  func.func @transform_0(%arg0: i32) -> (i32, i32) {
    %c0_i32 = arith.constant 0 : i32
    %c0_i32_0 = arith.constant 0 : i32
    return %arg0, %c0_i32 : i32, i32
  }
  func.func @transform_1(%arg0: i32) -> (i32, i32) {
    %c0_i32 = arith.constant 0 : i32
    %c0_i32_0 = arith.constant 0 : i32
    %c0_i32_1 = arith.constant 0 : i32
    return %c0_i32, %c0_i32_0 : i32, i32
  }
  func.func @transform_2(%arg0: i32) -> (i32, i32) {
    %c0_i32 = arith.constant 0 : i32
    %c0_i32_0 = arith.constant 0 : i32
    %c0_i32_1 = arith.constant 0 : i32
    return %c0_i32, %c0_i32_0 : i32, i32
  }
  func.func @transform_3(%arg0: i32) -> (i32, i32) {
    %c0_i32 = arith.constant 0 : i32
    %c0_i32_0 = arith.constant 0 : i32
    return %arg0, %c0_i32 : i32, i32
  }
}

module attributes {stable_mosaic.version = 11 : i64} {
  func.func @_linear_kernel(%arg0: i32, %arg1: i32, %arg2: i32, %arg3: memref<48x64xf32, #tpu.memory_space<vmem>>, %arg4: memref<64x192xbf16, #tpu.memory_space<vmem>>, %arg5: memref<1x192xf32, #tpu.memory_space<vmem>>, %arg6: memref<1x64xf32, #tpu.memory_space<vmem>>, %arg7: memref<1x64xf32, #tpu.memory_space<vmem>>, %arg8: memref<48x192xbf16, #tpu.memory_space<vmem>>, %arg9: memref<48x192xf32, #tpu.memory_space<vmem>>) attributes {dimension_semantics = [#tpu.dimension_semantics<parallel>, #tpu.dimension_semantics<parallel>, #tpu.dimension_semantics<arbitrary>], iteration_bounds = array<i64: 1, 1, 1>, scalar_prefetch = 0 : i64, scratch_operands = 1 : i64, tpu.core_type = #tpu.core_type<tc>, window_params = [{transform_indices = @transform_0, window_bounds = array<i64: 48, 64>}, {transform_indices = @transform_1, window_bounds = array<i64: 64, 192>}, {transform_indices = @transform_2, window_bounds = array<i64: 1, 192>}, {pipeline_mode = #tpu.pipeline_mode<synchronous>, transform_indices = @transform_3, window_bounds = array<i64: 1, 64>}, {pipeline_mode = #tpu.pipeline_mode<synchronous>, transform_indices = @transform_4, window_bounds = array<i64: 1, 64>}, {transform_indices = @transform_5, window_bounds = array<i64: 48, 192>}]} {
    %c0_i32 = arith.constant 0 : i32
    %0 = arith.cmpi eq, %arg2, %c0_i32 : i32
    %1 = arith.extui %0 : i1 to i32
    %c0_i32_0 = arith.constant 0 : i32
    %2 = arith.cmpi ne, %1, %c0_i32_0 : i32
    scf.if %2 {
      %cst_19 = arith.constant 0.000000e+00 : f32
      %37 = vector.broadcast %cst_19 : f32 to vector<48x192xf32>
      %c0_20 = arith.constant 0 : index
      %c0_21 = arith.constant 0 : index
      %38 = vector.load %arg9[%c0_20, %c0_21] : memref<48x192xf32, #tpu.memory_space<vmem>>, vector<48x192xf32>
      tpu.vector_store %arg9[%c0_20, %c0_21], %37 {strides = array<i32>} : memref<48x192xf32, #tpu.memory_space<vmem>>, vector<48x192xf32>,
    } else {
    }
    %c0 = arith.constant 0 : index
    %c0_1 = arith.constant 0 : index
    %3 = vector.load %arg3[%c0, %c0_1] : memref<48x64xf32, #tpu.memory_space<vmem>>, vector<48x64xf32>
    %cst = arith.constant dense<0.000000e+00> : vector<48xf32>
    %4 = vector.multi_reduction <add>, %3, %cst [1] : vector<48x64xf32> to vector<48xf32>
    %5 = vector.shape_cast %4 : vector<48xf32> to vector<48x1xf32>
    %cst_2 = arith.constant 6.400000e+01 : f32
    %6 = vector.broadcast %cst_2 : f32 to vector<48x1xf32>
    %7 = arith.divf %5, %6 : vector<48x1xf32>
    %8 = vector.broadcast %7 : vector<48x1xf32> to vector<48x64xf32>
    %9 = arith.subf %3, %8 : vector<48x64xf32>
    %10 = arith.mulf %9, %9 : vector<48x64xf32>
    %cst_3 = arith.constant dense<0.000000e+00> : vector<48xf32>
    %11 = vector.multi_reduction <add>, %10, %cst_3 [1] : vector<48x64xf32> to vector<48xf32>
    %12 = vector.shape_cast %11 : vector<48xf32> to vector<48x1xf32>
    %cst_4 = arith.constant 6.400000e+01 : f32
    %13 = vector.broadcast %cst_4 : f32 to vector<48x1xf32>
    %14 = arith.divf %12, %13 : vector<48x1xf32>
    %15 = vector.broadcast %7 : vector<48x1xf32> to vector<48x64xf32>
    %16 = arith.subf %3, %15 : vector<48x64xf32>
    %cst_5 = arith.constant 9.99999974E-6 : f32
    %17 = vector.broadcast %cst_5 : f32 to vector<48x1xf32>
    %18 = arith.addf %14, %17 : vector<48x1xf32>
    %19 = math.rsqrt %18 : vector<48x1xf32>
    %20 = vector.broadcast %19 : vector<48x1xf32> to vector<48x64xf32>
    %21 = arith.mulf %16, %20 : vector<48x64xf32>
    %c0_6 = arith.constant 0 : index
    %c0_7 = arith.constant 0 : index
    %22 = vector.load %arg6[%c0_6, %c0_7] : memref<1x64xf32, #tpu.memory_space<vmem>>, vector<1x64xf32>
    %23 = vector.broadcast %22 : vector<1x64xf32> to vector<48x64xf32>
    %24 = arith.mulf %21, %23 : vector<48x64xf32>
    %c0_8 = arith.constant 0 : index
    %c0_9 = arith.constant 0 : index
    %25 = vector.load %arg7[%c0_8, %c0_9] : memref<1x64xf32, #tpu.memory_space<vmem>>, vector<1x64xf32>
    %26 = vector.broadcast %25 : vector<1x64xf32> to vector<48x64xf32>
    %27 = arith.addf %24, %26 : vector<48x64xf32>
    %28 = arith.truncf %27 : vector<48x64xf32> to vector<48x64xbf16>
    %c0_10 = arith.constant 0 : index
    %c0_11 = arith.constant 0 : index
    %29 = vector.load %arg9[%c0_10, %c0_11] : memref<48x192xf32, #tpu.memory_space<vmem>>, vector<48x192xf32>
    %c0_12 = arith.constant 0 : index
    %c0_13 = arith.constant 0 : index
    %30 = vector.load %arg4[%c0_12, %c0_13] : memref<64x192xbf16, #tpu.memory_space<vmem>>, vector<64x192xbf16>
    %cst_14 = arith.constant dense<0.000000e+00> : vector<48x192xf32>
    %31 = tpu.matmul %28, %30, %cst_14 {dimension_numbers = #tpu.dot_dimension_numbers<[1], [0], [0], [1], [0, 0, 1, 1], [], []>} : vector<48x64xbf16>, vector<64x192xbf16>, vector<48x192xf32> -> vector<48x192xf32>
    %32 = arith.addf %29, %31 : vector<48x192xf32>
    %c0_15 = arith.constant 0 : index
    %c0_16 = arith.constant 0 : index
    %33 = vector.load %arg9[%c0_15, %c0_16] : memref<48x192xf32, #tpu.memory_space<vmem>>, vector<48x192xf32>
    tpu.vector_store %arg9[%c0_15, %c0_16], %32 {strides = array<i32>} : memref<48x192xf32, #tpu.memory_space<vmem>>, vector<48x192xf32>,
    %c0_i32_17 = arith.constant 0 : i32
    %34 = arith.cmpi eq, %arg2, %c0_i32_17 : i32
    %35 = arith.extui %34 : i1 to i32
    %c0_i32_18 = arith.constant 0 : i32
    %36 = arith.cmpi ne, %35, %c0_i32_18 : i32
    scf.if %36 {
      %c0_19 = arith.constant 0 : index
      %c0_20 = arith.constant 0 : index
      %37 = vector.load %arg9[%c0_19, %c0_20] : memref<48x192xf32, #tpu.memory_space<vmem>>, vector<48x192xf32>
      %c0_21 = arith.constant 0 : index
      %c0_22 = arith.constant 0 : index
      %38 = vector.load %arg5[%c0_21, %c0_22] : memref<1x192xf32, #tpu.memory_space<vmem>>, vector<1x192xf32>
      %39 = vector.broadcast %38 : vector<1x192xf32> to vector<48x192xf32>
      %40 = arith.addf %37, %39 : vector<48x192xf32>
      %41 = arith.truncf %40 : vector<48x192xf32> to vector<48x192xbf16>
      %c0_23 = arith.constant 0 : index
      %c0_24 = arith.constant 0 : index
      %42 = vector.load %arg8[%c0_23, %c0_24] : memref<48x192xbf16, #tpu.memory_space<vmem>>, vector<48x192xbf16>
      tpu.vector_store %arg8[%c0_23, %c0_24], %41 {strides = array<i32>} : memref<48x192xbf16, #tpu.memory_space<vmem>>, vector<48x192xbf16>,
    } else {
    }
    return
  }
  func.func @transform_0(%arg0: i32, %arg1: i32, %arg2: i32) -> (i32, i32) {
    %c0_i32 = arith.constant 0 : i32
    return %arg0, %arg2 : i32, i32
  }
  func.func @transform_1(%arg0: i32, %arg1: i32, %arg2: i32) -> (i32, i32) {
    %c0_i32 = arith.constant 0 : i32
    return %arg2, %arg1 : i32, i32
  }
  func.func @transform_2(%arg0: i32, %arg1: i32, %arg2: i32) -> (i32, i32) {
    %c0_i32 = arith.constant 0 : i32
    %c0_i32_0 = arith.constant 0 : i32
    return %c0_i32, %arg1 : i32, i32
  }
  func.func @transform_3(%arg0: i32, %arg1: i32, %arg2: i32) -> (i32, i32) {
    %c0_i32 = arith.constant 0 : i32
    %c0_i32_0 = arith.constant 0 : i32
    %c0_i32_1 = arith.constant 0 : i32
    return %c0_i32, %c0_i32_0 : i32, i32
  }
  func.func @transform_4(%arg0: i32, %arg1: i32, %arg2: i32) -> (i32, i32) {
    %c0_i32 = arith.constant 0 : i32
    %c0_i32_0 = arith.constant 0 : i32
    %c0_i32_1 = arith.constant 0 : i32
    return %c0_i32, %c0_i32_0 : i32, i32
  }
  func.func @transform_5(%arg0: i32, %arg1: i32, %arg2: i32) -> (i32, i32) {
    %c0_i32 = arith.constant 0 : i32
    return %arg0, %arg1 : i32, i32
  }
}

module attributes {stable_mosaic.version = 11 : i64} {
  func.func @_attn_kernel(%arg0: i32, %arg1: i32, %arg2: memref<1x24x192xbf16, #tpu.memory_space<vmem>>, %arg3: memref<1x24x64xbf16, #tpu.memory_space<vmem>>, %arg4: memref<24x64xf32, #tpu.memory_space<vmem>>) attributes {dimension_semantics = [#tpu.dimension_semantics<parallel>, #tpu.dimension_semantics<parallel>], iteration_bounds = array<i64: 2, 1>, scalar_prefetch = 0 : i64, scratch_operands = 1 : i64, tpu.core_type = #tpu.core_type<tc>, window_params = [{transform_indices = @transform_0, window_bounds = array<i64: 1, 24, 192>}, {transform_indices = @transform_1, window_bounds = array<i64: 1, 24, 64>}]} {
    %c0 = arith.constant 0 : index
    %c0_0 = arith.constant 0 : index
    %c0_1 = arith.constant 0 : index
    %0 = vector.load %arg2[%c0, %c0_0, %c0_1] : memref<1x24x192xbf16, #tpu.memory_space<vmem>>, vector<1x24x192xbf16>
    %1 = vector.shape_cast %0 : vector<1x24x192xbf16> to vector<24x192xbf16>
    %2 = tpu.iota {dimensions = array<i32: 1>} : vector<24x24xi32>
    %c17_i32 = arith.constant 17 : i32
    %3 = vector.broadcast %c17_i32 : i32 to vector<24x24xi32>
    %4 = arith.cmpi slt, %2, %3 : vector<24x24xi32>
    %5 = vector.extract_strided_slice %1 {offsets = [0, 0], sizes = [24, 16], strides = [1, 1]} : vector<24x192xbf16> to vector<24x16xbf16>
    %6 = vector.extract_strided_slice %1 {offsets = [0, 64], sizes = [24, 16], strides = [1, 1]} : vector<24x192xbf16> to vector<24x16xbf16>
    %7 = vector.extract_strided_slice %1 {offsets = [0, 128], sizes = [24, 16], strides = [1, 1]} : vector<24x192xbf16> to vector<24x16xbf16>
    %cst = arith.constant dense<0.000000e+00> : vector<24x24xf32>
    %8 = tpu.matmul %5, %6, %cst {dimension_numbers = #tpu.dot_dimension_numbers<[1], [1], [0], [0], [0, 0, 1, 0], [], []>} : vector<24x16xbf16>, vector<24x16xbf16>, vector<24x24xf32> -> vector<24x24xf32>
    %cst_2 = arith.constant -1.000000e+30 : f32
    %9 = vector.broadcast %cst_2 : f32 to vector<24x24xf32>
    %10 = arith.select %4, %8, %9 : vector<24x24xi1>, vector<24x24xf32>
    %cst_3 = arith.constant dense<0xFF800000> : vector<24xf32>
    %11 = vector.multi_reduction <maximumf>, %10, %cst_3 [1] : vector<24x24xf32> to vector<24xf32>
    %12 = vector.shape_cast %11 : vector<24xf32> to vector<24x1xf32>
    %13 = vector.broadcast %12 : vector<24x1xf32> to vector<24x24xf32>
    %14 = arith.subf %10, %13 : vector<24x24xf32>
    %15 = math.exp %14 : vector<24x24xf32>
    %cst_4 = arith.constant dense<0.000000e+00> : vector<24xf32>
    %16 = vector.multi_reduction <add>, %15, %cst_4 [1] : vector<24x24xf32> to vector<24xf32>
    %17 = vector.shape_cast %16 : vector<24xf32> to vector<24x1xf32>
    %18 = tpu.reciprocal %17 {approx = true} : vector<24x1xf32> -> vector<24x1xf32>
    %19 = vector.broadcast %18 : vector<24x1xf32> to vector<24x24xf32>
    %20 = arith.mulf %15, %19 : vector<24x24xf32>
    %21 = arith.truncf %20 : vector<24x24xf32> to vector<24x24xbf16>
    %cst_5 = arith.constant dense<0.000000e+00> : vector<24x16xf32>
    %22 = tpu.matmul %21, %7, %cst_5 {dimension_numbers = #tpu.dot_dimension_numbers<[1], [0], [0], [1], [0, 0, 1, 1], [], []>} : vector<24x24xbf16>, vector<24x16xbf16>, vector<24x16xf32> -> vector<24x16xf32>
    %c0_6 = arith.constant 0 : index
    %c0_7 = arith.constant 0 : index
    %23 = vector.load %arg4[%c0_6, %c0_7] : memref<24x64xf32, #tpu.memory_space<vmem>>, vector<24x16xf32>
    tpu.vector_store %arg4[%c0_6, %c0_7], %22 {strides = array<i32>} : memref<24x64xf32, #tpu.memory_space<vmem>>, vector<24x16xf32>,
    %24 = vector.extract_strided_slice %1 {offsets = [0, 16], sizes = [24, 16], strides = [1, 1]} : vector<24x192xbf16> to vector<24x16xbf16>
    %25 = vector.extract_strided_slice %1 {offsets = [0, 80], sizes = [24, 16], strides = [1, 1]} : vector<24x192xbf16> to vector<24x16xbf16>
    %26 = vector.extract_strided_slice %1 {offsets = [0, 144], sizes = [24, 16], strides = [1, 1]} : vector<24x192xbf16> to vector<24x16xbf16>
    %cst_8 = arith.constant dense<0.000000e+00> : vector<24x24xf32>
    %27 = tpu.matmul %24, %25, %cst_8 {dimension_numbers = #tpu.dot_dimension_numbers<[1], [1], [0], [0], [0, 0, 1, 0], [], []>} : vector<24x16xbf16>, vector<24x16xbf16>, vector<24x24xf32> -> vector<24x24xf32>
    %cst_9 = arith.constant -1.000000e+30 : f32
    %28 = vector.broadcast %cst_9 : f32 to vector<24x24xf32>
    %29 = arith.select %4, %27, %28 : vector<24x24xi1>, vector<24x24xf32>
    %cst_10 = arith.constant dense<0xFF800000> : vector<24xf32>
    %30 = vector.multi_reduction <maximumf>, %29, %cst_10 [1] : vector<24x24xf32> to vector<24xf32>
    %31 = vector.shape_cast %30 : vector<24xf32> to vector<24x1xf32>
    %32 = vector.broadcast %31 : vector<24x1xf32> to vector<24x24xf32>
    %33 = arith.subf %29, %32 : vector<24x24xf32>
    %34 = math.exp %33 : vector<24x24xf32>
    %cst_11 = arith.constant dense<0.000000e+00> : vector<24xf32>
    %35 = vector.multi_reduction <add>, %34, %cst_11 [1] : vector<24x24xf32> to vector<24xf32>
    %36 = vector.shape_cast %35 : vector<24xf32> to vector<24x1xf32>
    %37 = tpu.reciprocal %36 {approx = true} : vector<24x1xf32> -> vector<24x1xf32>
    %38 = vector.broadcast %37 : vector<24x1xf32> to vector<24x24xf32>
    %39 = arith.mulf %34, %38 : vector<24x24xf32>
    %40 = arith.truncf %39 : vector<24x24xf32> to vector<24x24xbf16>
    %cst_12 = arith.constant dense<0.000000e+00> : vector<24x16xf32>
    %41 = tpu.matmul %40, %26, %cst_12 {dimension_numbers = #tpu.dot_dimension_numbers<[1], [0], [0], [1], [0, 0, 1, 1], [], []>} : vector<24x24xbf16>, vector<24x16xbf16>, vector<24x16xf32> -> vector<24x16xf32>
    %c0_13 = arith.constant 0 : index
    %c16 = arith.constant 16 : index
    %42 = vector.load %arg4[%c0_13, %c16] : memref<24x64xf32, #tpu.memory_space<vmem>>, vector<24x16xf32>
    tpu.vector_store %arg4[%c0_13, %c16], %41 {strides = array<i32>} : memref<24x64xf32, #tpu.memory_space<vmem>>, vector<24x16xf32>,
    %43 = vector.extract_strided_slice %1 {offsets = [0, 32], sizes = [24, 16], strides = [1, 1]} : vector<24x192xbf16> to vector<24x16xbf16>
    %44 = vector.extract_strided_slice %1 {offsets = [0, 96], sizes = [24, 16], strides = [1, 1]} : vector<24x192xbf16> to vector<24x16xbf16>
    %45 = vector.extract_strided_slice %1 {offsets = [0, 160], sizes = [24, 16], strides = [1, 1]} : vector<24x192xbf16> to vector<24x16xbf16>
    %cst_14 = arith.constant dense<0.000000e+00> : vector<24x24xf32>
    %46 = tpu.matmul %43, %44, %cst_14 {dimension_numbers = #tpu.dot_dimension_numbers<[1], [1], [0], [0], [0, 0, 1, 0], [], []>} : vector<24x16xbf16>, vector<24x16xbf16>, vector<24x24xf32> -> vector<24x24xf32>
    %cst_15 = arith.constant -1.000000e+30 : f32
    %47 = vector.broadcast %cst_15 : f32 to vector<24x24xf32>
    %48 = arith.select %4, %46, %47 : vector<24x24xi1>, vector<24x24xf32>
    %cst_16 = arith.constant dense<0xFF800000> : vector<24xf32>
    %49 = vector.multi_reduction <maximumf>, %48, %cst_16 [1] : vector<24x24xf32> to vector<24xf32>
    %50 = vector.shape_cast %49 : vector<24xf32> to vector<24x1xf32>
    %51 = vector.broadcast %50 : vector<24x1xf32> to vector<24x24xf32>
    %52 = arith.subf %48, %51 : vector<24x24xf32>
    %53 = math.exp %52 : vector<24x24xf32>
    %cst_17 = arith.constant dense<0.000000e+00> : vector<24xf32>
    %54 = vector.multi_reduction <add>, %53, %cst_17 [1] : vector<24x24xf32> to vector<24xf32>
    %55 = vector.shape_cast %54 : vector<24xf32> to vector<24x1xf32>
    %56 = tpu.reciprocal %55 {approx = true} : vector<24x1xf32> -> vector<24x1xf32>
    %57 = vector.broadcast %56 : vector<24x1xf32> to vector<24x24xf32>
    %58 = arith.mulf %53, %57 : vector<24x24xf32>
    %59 = arith.truncf %58 : vector<24x24xf32> to vector<24x24xbf16>
    %cst_18 = arith.constant dense<0.000000e+00> : vector<24x16xf32>
    %60 = tpu.matmul %59, %45, %cst_18 {dimension_numbers = #tpu.dot_dimension_numbers<[1], [0], [0], [1], [0, 0, 1, 1], [], []>} : vector<24x24xbf16>, vector<24x16xbf16>, vector<24x16xf32> -> vector<24x16xf32>
    %c0_19 = arith.constant 0 : index
    %c32 = arith.constant 32 : index
    %61 = vector.load %arg4[%c0_19, %c32] : memref<24x64xf32, #tpu.memory_space<vmem>>, vector<24x16xf32>
    tpu.vector_store %arg4[%c0_19, %c32], %60 {strides = array<i32>} : memref<24x64xf32, #tpu.memory_space<vmem>>, vector<24x16xf32>,
    %62 = vector.extract_strided_slice %1 {offsets = [0, 48], sizes = [24, 16], strides = [1, 1]} : vector<24x192xbf16> to vector<24x16xbf16>
    %63 = vector.extract_strided_slice %1 {offsets = [0, 112], sizes = [24, 16], strides = [1, 1]} : vector<24x192xbf16> to vector<24x16xbf16>
    %64 = vector.extract_strided_slice %1 {offsets = [0, 176], sizes = [24, 16], strides = [1, 1]} : vector<24x192xbf16> to vector<24x16xbf16>
    %cst_20 = arith.constant dense<0.000000e+00> : vector<24x24xf32>
    %65 = tpu.matmul %62, %63, %cst_20 {dimension_numbers = #tpu.dot_dimension_numbers<[1], [1], [0], [0], [0, 0, 1, 0], [], []>} : vector<24x16xbf16>, vector<24x16xbf16>, vector<24x24xf32> -> vector<24x24xf32>
    %cst_21 = arith.constant -1.000000e+30 : f32
    %66 = vector.broadcast %cst_21 : f32 to vector<24x24xf32>
    %67 = arith.select %4, %65, %66 : vector<24x24xi1>, vector<24x24xf32>
    %cst_22 = arith.constant dense<0xFF800000> : vector<24xf32>
    %68 = vector.multi_reduction <maximumf>, %67, %cst_22 [1] : vector<24x24xf32> to vector<24xf32>
    %69 = vector.shape_cast %68 : vector<24xf32> to vector<24x1xf32>
    %70 = vector.broadcast %69 : vector<24x1xf32> to vector<24x24xf32>
    %71 = arith.subf %67, %70 : vector<24x24xf32>
    %72 = math.exp %71 : vector<24x24xf32>
    %cst_23 = arith.constant dense<0.000000e+00> : vector<24xf32>
    %73 = vector.multi_reduction <add>, %72, %cst_23 [1] : vector<24x24xf32> to vector<24xf32>
    %74 = vector.shape_cast %73 : vector<24xf32> to vector<24x1xf32>
    %75 = tpu.reciprocal %74 {approx = true} : vector<24x1xf32> -> vector<24x1xf32>
    %76 = vector.broadcast %75 : vector<24x1xf32> to vector<24x24xf32>
    %77 = arith.mulf %72, %76 : vector<24x24xf32>
    %78 = arith.truncf %77 : vector<24x24xf32> to vector<24x24xbf16>
    %cst_24 = arith.constant dense<0.000000e+00> : vector<24x16xf32>
    %79 = tpu.matmul %78, %64, %cst_24 {dimension_numbers = #tpu.dot_dimension_numbers<[1], [0], [0], [1], [0, 0, 1, 1], [], []>} : vector<24x24xbf16>, vector<24x16xbf16>, vector<24x16xf32> -> vector<24x16xf32>
    %c0_25 = arith.constant 0 : index
    %c48 = arith.constant 48 : index
    %80 = vector.load %arg4[%c0_25, %c48] : memref<24x64xf32, #tpu.memory_space<vmem>>, vector<24x16xf32>
    tpu.vector_store %arg4[%c0_25, %c48], %79 {strides = array<i32>} : memref<24x64xf32, #tpu.memory_space<vmem>>, vector<24x16xf32>,
    %c0_26 = arith.constant 0 : index
    %c0_27 = arith.constant 0 : index
    %81 = vector.load %arg4[%c0_26, %c0_27] : memref<24x64xf32, #tpu.memory_space<vmem>>, vector<24x64xf32>
    %82 = arith.truncf %81 : vector<24x64xf32> to vector<24x64xbf16>
    %c0_28 = arith.constant 0 : index
    %c0_29 = arith.constant 0 : index
    %c0_30 = arith.constant 0 : index
    %83 = vector.load %arg3[%c0_28, %c0_29, %c0_30] : memref<1x24x64xbf16, #tpu.memory_space<vmem>>, vector<1x24x64xbf16>
    %84 = vector.shape_cast %83 : vector<1x24x64xbf16> to vector<24x64xbf16>
    %85 = vector.shape_cast %82 : vector<24x64xbf16> to vector<1x24x64xbf16>
    tpu.vector_store %arg3[%c0_28, %c0_29, %c0_30], %85 {strides = array<i32>} : memref<1x24x64xbf16, #tpu.memory_space<vmem>>, vector<1x24x64xbf16>,
    return
  }
  func.func @transform_0(%arg0: i32, %arg1: i32) -> (i32, i32, i32) {
    %c0_i32 = arith.constant 0 : i32
    %c0_i32_0 = arith.constant 0 : i32
    return %arg0, %c0_i32, %arg1 : i32, i32, i32
  }
  func.func @transform_1(%arg0: i32, %arg1: i32) -> (i32, i32, i32) {
    %c0_i32 = arith.constant 0 : i32
    %c0_i32_0 = arith.constant 0 : i32
    return %arg0, %c0_i32, %arg1 : i32, i32, i32
  }
}

module attributes {stable_mosaic.version = 11 : i64} {
  func.func @_linear_kernel(%arg0: i32, %arg1: i32, %arg2: i32, %arg3: memref<48x64xbf16, #tpu.memory_space<vmem>>, %arg4: memref<64x64xbf16, #tpu.memory_space<vmem>>, %arg5: memref<1x64xf32, #tpu.memory_space<vmem>>, %arg6: memref<48x64xf32, #tpu.memory_space<vmem>>, %arg7: memref<48x64xf32, #tpu.memory_space<vmem>>, %arg8: memref<48x64xf32, #tpu.memory_space<vmem>>) attributes {dimension_semantics = [#tpu.dimension_semantics<parallel>, #tpu.dimension_semantics<parallel>, #tpu.dimension_semantics<arbitrary>], iteration_bounds = array<i64: 1, 1, 1>, scalar_prefetch = 0 : i64, scratch_operands = 1 : i64, tpu.core_type = #tpu.core_type<tc>, window_params = [{transform_indices = @transform_0, window_bounds = array<i64: 48, 64>}, {transform_indices = @transform_1, window_bounds = array<i64: 64, 64>}, {transform_indices = @transform_2, window_bounds = array<i64: 1, 64>}, {transform_indices = @transform_3, window_bounds = array<i64: 48, 64>}, {transform_indices = @transform_4, window_bounds = array<i64: 48, 64>}]} {
    %c0_i32 = arith.constant 0 : i32
    %0 = arith.cmpi eq, %arg2, %c0_i32 : i32
    %1 = arith.extui %0 : i1 to i32
    %c0_i32_0 = arith.constant 0 : i32
    %2 = arith.cmpi ne, %1, %c0_i32_0 : i32
    scf.if %2 {
      %cst_10 = arith.constant 0.000000e+00 : f32
      %12 = vector.broadcast %cst_10 : f32 to vector<48x64xf32>
      %c0_11 = arith.constant 0 : index
      %c0_12 = arith.constant 0 : index
      %13 = vector.load %arg8[%c0_11, %c0_12] : memref<48x64xf32, #tpu.memory_space<vmem>>, vector<48x64xf32>
      tpu.vector_store %arg8[%c0_11, %c0_12], %12 {strides = array<i32>} : memref<48x64xf32, #tpu.memory_space<vmem>>, vector<48x64xf32>,
    } else {
    }
    %c0 = arith.constant 0 : index
    %c0_1 = arith.constant 0 : index
    %3 = vector.load %arg3[%c0, %c0_1] : memref<48x64xbf16, #tpu.memory_space<vmem>>, vector<48x64xbf16>
    %c0_2 = arith.constant 0 : index
    %c0_3 = arith.constant 0 : index
    %4 = vector.load %arg8[%c0_2, %c0_3] : memref<48x64xf32, #tpu.memory_space<vmem>>, vector<48x64xf32>
    %c0_4 = arith.constant 0 : index
    %c0_5 = arith.constant 0 : index
    %5 = vector.load %arg4[%c0_4, %c0_5] : memref<64x64xbf16, #tpu.memory_space<vmem>>, vector<64x64xbf16>
    %cst = arith.constant dense<0.000000e+00> : vector<48x64xf32>
    %6 = tpu.matmul %3, %5, %cst {dimension_numbers = #tpu.dot_dimension_numbers<[1], [0], [0], [1], [0, 0, 1, 1], [], []>} : vector<48x64xbf16>, vector<64x64xbf16>, vector<48x64xf32> -> vector<48x64xf32>
    %7 = arith.addf %4, %6 : vector<48x64xf32>
    %c0_6 = arith.constant 0 : index
    %c0_7 = arith.constant 0 : index
    %8 = vector.load %arg8[%c0_6, %c0_7] : memref<48x64xf32, #tpu.memory_space<vmem>>, vector<48x64xf32>
    tpu.vector_store %arg8[%c0_6, %c0_7], %7 {strides = array<i32>} : memref<48x64xf32, #tpu.memory_space<vmem>>, vector<48x64xf32>,
    %c0_i32_8 = arith.constant 0 : i32
    %9 = arith.cmpi eq, %arg2, %c0_i32_8 : i32
    %10 = arith.extui %9 : i1 to i32
    %c0_i32_9 = arith.constant 0 : i32
    %11 = arith.cmpi ne, %10, %c0_i32_9 : i32
    scf.if %11 {
      %c0_10 = arith.constant 0 : index
      %c0_11 = arith.constant 0 : index
      %12 = vector.load %arg8[%c0_10, %c0_11] : memref<48x64xf32, #tpu.memory_space<vmem>>, vector<48x64xf32>
      %c0_12 = arith.constant 0 : index
      %c0_13 = arith.constant 0 : index
      %13 = vector.load %arg5[%c0_12, %c0_13] : memref<1x64xf32, #tpu.memory_space<vmem>>, vector<1x64xf32>
      %14 = vector.broadcast %13 : vector<1x64xf32> to vector<48x64xf32>
      %15 = arith.addf %12, %14 : vector<48x64xf32>
      %c0_14 = arith.constant 0 : index
      %c0_15 = arith.constant 0 : index
      %16 = vector.load %arg6[%c0_14, %c0_15] : memref<48x64xf32, #tpu.memory_space<vmem>>, vector<48x64xf32>
      %17 = arith.addf %15, %16 : vector<48x64xf32>
      %c0_16 = arith.constant 0 : index
      %c0_17 = arith.constant 0 : index
      %18 = vector.load %arg7[%c0_16, %c0_17] : memref<48x64xf32, #tpu.memory_space<vmem>>, vector<48x64xf32>
      tpu.vector_store %arg7[%c0_16, %c0_17], %17 {strides = array<i32>} : memref<48x64xf32, #tpu.memory_space<vmem>>, vector<48x64xf32>,
    } else {
    }
    return
  }
  func.func @transform_0(%arg0: i32, %arg1: i32, %arg2: i32) -> (i32, i32) {
    %c0_i32 = arith.constant 0 : i32
    return %arg0, %arg2 : i32, i32
  }
  func.func @transform_1(%arg0: i32, %arg1: i32, %arg2: i32) -> (i32, i32) {
    %c0_i32 = arith.constant 0 : i32
    return %arg2, %arg1 : i32, i32
  }
  func.func @transform_2(%arg0: i32, %arg1: i32, %arg2: i32) -> (i32, i32) {
    %c0_i32 = arith.constant 0 : i32
    %c0_i32_0 = arith.constant 0 : i32
    return %c0_i32, %arg1 : i32, i32
  }
  func.func @transform_3(%arg0: i32, %arg1: i32, %arg2: i32) -> (i32, i32) {
    %c0_i32 = arith.constant 0 : i32
    return %arg0, %arg1 : i32, i32
  }
  func.func @transform_4(%arg0: i32, %arg1: i32, %arg2: i32) -> (i32, i32) {
    %c0_i32 = arith.constant 0 : i32
    return %arg0, %arg1 : i32, i32
  }
}

module attributes {stable_mosaic.version = 11 : i64} {
  func.func @_linear_kernel(%arg0: i32, %arg1: i32, %arg2: i32, %arg3: memref<48x64xf32, #tpu.memory_space<vmem>>, %arg4: memref<64x256xbf16, #tpu.memory_space<vmem>>, %arg5: memref<1x256xf32, #tpu.memory_space<vmem>>, %arg6: memref<1x64xf32, #tpu.memory_space<vmem>>, %arg7: memref<1x64xf32, #tpu.memory_space<vmem>>, %arg8: memref<48x256xbf16, #tpu.memory_space<vmem>>, %arg9: memref<48x256xf32, #tpu.memory_space<vmem>>) attributes {dimension_semantics = [#tpu.dimension_semantics<parallel>, #tpu.dimension_semantics<parallel>, #tpu.dimension_semantics<arbitrary>], iteration_bounds = array<i64: 1, 1, 1>, scalar_prefetch = 0 : i64, scratch_operands = 1 : i64, tpu.core_type = #tpu.core_type<tc>, window_params = [{transform_indices = @transform_0, window_bounds = array<i64: 48, 64>}, {transform_indices = @transform_1, window_bounds = array<i64: 64, 256>}, {transform_indices = @transform_2, window_bounds = array<i64: 1, 256>}, {pipeline_mode = #tpu.pipeline_mode<synchronous>, transform_indices = @transform_3, window_bounds = array<i64: 1, 64>}, {pipeline_mode = #tpu.pipeline_mode<synchronous>, transform_indices = @transform_4, window_bounds = array<i64: 1, 64>}, {transform_indices = @transform_5, window_bounds = array<i64: 48, 256>}]} {
    %c0_i32 = arith.constant 0 : i32
    %0 = arith.cmpi eq, %arg2, %c0_i32 : i32
    %1 = arith.extui %0 : i1 to i32
    %c0_i32_0 = arith.constant 0 : i32
    %2 = arith.cmpi ne, %1, %c0_i32_0 : i32
    scf.if %2 {
      %cst_19 = arith.constant 0.000000e+00 : f32
      %37 = vector.broadcast %cst_19 : f32 to vector<48x256xf32>
      %c0_20 = arith.constant 0 : index
      %c0_21 = arith.constant 0 : index
      %38 = vector.load %arg9[%c0_20, %c0_21] : memref<48x256xf32, #tpu.memory_space<vmem>>, vector<48x256xf32>
      tpu.vector_store %arg9[%c0_20, %c0_21], %37 {strides = array<i32>} : memref<48x256xf32, #tpu.memory_space<vmem>>, vector<48x256xf32>,
    } else {
    }
    %c0 = arith.constant 0 : index
    %c0_1 = arith.constant 0 : index
    %3 = vector.load %arg3[%c0, %c0_1] : memref<48x64xf32, #tpu.memory_space<vmem>>, vector<48x64xf32>
    %cst = arith.constant dense<0.000000e+00> : vector<48xf32>
    %4 = vector.multi_reduction <add>, %3, %cst [1] : vector<48x64xf32> to vector<48xf32>
    %5 = vector.shape_cast %4 : vector<48xf32> to vector<48x1xf32>
    %cst_2 = arith.constant 6.400000e+01 : f32
    %6 = vector.broadcast %cst_2 : f32 to vector<48x1xf32>
    %7 = arith.divf %5, %6 : vector<48x1xf32>
    %8 = vector.broadcast %7 : vector<48x1xf32> to vector<48x64xf32>
    %9 = arith.subf %3, %8 : vector<48x64xf32>
    %10 = arith.mulf %9, %9 : vector<48x64xf32>
    %cst_3 = arith.constant dense<0.000000e+00> : vector<48xf32>
    %11 = vector.multi_reduction <add>, %10, %cst_3 [1] : vector<48x64xf32> to vector<48xf32>
    %12 = vector.shape_cast %11 : vector<48xf32> to vector<48x1xf32>
    %cst_4 = arith.constant 6.400000e+01 : f32
    %13 = vector.broadcast %cst_4 : f32 to vector<48x1xf32>
    %14 = arith.divf %12, %13 : vector<48x1xf32>
    %15 = vector.broadcast %7 : vector<48x1xf32> to vector<48x64xf32>
    %16 = arith.subf %3, %15 : vector<48x64xf32>
    %cst_5 = arith.constant 9.99999974E-6 : f32
    %17 = vector.broadcast %cst_5 : f32 to vector<48x1xf32>
    %18 = arith.addf %14, %17 : vector<48x1xf32>
    %19 = math.rsqrt %18 : vector<48x1xf32>
    %20 = vector.broadcast %19 : vector<48x1xf32> to vector<48x64xf32>
    %21 = arith.mulf %16, %20 : vector<48x64xf32>
    %c0_6 = arith.constant 0 : index
    %c0_7 = arith.constant 0 : index
    %22 = vector.load %arg6[%c0_6, %c0_7] : memref<1x64xf32, #tpu.memory_space<vmem>>, vector<1x64xf32>
    %23 = vector.broadcast %22 : vector<1x64xf32> to vector<48x64xf32>
    %24 = arith.mulf %21, %23 : vector<48x64xf32>
    %c0_8 = arith.constant 0 : index
    %c0_9 = arith.constant 0 : index
    %25 = vector.load %arg7[%c0_8, %c0_9] : memref<1x64xf32, #tpu.memory_space<vmem>>, vector<1x64xf32>
    %26 = vector.broadcast %25 : vector<1x64xf32> to vector<48x64xf32>
    %27 = arith.addf %24, %26 : vector<48x64xf32>
    %28 = arith.truncf %27 : vector<48x64xf32> to vector<48x64xbf16>
    %c0_10 = arith.constant 0 : index
    %c0_11 = arith.constant 0 : index
    %29 = vector.load %arg9[%c0_10, %c0_11] : memref<48x256xf32, #tpu.memory_space<vmem>>, vector<48x256xf32>
    %c0_12 = arith.constant 0 : index
    %c0_13 = arith.constant 0 : index
    %30 = vector.load %arg4[%c0_12, %c0_13] : memref<64x256xbf16, #tpu.memory_space<vmem>>, vector<64x256xbf16>
    %cst_14 = arith.constant dense<0.000000e+00> : vector<48x256xf32>
    %31 = tpu.matmul %28, %30, %cst_14 {dimension_numbers = #tpu.dot_dimension_numbers<[1], [0], [0], [1], [0, 0, 1, 1], [], []>} : vector<48x64xbf16>, vector<64x256xbf16>, vector<48x256xf32> -> vector<48x256xf32>
    %32 = arith.addf %29, %31 : vector<48x256xf32>
    %c0_15 = arith.constant 0 : index
    %c0_16 = arith.constant 0 : index
    %33 = vector.load %arg9[%c0_15, %c0_16] : memref<48x256xf32, #tpu.memory_space<vmem>>, vector<48x256xf32>
    tpu.vector_store %arg9[%c0_15, %c0_16], %32 {strides = array<i32>} : memref<48x256xf32, #tpu.memory_space<vmem>>, vector<48x256xf32>,
    %c0_i32_17 = arith.constant 0 : i32
    %34 = arith.cmpi eq, %arg2, %c0_i32_17 : i32
    %35 = arith.extui %34 : i1 to i32
    %c0_i32_18 = arith.constant 0 : i32
    %36 = arith.cmpi ne, %35, %c0_i32_18 : i32
    scf.if %36 {
      %c0_19 = arith.constant 0 : index
      %c0_20 = arith.constant 0 : index
      %37 = vector.load %arg9[%c0_19, %c0_20] : memref<48x256xf32, #tpu.memory_space<vmem>>, vector<48x256xf32>
      %c0_21 = arith.constant 0 : index
      %c0_22 = arith.constant 0 : index
      %38 = vector.load %arg5[%c0_21, %c0_22] : memref<1x256xf32, #tpu.memory_space<vmem>>, vector<1x256xf32>
      %39 = vector.broadcast %38 : vector<1x256xf32> to vector<48x256xf32>
      %40 = arith.addf %37, %39 : vector<48x256xf32>
      %cst_23 = arith.constant 5.000000e-01 : f32
      %41 = vector.broadcast %cst_23 : f32 to vector<48x256xf32>
      %42 = arith.mulf %41, %40 : vector<48x256xf32>
      %cst_24 = arith.constant 0.707106769 : f32
      %43 = vector.broadcast %cst_24 : f32 to vector<48x256xf32>
      %44 = arith.mulf %40, %43 : vector<48x256xf32>
      %45 = math.erf %44 : vector<48x256xf32>
      %cst_25 = arith.constant 1.000000e+00 : f32
      %46 = vector.broadcast %cst_25 : f32 to vector<48x256xf32>
      %47 = arith.addf %46, %45 : vector<48x256xf32>
      %48 = arith.mulf %42, %47 : vector<48x256xf32>
      %49 = arith.truncf %48 : vector<48x256xf32> to vector<48x256xbf16>
      %c0_26 = arith.constant 0 : index
      %c0_27 = arith.constant 0 : index
      %50 = vector.load %arg8[%c0_26, %c0_27] : memref<48x256xbf16, #tpu.memory_space<vmem>>, vector<48x256xbf16>
      tpu.vector_store %arg8[%c0_26, %c0_27], %49 {strides = array<i32>} : memref<48x256xbf16, #tpu.memory_space<vmem>>, vector<48x256xbf16>,
    } else {
    }
    return
  }
  func.func @transform_0(%arg0: i32, %arg1: i32, %arg2: i32) -> (i32, i32) {
    %c0_i32 = arith.constant 0 : i32
    return %arg0, %arg2 : i32, i32
  }
  func.func @transform_1(%arg0: i32, %arg1: i32, %arg2: i32) -> (i32, i32) {
    %c0_i32 = arith.constant 0 : i32
    return %arg2, %arg1 : i32, i32
  }
  func.func @transform_2(%arg0: i32, %arg1: i32, %arg2: i32) -> (i32, i32) {
    %c0_i32 = arith.constant 0 : i32
    %c0_i32_0 = arith.constant 0 : i32
    return %c0_i32, %arg1 : i32, i32
  }
  func.func @transform_3(%arg0: i32, %arg1: i32, %arg2: i32) -> (i32, i32) {
    %c0_i32 = arith.constant 0 : i32
    %c0_i32_0 = arith.constant 0 : i32
    %c0_i32_1 = arith.constant 0 : i32
    return %c0_i32, %c0_i32_0 : i32, i32
  }
  func.func @transform_4(%arg0: i32, %arg1: i32, %arg2: i32) -> (i32, i32) {
    %c0_i32 = arith.constant 0 : i32
    %c0_i32_0 = arith.constant 0 : i32
    %c0_i32_1 = arith.constant 0 : i32
    return %c0_i32, %c0_i32_0 : i32, i32
  }
  func.func @transform_5(%arg0: i32, %arg1: i32, %arg2: i32) -> (i32, i32) {
    %c0_i32 = arith.constant 0 : i32
    return %arg0, %arg1 : i32, i32
  }
}

module attributes {stable_mosaic.version = 11 : i64} {
  func.func @_linear_kernel(%arg0: i32, %arg1: i32, %arg2: i32, %arg3: memref<48x256xbf16, #tpu.memory_space<vmem>>, %arg4: memref<256x64xbf16, #tpu.memory_space<vmem>>, %arg5: memref<1x64xf32, #tpu.memory_space<vmem>>, %arg6: memref<48x64xf32, #tpu.memory_space<vmem>>, %arg7: memref<48x64xf32, #tpu.memory_space<vmem>>, %arg8: memref<48x64xf32, #tpu.memory_space<vmem>>) attributes {dimension_semantics = [#tpu.dimension_semantics<parallel>, #tpu.dimension_semantics<parallel>, #tpu.dimension_semantics<arbitrary>], iteration_bounds = array<i64: 1, 1, 1>, scalar_prefetch = 0 : i64, scratch_operands = 1 : i64, tpu.core_type = #tpu.core_type<tc>, window_params = [{transform_indices = @transform_0, window_bounds = array<i64: 48, 256>}, {transform_indices = @transform_1, window_bounds = array<i64: 256, 64>}, {transform_indices = @transform_2, window_bounds = array<i64: 1, 64>}, {transform_indices = @transform_3, window_bounds = array<i64: 48, 64>}, {transform_indices = @transform_4, window_bounds = array<i64: 48, 64>}]} {
    %c0_i32 = arith.constant 0 : i32
    %0 = arith.cmpi eq, %arg2, %c0_i32 : i32
    %1 = arith.extui %0 : i1 to i32
    %c0_i32_0 = arith.constant 0 : i32
    %2 = arith.cmpi ne, %1, %c0_i32_0 : i32
    scf.if %2 {
      %cst_10 = arith.constant 0.000000e+00 : f32
      %12 = vector.broadcast %cst_10 : f32 to vector<48x64xf32>
      %c0_11 = arith.constant 0 : index
      %c0_12 = arith.constant 0 : index
      %13 = vector.load %arg8[%c0_11, %c0_12] : memref<48x64xf32, #tpu.memory_space<vmem>>, vector<48x64xf32>
      tpu.vector_store %arg8[%c0_11, %c0_12], %12 {strides = array<i32>} : memref<48x64xf32, #tpu.memory_space<vmem>>, vector<48x64xf32>,
    } else {
    }
    %c0 = arith.constant 0 : index
    %c0_1 = arith.constant 0 : index
    %3 = vector.load %arg3[%c0, %c0_1] : memref<48x256xbf16, #tpu.memory_space<vmem>>, vector<48x256xbf16>
    %c0_2 = arith.constant 0 : index
    %c0_3 = arith.constant 0 : index
    %4 = vector.load %arg8[%c0_2, %c0_3] : memref<48x64xf32, #tpu.memory_space<vmem>>, vector<48x64xf32>
    %c0_4 = arith.constant 0 : index
    %c0_5 = arith.constant 0 : index
    %5 = vector.load %arg4[%c0_4, %c0_5] : memref<256x64xbf16, #tpu.memory_space<vmem>>, vector<256x64xbf16>
    %cst = arith.constant dense<0.000000e+00> : vector<48x64xf32>
    %6 = tpu.matmul %3, %5, %cst {dimension_numbers = #tpu.dot_dimension_numbers<[1], [0], [0], [1], [0, 0, 1, 1], [], []>} : vector<48x256xbf16>, vector<256x64xbf16>, vector<48x64xf32> -> vector<48x64xf32>
    %7 = arith.addf %4, %6 : vector<48x64xf32>
    %c0_6 = arith.constant 0 : index
    %c0_7 = arith.constant 0 : index
    %8 = vector.load %arg8[%c0_6, %c0_7] : memref<48x64xf32, #tpu.memory_space<vmem>>, vector<48x64xf32>
    tpu.vector_store %arg8[%c0_6, %c0_7], %7 {strides = array<i32>} : memref<48x64xf32, #tpu.memory_space<vmem>>, vector<48x64xf32>,
    %c0_i32_8 = arith.constant 0 : i32
    %9 = arith.cmpi eq, %arg2, %c0_i32_8 : i32
    %10 = arith.extui %9 : i1 to i32
    %c0_i32_9 = arith.constant 0 : i32
    %11 = arith.cmpi ne, %10, %c0_i32_9 : i32
    scf.if %11 {
      %c0_10 = arith.constant 0 : index
      %c0_11 = arith.constant 0 : index
      %12 = vector.load %arg8[%c0_10, %c0_11] : memref<48x64xf32, #tpu.memory_space<vmem>>, vector<48x64xf32>
      %c0_12 = arith.constant 0 : index
      %c0_13 = arith.constant 0 : index
      %13 = vector.load %arg5[%c0_12, %c0_13] : memref<1x64xf32, #tpu.memory_space<vmem>>, vector<1x64xf32>
      %14 = vector.broadcast %13 : vector<1x64xf32> to vector<48x64xf32>
      %15 = arith.addf %12, %14 : vector<48x64xf32>
      %c0_14 = arith.constant 0 : index
      %c0_15 = arith.constant 0 : index
      %16 = vector.load %arg6[%c0_14, %c0_15] : memref<48x64xf32, #tpu.memory_space<vmem>>, vector<48x64xf32>
      %17 = arith.addf %15, %16 : vector<48x64xf32>
      %c0_16 = arith.constant 0 : index
      %c0_17 = arith.constant 0 : index
      %18 = vector.load %arg7[%c0_16, %c0_17] : memref<48x64xf32, #tpu.memory_space<vmem>>, vector<48x64xf32>
      tpu.vector_store %arg7[%c0_16, %c0_17], %17 {strides = array<i32>} : memref<48x64xf32, #tpu.memory_space<vmem>>, vector<48x64xf32>,
    } else {
    }
    return
  }
  func.func @transform_0(%arg0: i32, %arg1: i32, %arg2: i32) -> (i32, i32) {
    %c0_i32 = arith.constant 0 : i32
    return %arg0, %arg2 : i32, i32
  }
  func.func @transform_1(%arg0: i32, %arg1: i32, %arg2: i32) -> (i32, i32) {
    %c0_i32 = arith.constant 0 : i32
    return %arg2, %arg1 : i32, i32
  }
  func.func @transform_2(%arg0: i32, %arg1: i32, %arg2: i32) -> (i32, i32) {
    %c0_i32 = arith.constant 0 : i32
    %c0_i32_0 = arith.constant 0 : i32
    return %c0_i32, %arg1 : i32, i32
  }
  func.func @transform_3(%arg0: i32, %arg1: i32, %arg2: i32) -> (i32, i32) {
    %c0_i32 = arith.constant 0 : i32
    return %arg0, %arg1 : i32, i32
  }
  func.func @transform_4(%arg0: i32, %arg1: i32, %arg2: i32) -> (i32, i32) {
    %c0_i32 = arith.constant 0 : i32
    return %arg0, %arg1 : i32, i32
  }
}

module attributes {stable_mosaic.version = 11 : i64} {
  func.func @_linear_kernel(%arg0: i32, %arg1: i32, %arg2: i32, %arg3: memref<2x64xf32, #tpu.memory_space<vmem>>, %arg4: memref<64x32xbf16, #tpu.memory_space<vmem>>, %arg5: memref<1x32xf32, #tpu.memory_space<vmem>>, %arg6: memref<2x32xf32, #tpu.memory_space<vmem>>, %arg7: memref<2x32xf32, #tpu.memory_space<vmem>>) attributes {dimension_semantics = [#tpu.dimension_semantics<parallel>, #tpu.dimension_semantics<parallel>, #tpu.dimension_semantics<arbitrary>], iteration_bounds = array<i64: 1, 1, 1>, scalar_prefetch = 0 : i64, scratch_operands = 1 : i64, tpu.core_type = #tpu.core_type<tc>, window_params = [{transform_indices = @transform_0, window_bounds = array<i64: 2, 64>}, {transform_indices = @transform_1, window_bounds = array<i64: 64, 32>}, {transform_indices = @transform_2, window_bounds = array<i64: 1, 32>}, {transform_indices = @transform_3, window_bounds = array<i64: 2, 32>}]} {
    %c0_i32 = arith.constant 0 : i32
    %0 = arith.cmpi eq, %arg2, %c0_i32 : i32
    %1 = arith.extui %0 : i1 to i32
    %c0_i32_0 = arith.constant 0 : i32
    %2 = arith.cmpi ne, %1, %c0_i32_0 : i32
    scf.if %2 {
      %cst_10 = arith.constant 0.000000e+00 : f32
      %13 = vector.broadcast %cst_10 : f32 to vector<2x32xf32>
      %c0_11 = arith.constant 0 : index
      %c0_12 = arith.constant 0 : index
      %14 = vector.load %arg7[%c0_11, %c0_12] : memref<2x32xf32, #tpu.memory_space<vmem>>, vector<2x32xf32>
      tpu.vector_store %arg7[%c0_11, %c0_12], %13 {strides = array<i32>} : memref<2x32xf32, #tpu.memory_space<vmem>>, vector<2x32xf32>,
    } else {
    }
    %c0 = arith.constant 0 : index
    %c0_1 = arith.constant 0 : index
    %3 = vector.load %arg3[%c0, %c0_1] : memref<2x64xf32, #tpu.memory_space<vmem>>, vector<2x64xf32>
    %4 = arith.truncf %3 : vector<2x64xf32> to vector<2x64xbf16>
    %c0_2 = arith.constant 0 : index
    %c0_3 = arith.constant 0 : index
    %5 = vector.load %arg7[%c0_2, %c0_3] : memref<2x32xf32, #tpu.memory_space<vmem>>, vector<2x32xf32>
    %c0_4 = arith.constant 0 : index
    %c0_5 = arith.constant 0 : index
    %6 = vector.load %arg4[%c0_4, %c0_5] : memref<64x32xbf16, #tpu.memory_space<vmem>>, vector<64x32xbf16>
    %cst = arith.constant dense<0.000000e+00> : vector<2x32xf32>
    %7 = tpu.matmul %4, %6, %cst {dimension_numbers = #tpu.dot_dimension_numbers<[1], [0], [0], [1], [0, 0, 1, 1], [], []>} : vector<2x64xbf16>, vector<64x32xbf16>, vector<2x32xf32> -> vector<2x32xf32>
    %8 = arith.addf %5, %7 : vector<2x32xf32>
    %c0_6 = arith.constant 0 : index
    %c0_7 = arith.constant 0 : index
    %9 = vector.load %arg7[%c0_6, %c0_7] : memref<2x32xf32, #tpu.memory_space<vmem>>, vector<2x32xf32>
    tpu.vector_store %arg7[%c0_6, %c0_7], %8 {strides = array<i32>} : memref<2x32xf32, #tpu.memory_space<vmem>>, vector<2x32xf32>,
    %c0_i32_8 = arith.constant 0 : i32
    %10 = arith.cmpi eq, %arg2, %c0_i32_8 : i32
    %11 = arith.extui %10 : i1 to i32
    %c0_i32_9 = arith.constant 0 : i32
    %12 = arith.cmpi ne, %11, %c0_i32_9 : i32
    scf.if %12 {
      %c0_10 = arith.constant 0 : index
      %c0_11 = arith.constant 0 : index
      %13 = vector.load %arg7[%c0_10, %c0_11] : memref<2x32xf32, #tpu.memory_space<vmem>>, vector<2x32xf32>
      %c0_12 = arith.constant 0 : index
      %c0_13 = arith.constant 0 : index
      %14 = vector.load %arg5[%c0_12, %c0_13] : memref<1x32xf32, #tpu.memory_space<vmem>>, vector<1x32xf32>
      %15 = vector.broadcast %14 : vector<1x32xf32> to vector<2x32xf32>
      %16 = arith.addf %13, %15 : vector<2x32xf32>
      %c0_14 = arith.constant 0 : index
      %c0_15 = arith.constant 0 : index
      %17 = vector.load %arg6[%c0_14, %c0_15] : memref<2x32xf32, #tpu.memory_space<vmem>>, vector<2x32xf32>
      tpu.vector_store %arg6[%c0_14, %c0_15], %16 {strides = array<i32>} : memref<2x32xf32, #tpu.memory_space<vmem>>, vector<2x32xf32>,
    } else {
    }
    return
  }
  func.func @transform_0(%arg0: i32, %arg1: i32, %arg2: i32) -> (i32, i32) {
    %c0_i32 = arith.constant 0 : i32
    return %arg0, %arg2 : i32, i32
  }
  func.func @transform_1(%arg0: i32, %arg1: i32, %arg2: i32) -> (i32, i32) {
    %c0_i32 = arith.constant 0 : i32
    return %arg2, %arg1 : i32, i32
  }
  func.func @transform_2(%arg0: i32, %arg1: i32, %arg2: i32) -> (i32, i32) {
    %c0_i32 = arith.constant 0 : i32
    %c0_i32_0 = arith.constant 0 : i32
    return %c0_i32, %arg1 : i32, i32
  }
  func.func @transform_3(%arg0: i32, %arg1: i32, %arg2: i32) -> (i32, i32) {
    %c0_i32 = arith.constant 0 : i32
    return %arg0, %arg1 : i32, i32
  }
}

module attributes {stable_mosaic.version = 11 : i64} {
  func.func @_layernorm_kernel(%arg0: i32, %arg1: memref<2x64xf32, #tpu.memory_space<vmem>>, %arg2: memref<1x64xf32, #tpu.memory_space<vmem>>, %arg3: memref<1x64xf32, #tpu.memory_space<vmem>>, %arg4: memref<2x64xf32, #tpu.memory_space<vmem>>) attributes {dimension_semantics = [#tpu.dimension_semantics<parallel>], iteration_bounds = array<i64: 1>, scalar_prefetch = 0 : i64, scratch_operands = 0 : i64, tpu.core_type = #tpu.core_type<tc>, window_params = [{transform_indices = @transform_0, window_bounds = array<i64: 2, 64>}, {pipeline_mode = #tpu.pipeline_mode<synchronous>, transform_indices = @transform_1, window_bounds = array<i64: 1, 64>}, {pipeline_mode = #tpu.pipeline_mode<synchronous>, transform_indices = @transform_2, window_bounds = array<i64: 1, 64>}, {transform_indices = @transform_3, window_bounds = array<i64: 2, 64>}]} {
    %c0 = arith.constant 0 : index
    %c0_0 = arith.constant 0 : index
    %0 = vector.load %arg1[%c0, %c0_0] : memref<2x64xf32, #tpu.memory_space<vmem>>, vector<2x64xf32>
    %cst = arith.constant dense<0.000000e+00> : vector<2xf32>
    %1 = vector.multi_reduction <add>, %0, %cst [1] : vector<2x64xf32> to vector<2xf32>
    %2 = vector.shape_cast %1 : vector<2xf32> to vector<2x1xf32>
    %cst_1 = arith.constant 6.400000e+01 : f32
    %3 = vector.broadcast %cst_1 : f32 to vector<2x1xf32>
    %4 = arith.divf %2, %3 : vector<2x1xf32>
    %5 = vector.broadcast %4 : vector<2x1xf32> to vector<2x64xf32>
    %6 = arith.subf %0, %5 : vector<2x64xf32>
    %7 = arith.mulf %6, %6 : vector<2x64xf32>
    %cst_2 = arith.constant dense<0.000000e+00> : vector<2xf32>
    %8 = vector.multi_reduction <add>, %7, %cst_2 [1] : vector<2x64xf32> to vector<2xf32>
    %9 = vector.shape_cast %8 : vector<2xf32> to vector<2x1xf32>
    %cst_3 = arith.constant 6.400000e+01 : f32
    %10 = vector.broadcast %cst_3 : f32 to vector<2x1xf32>
    %11 = arith.divf %9, %10 : vector<2x1xf32>
    %12 = vector.broadcast %4 : vector<2x1xf32> to vector<2x64xf32>
    %13 = arith.subf %0, %12 : vector<2x64xf32>
    %cst_4 = arith.constant 9.99999974E-6 : f32
    %14 = vector.broadcast %cst_4 : f32 to vector<2x1xf32>
    %15 = arith.addf %11, %14 : vector<2x1xf32>
    %16 = math.rsqrt %15 : vector<2x1xf32>
    %17 = vector.broadcast %16 : vector<2x1xf32> to vector<2x64xf32>
    %18 = arith.mulf %13, %17 : vector<2x64xf32>
    %c0_5 = arith.constant 0 : index
    %c0_6 = arith.constant 0 : index
    %19 = vector.load %arg2[%c0_5, %c0_6] : memref<1x64xf32, #tpu.memory_space<vmem>>, vector<1x64xf32>
    %20 = vector.broadcast %19 : vector<1x64xf32> to vector<2x64xf32>
    %21 = arith.mulf %18, %20 : vector<2x64xf32>
    %c0_7 = arith.constant 0 : index
    %c0_8 = arith.constant 0 : index
    %22 = vector.load %arg3[%c0_7, %c0_8] : memref<1x64xf32, #tpu.memory_space<vmem>>, vector<1x64xf32>
    %23 = vector.broadcast %22 : vector<1x64xf32> to vector<2x64xf32>
    %24 = arith.addf %21, %23 : vector<2x64xf32>
    %c0_9 = arith.constant 0 : index
    %c0_10 = arith.constant 0 : index
    %25 = vector.load %arg4[%c0_9, %c0_10] : memref<2x64xf32, #tpu.memory_space<vmem>>, vector<2x64xf32>
    tpu.vector_store %arg4[%c0_9, %c0_10], %24 {strides = array<i32>} : memref<2x64xf32, #tpu.memory_space<vmem>>, vector<2x64xf32>,
    return
  }
  func.func @transform_0(%arg0: i32) -> (i32, i32) {
    %c0_i32 = arith.constant 0 : i32
    %c0_i32_0 = arith.constant 0 : i32
    return %arg0, %c0_i32 : i32, i32
  }
  func.func @transform_1(%arg0: i32) -> (i32, i32) {
    %c0_i32 = arith.constant 0 : i32
    %c0_i32_0 = arith.constant 0 : i32
    %c0_i32_1 = arith.constant 0 : i32
    return %c0_i32, %c0_i32_0 : i32, i32
  }
  func.func @transform_2(%arg0: i32) -> (i32, i32) {
    %c0_i32 = arith.constant 0 : i32
    %c0_i32_0 = arith.constant 0 : i32
    %c0_i32_1 = arith.constant 0 : i32
    return %c0_i32, %c0_i32_0 : i32, i32
  }
  func.func @transform_3(%arg0: i32) -> (i32, i32) {
    %c0_i32 = arith.constant 0 : i32
    %c0_i32_0 = arith.constant 0 : i32
    return %arg0, %c0_i32 : i32, i32
  }
}

</mosaic_0001>

<bundles_post_ra>
// kernel: vision_transformer_forward.15
= control target key start
LH: loop header
LB: loop body
LE: loop exit
PB: predicated region body
PF: predicated region fallthrough
CT: control target
= control target key end

     0   :  { %s333_s12 = smov 0   ;;  %s369_s0 = inlined_call_operand.vmem [shape: f32[48,64], index: 0, kind: input, shape index: {}]   ;;  %s370_s1 = inlined_call_operand.vmem [shape: f32[1,64], index: 1, kind: input, shape index: {}]   ;;  %s371_s2 = inlined_call_operand.vmem [shape: f32[1,64], index: 2, kind: input, shape index: {}]   ;;  %s372_s3 = inlined_call_operand.vmem [shape: f32[48,64], index: 3, kind: output, shape index: {}]  }
   0x1 LB: > { %s280_s13 = sadd.s32 4294967295, %s311_s12   ;;  %p284_p0 = scmp.ge.s32.totalorder %s311_s12, 1  ;;  %s311_s12 = sphi %s333_s12, %s13_s12  }
   0x2   : > { %p138_p1 = scmp.lt.s32.totalorder %s311_s12, 4 }
   0x4   : > { %p139_p2 = pnand %p284_p0, %p138_p1 }
   0x5   : > { %s285_s14 = sshll.u32 (!%p139_p2), %s280_s13, 1 }
   0x6   : > { %142 = sbr.rel (%p139_p2) target bundleno = 328 (0x148), region = 32  ;;  %p163_p3 = scmp.lt.s32.totalorder (!%p139_p2), %s285_s14, 5 }
   0xb   : > { %s374_s14 = smov (!%p163_p3, %s285_s14), 5  ;;  %vm176_vm0 = vcmask 523264   ;;  %v289_v21 = vld [vmem:[%s370_s1] ss:$0 sm:$0xff] }
   0xc   : > { %s286_s15 = sshll.u32 %s374_s14, 3  ;;  %v290_v23 = vld [vmem:[%s371_s2] ss:$0 sm:$0xff] }
   0xd   : > { %s166_s18 = scalar_lea.vmem %s369_s0, %s286_s15  ;;  %s172_s25 = scalar_lea.vmem %s372_s3, %s286_s15 }
   0xe   : > { %v174_v0 = vld [vmem:[%s166_s18] sm:$0xff]  ;;  %v175_v1 = vld [vmem:[%s166_s18 + $0x8] sm:$0xff] }
   0xf   : > { %v177_v2 = vsel %vm176_vm0, %v174_v0, 0.0  ;;  %v180_v3 = vsel %vm176_vm0, %v175_v1, 0.0 }
  0x10   : > { %178 = vadd.xlane.f32.xlu0 %v177_v2 }
  0x14   : > { %181 = vadd.xlane.f32.xlu0 %v180_v3 }
  0x99   : > { %v179_v4 = vpop.xlane.xlu0 %178 }
  0x9a   : > { %v184_v5 = vmul.f32 0.015625, %v179_v4 }
  0x9c   : > { %v186_v6 = vsub.f32 %v174_v0, %v184_v5 }
  0x9d   : > { %v182_v7 = vpop.xlane.xlu0 %181 }
  0x9e   : > { %v185_v8 = vmul.f32 0.015625, %v182_v7  ;;  %v188_v9 = vmul.f32 %v186_v6, %v186_v6 }
  0xa0   : > { %v187_v10 = vsub.f32 %v175_v1, %v185_v8  ;;  %v190_v11 = vsel %vm176_vm0, %v188_v9, 0.0 }
  0xa1   : > { %191 = vadd.xlane.f32.xlu1 %v190_v11 }
  0xa2   : > { %v189_v12 = vmul.f32 %v187_v10, %v187_v10 }
  0xa4   : > { %v193_v13 = vsel %vm176_vm0, %v189_v12, 0.0 }
  0xa5   : > { %194 = vadd.xlane.f32.xlu1 %v193_v13 }
 0x12a   : > { %v192_v14 = vpop.xlane.xlu1 %191 }
 0x12b   : > { %v196_v15 = vmul.f32 0.015625, %v192_v14 }
 0x12d   : > { %v198_v16 = vadd.f32 1e-05, %v196_v15 }
 0x12e   : > { %v195_v17 = vpop.xlane.xlu1 %194 }
 0x12f   : > { %301 = vrsqrt.f32 %v198_v16  ;;  %v197_v18 = vmul.f32 0.015625, %v195_v17 }
 0x131   : > { %v199_v19 = vadd.f32 1e-05, %v197_v18 }
 0x133   : > { %303 = vrsqrt.f32 %v199_v19 }
 0x13c   : > { %v302_v20 = vpop.eup %301 }
 0x13d   : > { %v202_v22 = vmul.f32 %v302_v20, %v186_v6 }
 0x13f   : > { %v211_v24 = vmul.f32 %v289_v21, %v202_v22 }
 0x140   : > { %v304_v25 = vpop.eup %303 }
 0x141   : > { %v220_v26 = vadd.f32 %v290_v23, %v211_v24  ;;  %v203_v27 = vmul.f32 %v304_v25, %v187_v10 }
 0x143   : > { %222 = vst.msk [vmem:[%s172_s25] sm:$0xff] %vm176_vm0, %v220_v26  ;;  %v212_v28 = vmul.f32 %v289_v21, %v203_v27 }
 0x145   : > { %v221_v29 = vadd.f32 %v290_v23, %v212_v28 }
 0x147   : > { %223 = vst.msk [vmem:[%s172_s25 + $0x8] sm:$0xff] %vm176_vm0, %v221_v29 }
 0x148 PF: > { %s13_s12 = sadd.s32 1, %s311_s12  }
 0x149   : > { %p10_p4 = scmp.ge.s32.totalorder %s13_s12, 5  }
 0x14b   :  { %12 = sbr.rel (!%p10_p4) target bundleno = 1 (0x1), region = 62 }

// kernel: vision_transformer_forward.14
= control target key start
LH: loop header
LB: loop body
LE: loop exit
PB: predicated region body
PF: predicated region fallthrough
CT: control target
= control target key end

     0   :  { %vm19_vm0 = vcmask 523264   ;;  %v186_v1 = vmov 0.0   ;;  %vm66_vm1 = vcmask 392192   ;;  %s249_s1 = inlined_call_operand.vmem [shape: bf16[48,64], index: 1, kind: input, shape index: {}]   ;;  %s250_s0 = inlined_call_operand.vmem [shape: bf16[32,48], index: 0, kind: input, shape index: {}]   ;;  %s251_s2 = inlined_call_operand.vmem [shape: f32[1,64], index: 2, kind: input, shape index: {}]   ;;  %s252_s3 = inlined_call_operand.vmem [shape: f32[32,64], index: 3, kind: output, shape index: {}]  }
   0x1   :  { %v181_v0 = vld [vmem:[%s249_s1 + $0x10] sm:$0xff]   ;;  %22 = vst.msk [vmem:[#allocation2 + $0x10] sm:$0xff] %vm19_vm0, %v186_v1  ;;  %20 = vst.msk [vmem:[#allocation2] sm:$0xff] %vm19_vm0, %v186_v1  ;;  %v182_v2 = vld [vmem:[%s249_s1 + $0x8] sm:$0xff]  }
   0x2   :  { %21 = vst.msk [vmem:[#allocation2 + $0x8] sm:$0xff] %vm19_vm0, %v186_v1  ;;  %23 = vst.msk [vmem:[#allocation2 + $0x18] sm:$0xff] %vm19_vm0, %v186_v1  ;;  %170 = vmatprep.subr.bf16.mxu0 %v181_v0  ;;  %v184_v3 = vld [vmem:[%s250_s0] sm:$0xff]   ;;  %v185_v5 = vld [vmem:[%s250_s0 + $0x8] sm:$0xff]  }
   0x3   :  { %171 = vmatpush3.bf16.msra.mxu0 %v181_v0  ;;  %v183_v4 = vld [vmem:[%s249_s1] sm:$0xff]   ;;  %176 = vmatprep.mubr.msk.bf16.mxu0 %vm66_vm1, %v184_v3 }
   0x4   :  { %172 = vmatprep.subr.bf16.mxu0 %v182_v2  ;;  %v164_v18 = vld [vmem:[%s251_s2] ss:$0 sm:$0xff] }
   0x7   :  { %173 = vmatpush3.bf16.msra.mxu0 %v182_v2 }
   0x8   :  { %174 = vmatprep.subr.bf16.mxu0 %v183_v4  ;;  %v30_v6 = vld [vmem:[#allocation2 + $0x10] sm:$0xff]  ;;  %v28_v8 = vld [vmem:[#allocation2] sm:$0xff] }
   0x9   :  { %v31_v11 = vld [vmem:[#allocation2 + $0x18] sm:$0xff]  ;;  %v29_v14 = vld [vmem:[#allocation2 + $0x8] sm:$0xff] }
   0xb   :  { %175 = vmatpush3.bf16.msra.mxu0 %v183_v4 }
   0xe   :  { %177 = vmatmul.mubr.msk.bf16.vlgmr.msra.gmra.mxu0 %vm66_vm1, %v185_v5 }
  0xce   :  { %v178_v7 = vpop.f32.mrf.mxu0 }
  0xcf   :  { %v124_v9 = vadd.f32 %v178_v7, %v30_v6 }
  0xd0   :  { %v107_v10 = vpop.f32.mrf.mxu0 }
  0xd1   :  { %129 = vst.msk [vmem:[#allocation2 + $0x10] sm:$0xff] %vm19_vm0, %v124_v9  ;;  %v122_v12 = vadd.f32 %v107_v10, %v28_v8 }
  0xd2   :  { %v179_v13 = vpop.f32.mrf.mxu0 }
  0xd3   :  { %127 = vst.msk [vmem:[#allocation2] sm:$0xff] %vm19_vm0, %v122_v12  ;;  %v125_v15 = vadd.f32 %v179_v13, %v31_v11 }
  0xd4   :  { %v110_v16 = vpop.f32.mrf.mxu0 }
  0xd5   :  { %130 = vst.msk [vmem:[#allocation2 + $0x18] sm:$0xff] %vm19_vm0, %v125_v15  ;;  %v123_v17 = vadd.f32 %v110_v16, %v29_v14 }
  0xd7   :  { %128 = vst.msk [vmem:[#allocation2 + $0x8] sm:$0xff] %vm19_vm0, %v123_v17 }
  0xd8   :  { %v136_v19 = vld [vmem:[#allocation2 + $0x10] sm:$0xff] }
  0xd9   :  { %v147_v20 = vadd.f32 %v164_v18, %v136_v19 }
  0xda   :  { %v134_v21 = vld [vmem:[#allocation2] sm:$0xff] }
  0xdb   :  { %151 = vst.msk [vmem:[%s252_s3 + $0x10] sm:$0xff] %vm19_vm0, %v147_v20  ;;  %v145_v22 = vadd.f32 %v164_v18, %v134_v21 }
  0xdc   :  { %v137_v23 = vld [vmem:[#allocation2 + $0x18] sm:$0xff] }
  0xdd   :  { %149 = vst.msk [vmem:[%s252_s3] sm:$0xff] %vm19_vm0, %v145_v22  ;;  %v148_v24 = vadd.f32 %v164_v18, %v137_v23 }
  0xde   :  { %v135_v25 = vld [vmem:[#allocation2 + $0x8] sm:$0xff] }
  0xdf   :  { %152 = vst.msk [vmem:[%s252_s3 + $0x18] sm:$0xff] %vm19_vm0, %v148_v24  ;;  %v146_v26 = vadd.f32 %v164_v18, %v135_v25 }
  0xe1   :  { %150 = vst.msk [vmem:[%s252_s3 + $0x8] sm:$0xff] %vm19_vm0, %v146_v26 }

// kernel: vision_transformer_forward.16
= control target key start
LH: loop header
LB: loop body
LE: loop exit
PB: predicated region body
PF: predicated region fallthrough
CT: control target
= control target key end

     0   :  { %vm26_vm0 = vcmask 523264   ;;  %v456_v47 = vmov 0   ;;  %v457_v51 = vmov 0.0   ;;  %vm384_vm1 = vcmask 1043456   ;;  %s633_s0 = inlined_call_operand.vmem [shape: f32[48,64], index: 0, kind: input, shape index: {}]   ;;  %s634_s1 = inlined_call_operand.vmem [shape: bf16[64,192], index: 1, kind: input, shape index: {}]   ;;  %s635_s3 = inlined_call_operand.vmem [shape: f32[1,64], index: 3, kind: input, shape index: {}]   ;;  %s636_s4 = inlined_call_operand.vmem [shape: f32[1,64], index: 4, kind: input, shape index: {}]   ;;  %s637_s2 = inlined_call_operand.vmem [shape: f32[1,192], index: 2, kind: input, shape index: {}]   ;;  %s638_s5 = inlined_call_operand.vmem [shape: bf16[48,192], index: 5, kind: output, shape index: {}]  }
   0x1   :  { %v40_v0 = vld [vmem:[%s633_s0 + $0x10] sm:$0xff]  ;;  %v41_v1 = vld [vmem:[%s633_s0 + $0x18] sm:$0xff]  ;;  %v38_v2 = vld [vmem:[%s633_s0] sm:$0xff]  ;;  %264 = vmatprep.mubr.bf16.mxu1 %v456_v47  ;;  %254 = vmatprep.mubr.bf16.mxu0 %v456_v47  ;;  %27 = vst.msk [vmem:[#allocation2 + $0x8] sm:$0xff] %vm26_vm0, %v457_v51  ;;  %vm385_vm2 = vcmask 523268  }
   0x2   :  { %v51_v3 = vsel %vm26_vm0, %v40_v0, 0.0  ;;  %v45_v4 = vsel %vm26_vm0, %v38_v2, 0.0  ;;  %v39_v5 = vld [vmem:[%s633_s0 + $0x8] sm:$0xff]  ;;  %v54_v6 = vsel %vm26_vm0, %v41_v1, 0.0  ;;  %v42_v8 = vld [vmem:[%s633_s0 + $0x20] sm:$0xff]  ;;  %29 = vst.msk [vmem:[#allocation2 + $0x18] sm:$0xff] %vm26_vm0, %v457_v51  ;;  %vm598_vm3 = vmor %vm385_vm2, %vm384_vm1 }
   0x3   :  { %52 = vadd.xlane.f32.xlu0 %v51_v3  ;;  %46 = vadd.xlane.f32.xlu1 %v45_v4  ;;  %v48_v7 = vsel %vm26_vm0, %v39_v5, 0.0  ;;  %v43_v9 = vld [vmem:[%s633_s0 + $0x28] sm:$0xff]  ;;  %v57_v10 = vsel %vm26_vm0, %v42_v8, 0.0  ;;  %v432_v42 = vld [vmem:[%s634_s1 + $0x34] ss:$8 sps:$4 sm:$0xff]   ;;  %31 = vst.msk [vmem:[#allocation2 + $0x28] sm:$0xff] %vm26_vm0, %v457_v51 }
   0x4   :  { %v60_v11 = vsel %vm26_vm0, %v43_v9, 0.0  ;;  %v434_v43 = vld [vmem:[%s634_s1 + $0x30] ss:$8 sps:$4 sm:$0xff]   ;;  %422 = vmatprep.subr.bf16.mxu1 %v432_v42  ;;  %230 = vmatprep.subr.bf16.mxu0 %v432_v42  ;;  %v435_v44 = vld [vmem:[%s634_s1 + $0x24] ss:$8 sps:$4 sm:$0xff]   ;;  %33 = vst.msk [vmem:[#allocation2 + $0x38] sm:$0xff] %vm26_vm0, %v457_v51 }
   0x5   :  { %426 = vmatpush1.bf16.msra.mxu1 %v434_v43  ;;  %231 = vmatpush1.bf16.msra.mxu0 %v434_v43  ;;  %v437_v45 = vld [vmem:[%s634_s1 + $0x20] ss:$8 sps:$4 sm:$0xff]   ;;  %v438_v46 = vld [vmem:[%s634_s1 + $0x14] ss:$8 sps:$4 sm:$0xff]   ;;  %v440_v48 = vld [vmem:[%s634_s1 + $0x10] ss:$8 sps:$4 sm:$0xff]  }
   0x6   :  { %423 = vmatprep.subr.bf16.mxu1 %v435_v44  ;;  %232 = vmatprep.subr.bf16.mxu0 %v435_v44  ;;  %v441_v49 = vld [vmem:[%s634_s1 + $0x4] ss:$8 sps:$4 sm:$0xff]   ;;  %v443_v50 = vld [vmem:[%s634_s1] ss:$8 sps:$4 sm:$0xff]   ;;  %35 = vst.msk [vmem:[#allocation2 + $0x48] sm:$0xff] %vm26_vm0, %v457_v51  ;;  %37 = vst.msk [vmem:[#allocation2 + $0x58] sm:$0xff] %vm26_vm0, %v457_v51 }
   0x7   :  { %55 = vadd.xlane.f32.xlu0 %v54_v6  ;;  %49 = vadd.xlane.f32.xlu1 %v48_v7 }
   0x8   :  { %v154_v43 = vld [vmem:[#allocation2 + $0x8] sm:$0xff] }
   0x9   :  { %427 = vmatpush1.bf16.msra.mxu1 %v437_v45  ;;  %233 = vmatpush1.bf16.msra.mxu0 %v437_v45 }
   0xa   :  { %424 = vmatprep.subr.bf16.mxu1 %v438_v46  ;;  %234 = vmatprep.subr.bf16.mxu0 %v438_v46 }
   0xb   :  { %58 = vadd.xlane.f32.xlu0 %v57_v10  ;;  %61 = vadd.xlane.f32.xlu1 %v60_v11  ;;  %v160_v44 = vld [vmem:[#allocation2 + $0x38] sm:$0xff] }
   0xd   :  { %428 = vmatpush1.bf16.msra.mxu1 %v440_v48  ;;  %235 = vmatpush1.bf16.msra.mxu0 %v440_v48 }
   0xe   :  { %425 = vmatprep.subr.bf16.mxu1 %v441_v49  ;;  %236 = vmatprep.subr.bf16.mxu0 %v441_v49 }
  0x11   :  { %429 = vmatpush1.bf16.msra.mxu1 %v443_v50  ;;  %237 = vmatpush1.bf16.msra.mxu0 %v443_v50 }
  0x8c   :  { %v53_v12 = vpop.xlane.xlu0 %52  ;;  %v47_v13 = vpop.xlane.xlu1 %46 }
  0x8d   :  { %v66_v14 = vmul.f32 0.015625, %v53_v12  ;;  %v64_v15 = vmul.f32 0.015625, %v47_v13 }
  0x8f   :  { %v512_v16 = vsub.f32 %v40_v0, %v66_v14  ;;  %v514_v17 = vsub.f32 %v38_v2, %v64_v15  ;;  %v398_v14 = vld [vmem:[%s636_s4] ss:$0 sm:$0xff] }
  0x90   :  { %v56_v18 = vpop.xlane.xlu0 %55  ;;  %v50_v19 = vpop.xlane.xlu1 %49 }
  0x91   :  { %v67_v20 = vmul.f32 0.015625, %v56_v18  ;;  %v78_v21 = vmul.f32 %v512_v16, %v512_v16  ;;  %v65_v22 = vmul.f32 0.015625, %v50_v19  ;;  %v76_v23 = vmul.f32 %v514_v17, %v514_v17 }
  0x93   :  { %v520_v24 = vsub.f32 %v41_v1, %v67_v20  ;;  %v88_v25 = vsel %vm26_vm0, %v78_v21, 0.0  ;;  %v523_v26 = vsub.f32 %v39_v5, %v65_v22  ;;  %v82_v28 = vsel %vm26_vm0, %v76_v23, 0.0 }
  0x94   :  { %89 = vadd.xlane.f32.xlu0 %v88_v25  ;;  %v59_v27 = vpop.xlane.xlu0 %58  ;;  %v62_v29 = vpop.xlane.xlu1 %61 }
  0x95   :  { %v68_v30 = vmul.f32 0.015625, %v59_v27  ;;  %v79_v31 = vmul.f32 %v520_v24, %v520_v24  ;;  %v69_v32 = vmul.f32 0.015625, %v62_v29  ;;  %v77_v33 = vmul.f32 %v523_v26, %v523_v26 }
  0x97   :  { %v530_v34 = vsub.f32 %v42_v8, %v68_v30  ;;  %v91_v35 = vsel %vm26_vm0, %v79_v31, 0.0  ;;  %v533_v36 = vsub.f32 %v43_v9, %v69_v32  ;;  %v85_v38 = vsel %vm26_vm0, %v77_v33, 0.0  ;;  %v397_v8 = vld [vmem:[%s635_s3] ss:$0 sm:$0xff] }
  0x98   :  { %92 = vadd.xlane.f32.xlu1 %v91_v35  ;;  %83 = vadd.xlane.f32.xlu0 %v82_v28  ;;  %v326_v35 = vlaneseq }
  0x99   :  { %v80_v37 = vmul.f32 %v530_v34, %v530_v34  ;;  %v81_v39 = vmul.f32 %v533_v36, %v533_v36 }
  0x9b   :  { %v94_v40 = vsel %vm26_vm0, %v80_v37, 0.0  ;;  %v97_v41 = vsel %vm26_vm0, %v81_v39, 0.0 }
  0x9c   :  { %95 = vadd.xlane.f32.xlu0 %v94_v40  ;;  %86 = vadd.xlane.f32.xlu1 %v85_v38  ;;  %v158_v38 = vld [vmem:[#allocation2 + $0x28] sm:$0xff] }
  0xa0   :  { %98 = vadd.xlane.f32.xlu1 %v97_v41 }
 0x11d   :  { %v90_v52 = vpop.xlane.xlu0 %89 }
 0x11e   :  { %v102_v53 = vmul.f32 0.015625, %v90_v52 }
 0x120   :  { %v108_v54 = vadd.f32 1e-05, %v102_v53 }
 0x121   :  { %v84_v55 = vpop.xlane.xlu0 %83  ;;  %v93_v56 = vpop.xlane.xlu1 %92 }
 0x122   :  { %444 = vrsqrt.f32 %v108_v54  ;;  %v100_v57 = vmul.f32 0.015625, %v84_v55  ;;  %v103_v58 = vmul.f32 0.015625, %v93_v56  ;;  %v156_v54 = vld [vmem:[#allocation2 + $0x18] sm:$0xff]  ;;  %v162_v55 = vld [vmem:[#allocation2 + $0x48] sm:$0xff] }
 0x124   :  { %v106_v59 = vadd.f32 1e-05, %v100_v57  ;;  %v109_v60 = vadd.f32 1e-05, %v103_v58 }
 0x125   :  { %v96_v61 = vpop.xlane.xlu0 %95  ;;  %v87_v62 = vpop.xlane.xlu1 %86 }
 0x126   :  { %446 = vrsqrt.f32 %v106_v59  ;;  %v104_v63 = vmul.f32 0.015625, %v96_v61  ;;  %v101_v0 = vmul.f32 0.015625, %v87_v62 }
 0x127   :  { %448 = vrsqrt.f32 %v109_v60 }
 0x128   :  { %v110_v1 = vadd.f32 1e-05, %v104_v63  ;;  %v107_v2 = vadd.f32 1e-05, %v101_v0  ;;  %v164_v0 = vld [vmem:[#allocation2 + $0x58] sm:$0xff] }
 0x129   :  { %v99_v3 = vpop.xlane.xlu1 %98 }
 0x12a   :  { %450 = vrsqrt.f32 %v110_v1  ;;  %v105_v4 = vmul.f32 0.015625, %v99_v3 }
 0x12b   :  { %452 = vrsqrt.f32 %v107_v2 }
 0x12c   :  { %v111_v5 = vadd.f32 1e-05, %v105_v4 }
 0x12e   :  { %454 = vrsqrt.f32 %v111_v5 }
 0x12f   :  { %v445_v6 = vpop.eup %444 }
 0x130   :  { %v120_v7 = vmul.f32 %v445_v6, %v512_v16 }
 0x132   :  { %v133_v12 = vmul.f32 %v397_v8, %v120_v7 }
 0x133   :  { %v447_v9 = vpop.eup %446 }
 0x134   :  { %v449_v10 = vpop.eup %448  ;;  %v118_v13 = vmul.f32 %v447_v9, %v514_v17  ;;  %v146_v20 = vadd.f32 %v398_v14, %v133_v12 }
 0x135   :  { %v121_v11 = vmul.f32 %v449_v10, %v520_v24 }
 0x136   :  { %v131_v23 = vmul.f32 %v397_v8, %v118_v13 }
 0x137   :  { %v451_v15 = vpop.eup %450  ;;  %v134_v18 = vmul.f32 %v397_v8, %v121_v11 }
 0x138   :  { %v453_v19 = vpop.eup %452  ;;  %v122_v16 = vmul.f32 %v451_v15, %v530_v34  ;;  %v144_v29 = vadd.f32 %v398_v14, %v131_v23 }
 0x139   :  { %v147_v21 = vadd.f32 %v398_v14, %v134_v18  ;;  %v119_v22 = vmul.f32 %v453_v19, %v523_v26 }
 0x13a   :  { %v135_v17 = vmul.f32 %v397_v8, %v122_v16 }
 0x13b   :  { %v455_v25 = vpop.eup %454  ;;  %v151_v27 = vpack.c.bf16 %v147_v21, %v146_v20  ;;  %v132_v24 = vmul.f32 %v397_v8, %v119_v22 }
 0x13c   :  { %v123_v28 = vmul.f32 %v455_v25, %v533_v36  ;;  %v148_v33 = vadd.f32 %v398_v14, %v135_v17  ;;  %v327_v36 = vshrl.u32 %v326_v35, 7 }
 0x13d   :  { %408 = vmatmul.mubr.msk.bf16.vlgmr.msra.gmra.mxu1 %vm26_vm0, %v151_v27  ;;  %v145_v30 = vadd.f32 %v398_v14, %v132_v24 }
 0x13e   :  { %274 = vmatprep.mubr.bf16.mxu1 %v456_v47  ;;  %v136_v31 = vmul.f32 %v397_v8, %v123_v28  ;;  %v328_v45 = vsub.s32 0, %v327_v36  ;;  %v332_v46 = vsub.s32 1, %v327_v36  ;;  %v324_v47 = vld [vmem:[%s637_s2] sm:$0x3] }
 0x13f   :  { %v150_v32 = vpack.c.bf16 %v145_v30, %v144_v29 }
 0x140   :  { %v149_v34 = vadd.f32 %v398_v14, %v136_v31  ;;  %v329_v56 = vrot.slane %v324_v47, %v328_v45  ;;  %v333_v57 = vrot.slane %v324_v47, %v332_v46 }
 0x141   :  { %407 = vmatmul.mubr.msk.bf16.vlgmr.msra.gmra.mxu0 %vm26_vm0, %v150_v32 }
 0x142   :  { %v152_v26 = vpack.c.bf16 %v149_v34, %v148_v33 }
 0x145   :  { %409 = vmatmul.mubr.msk.bf16.gmra.mxu1 %vm26_vm0, %v152_v26 }
 0x1fd   :  { %v266_v37 = vpop.f32.mrf.mxu1 }
 0x1fe   :  { %v340_v1 = vadd.f32 %v329_v56, %v266_v37 }
 0x1ff   :  { %v268_v39 = vpop.f32.mrf.mxu1 }
 0x200   :  { %v290_v40 = vadd.f32 %v268_v39, %v158_v38 }
 0x201   :  { %v256_v41 = vpop.f32.mrf.mxu0  ;;  %v270_v42 = vpop.f32.mrf.mxu1 }
 0x202   :  { %302 = vst.msk [vmem:[#allocation2 + $0x28] sm:$0xff] %vm26_vm0, %v290_v40  ;;  %v336_v9 = vadd.f32 %v329_v56, %v256_v41  ;;  %v342_v10 = vadd.f32 %v329_v56, %v270_v42 }
 0x203   :  { %v258_v48 = vpop.f32.mrf.mxu0  ;;  %v272_v49 = vpop.f32.mrf.mxu1 }
 0x204   :  { %v286_v50 = vadd.f32 %v258_v48, %v154_v43  ;;  %v292_v51 = vadd.f32 %v272_v49, %v160_v44 }
 0x205   :  { %v260_v52 = vpop.f32.mrf.mxu0  ;;  %v276_v53 = vpop.f32.mrf.mxu1 }
 0x206   :  { %298 = vst.msk [vmem:[#allocation2 + $0x8] sm:$0xff] %vm26_vm0, %v286_v50  ;;  %304 = vst.msk [vmem:[#allocation2 + $0x38] sm:$0xff] %vm26_vm0, %v292_v51  ;;  %v338_v19 = vadd.f32 %v329_v56, %v260_v52  ;;  %v344_v16 = vadd.f32 %v329_v56, %v276_v53 }
 0x207   :  { %v262_v58 = vpop.f32.mrf.mxu0  ;;  %v278_v59 = vpop.f32.mrf.mxu1 }
 0x208   :  { %v288_v60 = vadd.f32 %v262_v58, %v156_v54  ;;  %v294_v61 = vadd.f32 %v278_v59, %v162_v55 }
 0x209   :  { %v317_v62 = vld [vmem:[#allocation2 + $0x28] sm:$0xff]  ;;  %v280_v63 = vpop.f32.mrf.mxu1 }
 0x20a   :  { %v341_v2 = vadd.f32 %v333_v57, %v317_v62  ;;  %300 = vst.msk [vmem:[#allocation2 + $0x18] sm:$0xff] %vm26_vm0, %v288_v60  ;;  %306 = vst.msk [vmem:[#allocation2 + $0x48] sm:$0xff] %vm26_vm0, %v294_v61  ;;  %v346_v27 = vadd.f32 %v329_v56, %v280_v63 }
 0x20b   :  { %v282_v4 = vpop.f32.mrf.mxu1 }
 0x20c   :  { %v418_v5 = vpack.c.bf16 %v341_v2, %v340_v1  ;;  %v296_v6 = vadd.f32 %v282_v4, %v164_v0 }
 0x20d   :  { %v313_v7 = vld [vmem:[#allocation2 + $0x8] sm:$0xff]  ;;  %v319_v8 = vld [vmem:[#allocation2 + $0x38] sm:$0xff] }
 0x20e   :  { %389 = vst.msk [vmem:[%s638_s5 + $0x10] sm:$0xff] %vm598_vm3, %v418_v5  ;;  %v337_v11 = vadd.f32 %v333_v57, %v313_v7  ;;  %v343_v12 = vadd.f32 %v333_v57, %v319_v8 }
 0x20f   :  { %308 = vst.msk [vmem:[#allocation2 + $0x58] sm:$0xff] %vm26_vm0, %v296_v6 }
 0x210   :  { %v416_v13 = vpack.c.bf16 %v337_v11, %v336_v9  ;;  %v419_v14 = vpack.c.bf16 %v343_v12, %v342_v10 }
 0x211   :  { %v315_v15 = vld [vmem:[#allocation2 + $0x18] sm:$0xff]  ;;  %v321_v18 = vld [vmem:[#allocation2 + $0x48] sm:$0xff] }
 0x212   :  { %387 = vst.msk [vmem:[%s638_s5] sm:$0xff] %vm598_vm3, %v416_v13  ;;  %390 = vst.msk [vmem:[%s638_s5 + $0x18] sm:$0xff] %vm598_vm3, %v419_v14  ;;  %v339_v20 = vadd.f32 %v333_v57, %v315_v15  ;;  %v345_v21 = vadd.f32 %v333_v57, %v321_v18 }
 0x214   :  { %v417_v22 = vpack.c.bf16 %v339_v20, %v338_v19  ;;  %v420_v23 = vpack.c.bf16 %v345_v21, %v344_v16 }
 0x216   :  { %v323_v25 = vld [vmem:[#allocation2 + $0x58] sm:$0xff]  ;;  %388 = vst.msk [vmem:[%s638_s5 + $0x8] sm:$0xff] %vm598_vm3, %v417_v22  ;;  %391 = vst.msk [vmem:[%s638_s5 + $0x20] sm:$0xff] %vm598_vm3, %v420_v23 }
 0x217   :  { %v347_v24 = vadd.f32 %v333_v57, %v323_v25 }
 0x219   :  { %v421_v28 = vpack.c.bf16 %v347_v24, %v346_v27 }
 0x21b   :  { %392 = vst.msk [vmem:[%s638_s5 + $0x28] sm:$0xff] %vm598_vm3, %v421_v28 }

// kernel: vision_transformer_forward.17
= control target key start
LH: loop header
LB: loop body
LE: loop exit
PB: predicated region body
PF: predicated region fallthrough
CT: control target
= control target key end

     0   :  { %s1264_s6 = smov 0   ;;  %s1266_s7 = smov 0   ;;  %s1470_s0 = inlined_call_operand.vmem [shape: bf16[2,24,192], index: 0, kind: input, shape index: {}]   ;;  %s1471_s1 = inlined_call_operand.vmem [shape: bf16[2,24,64], index: 1, kind: output, shape index: {}]  }
   0x1   :  { %s1268_s8 = smov 0  }
   0x2 LB: > { %s23_s9 = sadd.s32 1, %s1241_s7  ;;  %p998_p0 = scmp.ge.s32.totalorder %s1245_s8, 1  ;;  %s1245_s8 = sphi %s1268_s8, %s11_s8   ;;  %s1241_s7 = sphi %s1266_s7, %s1473_s7   ;;  %s1237_s6 = sphi %s1264_s6, %s1472_s6  }
   0x3   : > { %p25_p1 = scmp.ge.s32.totalorder %s23_s9, 2  ;;  %p108_p2 = scmp.lt.s32.totalorder %s1245_s8, 3 }
   0x5   : > { %s1475_s9 = smov (%p25_p1, %s23_s9), 0  ;;  %p109_p3 = pnand %p998_p0, %p108_p2 }
   0x6   : > { %p136_p4 = scmp.lt.s32.totalorder (!%p109_p3), %s1237_s6, 1  ;;  %s1247_s14 = smov (!%p109_p3), 64  }
   0x7   : > { %112 = sbr.rel (%p109_p3) target bundleno = 2594 (0xa22), region = 24  ;;  %s1248_s15 = smov (!%p109_p3), 112  }
   0x8   : > { %s1249_s16 = smov (!%p109_p3), 48   ;;  %s1250_s17 = smov (!%p109_p3), 32  }
   0x9   : > { %s1251_s18 = smov (!%p109_p3), 96   ;;  %s1252_s19 = smov (!%p109_p3), 16  }
   0xa   : > { %s1253_s20 = smov (!%p109_p3), 80  }
   0xc   : > { %s1477_s6 = smov (!%p136_p4, %s1237_s6), 1  ;;  %vm172_vm0 = vcmask 130048   ;;  %v157_v7 = vlaneseq  ;;  %vm236_vm2 = vcmask 195584   ;;  %vm284_vm3 = vcmask 1043456  }
   0xd   : > { %s1137_s10 = smul.u32 24, %s1477_s6  ;;  %vm519_vm4 = vcmask 261248   ;;  %vm703_vm5 = vcmask 392448   ;;  %vm887_vm6 = vcmask 523648   ;;  %vm907_vm7 = vcmask 519168  }
   0xe   : > { %v1306_v8 = vand.u32 127, %v157_v7  ;;  %s1138_s21 = smul.u32 12, %s1477_s6 }
   0xf   : > { %s1288_s13 = scalar_lea.vmem %s1470_s0, %s1137_s10 }
  0x10   : > { %v156_v0 = vld [vmem:[%s1288_s13 + $0x10] sm:$0xff]  ;;  %v1294_v2 = vld [vmem:[%s1288_s13] ss:$8 sps:$4 sm:$0xff]   ;;  %vm159_vm1 = vcmp.lt.s32.totalorder %v1306_v8, 17  ;;  %v1326_v35 = vld [vmem:[%s1288_s13 + $0x4] ss:$8 sps:$4 sm:$0xff]   ;;  %s152_s24 = scalar_lea.vmem %s1471_s1, %s1138_s21 }
  0x11   : > { %v1291_v1 = vcombine.low %v156_v0, %v156_v0  ;;  %1065 = vmatprep.mubr.msk.bf16.mxu0 %vm172_vm0, %v1294_v2  ;;  %v1323_v34 = vcombine.high %v156_v0, %v156_v0 }
  0x13   : > { %170 = vrot.lane.b32.xlu0 %v1291_v1, %s1247_s14  ;;  %1127 = vmatprep.subr.msk.bf16.mxu1 %vm284_vm3, %v1323_v34  ;;  %v286_v36 = vsel %vm284_vm3, %v1323_v34, 0 }
  0x14   : > { %1070 = vmatpush3.bf16.msra.mxu1 %v286_v36 }
  0x15   : > { %1071 = vmatprep.subr.bf16.mxu1 %v1326_v35 }
  0x17   : > { %168 = vrot.lane.b32.xlu0 %v1294_v2, %s1247_s14 }
  0x18   : > { %1072 = vmatpush3.bf16.msra.mxu1 %v1326_v35 }
  0x85   : > { %v171_v3 = vpop.permute.xlu0 %170 }
  0x86   : > { %1125 = vmatprep.subr.msk.bf16.mxu0 %vm172_vm0, %v171_v3  ;;  %v183_v4 = vsel %vm172_vm0, %v171_v3, 0 }
  0x87   : > { %1062 = vmatpush3.bf16.xpose.msra.mxu0 %v183_v4 }
  0x89   : > { %v169_v5 = vpop.permute.xlu0 %168 }
  0x8a   : > { %1126 = vmatprep.subr.msk.bf16.mxu0 %vm172_vm0, %v169_v5  ;;  %v180_v6 = vsel %vm172_vm0, %v169_v5, 0 }
  0x8f   : > { %1064 = vmatpush3.bf16.xpose.msra.mxu0 %v180_v6 }
  0x96   : > { %1066 = vmatmul.mubr.msk.bf16.vlgmr.msra.gmra.mxu0 %vm172_vm0, %v1291_v1 }
 0x156   : > { %v1067_v9 = vpop.f32.mrf.mxu0 }
 0x157   : > { %v235_v10 = vsel %vm159_vm1, %v1067_v9, -1e+30 }
 0x158   : > { %v219_v11 = vpop.f32.mrf.mxu0  ;;  %v243_v12 = vsel %vm236_vm2, %v235_v10, -inf }
 0x159   : > { %v233_v13 = vsel %vm159_vm1, %v219_v11, -1e+30  ;;  %244 = vmax.xlane.f32.xlu0 %v243_v12 }
 0x15a   : > { %v1068_v14 = vpop.f32.mrf.mxu0  ;;  %v237_v15 = vsel %vm236_vm2, %v233_v13, -inf }
 0x15b   : > { %238 = vmax.xlane.f32.xlu1 %v237_v15 }
 0x15c   : > { %v222_v16 = vpop.f32.mrf.mxu0 }
 0x15d   : > { %v234_v17 = vsel %vm159_vm1, %v222_v16, -1e+30 }
 0x15e   : > { %v240_v18 = vsel %vm236_vm2, %v234_v17, -inf }
 0x15f   : > { %241 = vmax.xlane.f32.xlu1 %v240_v18 }
 0x16f   : > { %339 = vrot.lane.b32.xlu0 %v1294_v2, %s1248_s15 }
 0x1e2   : > { %v245_v19 = vpop.xlane.xlu0 %244 }
 0x1e3   : > { %v248_v20 = vsub.f32 %v235_v10, %v245_v19 }
 0x1e4   : > { %v239_v21 = vpop.xlane.xlu1 %238 }
 0x1e5   : > { %v253_v22 = vmul.f32 1.442695, %v248_v20  ;;  %v246_v23 = vsub.f32 %v233_v13, %v239_v21 }
 0x1e6   : > { %v340_v50 = vpop.permute.xlu0 %339 }
 0x1e7   : > { %1175 = vpow2.f32 %v253_v22  ;;  %v249_v24 = vmul.f32 1.442695, %v246_v23 }
 0x1e8   : > { %v242_v25 = vpop.xlane.xlu1 %241 }
 0x1e9   : > { %1177 = vpow2.f32 %v249_v24  ;;  %v247_v26 = vsub.f32 %v234_v17, %v242_v25 }
 0x1eb   : > { %v251_v27 = vmul.f32 1.442695, %v247_v26 }
 0x1ed   : > { %1179 = vpow2.f32 %v251_v27 }
 0x1f4   : > { %v1176_v28 = vpop.eup %1175 }
 0x1f5   : > { %v261_v29 = vsel %vm236_vm2, %v1176_v28, 0.0 }
 0x1f6   : > { %v1178_v30 = vpop.eup %1177  ;;  %262 = vadd.xlane.f32.xlu1 %v261_v29 }
 0x1f7   : > { %v255_v31 = vsel %vm236_vm2, %v1178_v30, 0.0 }
 0x1fa   : > { %v1180_v32 = vpop.eup %1179  ;;  %256 = vadd.xlane.f32.xlu1 %v255_v31 }
 0x1fb   : > { %v258_v33 = vsel %vm236_vm2, %v1180_v32, 0.0 }
 0x1fe   : > { %259 = vadd.xlane.f32.xlu1 %v258_v33 }
 0x20f   : > { %345 = vrot.lane.b32.xlu1 %v1291_v1, %s1249_s16 }
 0x213   : > { %343 = vrot.lane.b32.xlu1 %v1294_v2, %s1249_s16 }
 0x217   : > { %341 = vrot.lane.b32.xlu1 %v1291_v1, %s1248_s15 }
 0x27f   : > { %v263_v37 = vpop.xlane.xlu1 %262 }
 0x280   : > { %1181 = vrcp.f32 %v263_v37 }
 0x283   : > { %v257_v38 = vpop.xlane.xlu1 %256 }
 0x284   : > { %1183 = vrcp.f32 %v257_v38 }
 0x287   : > { %v260_v39 = vpop.xlane.xlu1 %259 }
 0x288   : > { %1185 = vrcp.f32 %v260_v39 }
 0x28b   : > { %v346_v40 = vpop.permute.xlu1 %345 }
 0x28c   : > { %1128 = vmatprep.subr.msk.bf16.mxu1 %vm172_vm0, %v346_v40  ;;  %v357_v48 = vsel %vm172_vm0, %v346_v40, 0 }
 0x28d   : > { %v1182_v41 = vpop.eup %1181 }
 0x28e   : > { %v269_v44 = vmul.f32 %v1182_v41, %v1176_v28 }
 0x28f   : > { %v344_v51 = vpop.permute.xlu1 %343 }
 0x290   : > { %v271_v49 = vpack.c.bf16 %v269_v44, %v269_v44  ;;  %v354_v52 = vsel %vm172_vm0, %v344_v51, 0 }
 0x291   : > { %v1184_v42 = vpop.eup %1183 }
 0x292   : > { %v267_v45 = vmul.f32 %v1184_v42, %v1178_v30 }
 0x293   : > { %v342_v53 = vpop.permute.xlu1 %341 }
 0x295   : > { %v1186_v43 = vpop.eup %1185 }
 0x296   : > { %v268_v46 = vmul.f32 %v1186_v43, %v1180_v32 }
 0x298   : > { %v270_v47 = vpack.c.bf16 %v268_v46, %v267_v45 }
 0x29a   : > { %1073 = vmatprep.mubr.msk.bf16.mxu1 %vm236_vm2, %v270_v47 }
 0x29b   : > { %1074 = vmatmul.mubr.msk.bf16.vlgmr.msra.gmra.mxu1 %vm236_vm2, %v271_v49 }
 0x29c   : > { %1078 = vmatpush3.bf16.xpose.msra.mxu1 %v357_v48  ;;  %1081 = vmatprep.mubr.msk.bf16.mxu1 %vm172_vm0, %v340_v50 }
 0x29d   : > { %1129 = vmatprep.subr.msk.bf16.mxu1 %vm172_vm0, %v344_v51 }
 0x2a4   : > { %1080 = vmatpush3.bf16.xpose.msra.mxu1 %v354_v52 }
 0x2ab   : > { %1082 = vmatmul.mubr.msk.bf16.vlgmr.msra.gmra.mxu1 %vm172_vm0, %v342_v53 }
 0x35b   : > { %v1075_v54 = vpop.f32.mrf.mxu1 }
 0x35c   : > { %338 = vst.msk [vmem:[#allocation2 + $0x10] sm:$0xff] %vm172_vm0, %v1075_v54 }
 0x35d   : > { %v322_v55 = vpop.f32.mrf.mxu1 }
 0x35e   : > { %336 = vst.msk [vmem:[#allocation2] sm:$0xff] %vm172_vm0, %v322_v55 }
 0x35f   : > { %v1076_v56 = vpop.f32.mrf.mxu1 }
 0x361   : > { %v325_v57 = vpop.f32.mrf.mxu1 }
 0x362   : > { %337 = vst.msk [vmem:[#allocation2 + $0x8] sm:$0xff] %vm172_vm0, %v325_v57 }
 0x36b   : > { %v1083_v58 = vpop.f32.mrf.mxu1 }
 0x36c   : > { %v409_v63 = vsel %vm159_vm1, %v1083_v58, -1e+30 }
 0x36d   : > { %v393_v59 = vpop.f32.mrf.mxu1  ;;  %v416_v4 = vsel %vm236_vm2, %v409_v63, -inf }
 0x36e   : > { %v407_v60 = vsel %vm159_vm1, %v393_v59, -1e+30 }
 0x36f   : > { %v1084_v61 = vpop.f32.mrf.mxu1  ;;  %v410_v62 = vsel %vm236_vm2, %v407_v60, -inf }
 0x370   : > { %411 = vmax.xlane.f32.xlu1 %v410_v62 }
 0x371   : > { %v396_v0 = vpop.f32.mrf.mxu1 }
 0x372   : > { %v408_v3 = vsel %vm159_vm1, %v396_v0, -1e+30 }
 0x373   : > { %v413_v5 = vsel %vm236_vm2, %v408_v3, -inf }
 0x374   : > { %417 = vmax.xlane.f32.xlu1 %v416_v4  ;;  %414 = vmax.xlane.f32.xlu0 %v413_v5 }
 0x385   : > { %447 = vrot.lane.b32.xlu1 %v1323_v34, %s1248_s15 }
 0x3f9   : > { %v412_v6 = vpop.xlane.xlu1 %411 }
 0x3fa   : > { %v419_v7 = vsub.f32 %v407_v60, %v412_v6 }
 0x3fc   : > { %v422_v9 = vmul.f32 1.442695, %v419_v7 }
 0x3fd   : > { %v418_v10 = vpop.xlane.xlu1 %417  ;;  %v415_v11 = vpop.xlane.xlu0 %414 }
 0x3fe   : > { %1187 = vpow2.f32 %v422_v9  ;;  %v421_v12 = vsub.f32 %v409_v63, %v418_v10  ;;  %v420_v13 = vsub.f32 %v408_v3, %v415_v11 }
 0x400   : > { %v426_v14 = vmul.f32 1.442695, %v421_v12  ;;  %v424_v15 = vmul.f32 1.442695, %v420_v13 }
 0x401   : > { %v448_v16 = vpop.permute.xlu1 %447 }
 0x402   : > { %1189 = vpow2.f32 %v426_v14  ;;  %v457_v17 = vsel %vm284_vm3, %v448_v16, 0  ;;  %1130 = vmatprep.subr.msk.bf16.mxu0 %vm284_vm3, %v448_v16 }
 0x403   : > { %1191 = vpow2.f32 %v424_v15  ;;  %1086 = vmatpush3.bf16.msra.mxu0 %v457_v17 }
 0x40b   : > { %v1188_v18 = vpop.eup %1187 }
 0x40c   : > { %v428_v19 = vsel %vm236_vm2, %v1188_v18, 0.0 }
 0x40d   : > { %429 = vadd.xlane.f32.xlu1 %v428_v19 }
 0x40f   : > { %v1190_v20 = vpop.eup %1189 }
 0x410   : > { %v1192_v21 = vpop.eup %1191  ;;  %v434_v22 = vsel %vm236_vm2, %v1190_v20, 0.0 }
 0x411   : > { %435 = vadd.xlane.f32.xlu0 %v434_v22  ;;  %v431_v23 = vsel %vm236_vm2, %v1192_v21, 0.0 }
 0x412   : > { %432 = vadd.xlane.f32.xlu1 %v431_v23 }
 0x423   : > { %529 = vrot.lane.b32.xlu1 %v1291_v1, %s1250_s17 }
 0x427   : > { %445 = vrot.lane.b32.xlu0 %v1326_v35, %s1248_s15  ;;  %527 = vrot.lane.b32.xlu1 %v1294_v2, %s1250_s17 }
 0x42b   : > { %523 = vrot.lane.b32.xlu0 %v1294_v2, %s1251_s18  ;;  %525 = vrot.lane.b32.xlu1 %v1291_v1, %s1251_s18 }
 0x496   : > { %v430_v24 = vpop.xlane.xlu1 %429 }
 0x497   : > { %1193 = vrcp.f32 %v430_v24 }
 0x49a   : > { %v436_v25 = vpop.xlane.xlu0 %435 }
 0x49b   : > { %v433_v26 = vpop.xlane.xlu1 %432  ;;  %1195 = vrcp.f32 %v436_v25 }
 0x49c   : > { %1197 = vrcp.f32 %v433_v26 }
 0x49e   : > { %v446_v27 = vpop.permute.xlu0 %445 }
 0x49f   : > { %1087 = vmatprep.subr.bf16.mxu0 %v446_v27  ;;  %v530_v28 = vpop.permute.xlu1 %529 }
 0x4a0   : > { %1088 = vmatpush3.bf16.msra.mxu0 %v446_v27  ;;  %v541_v39 = vsel %vm172_vm0, %v530_v28, 0 }
 0x4a1   : > { %1131 = vmatprep.subr.msk.bf16.mxu0 %vm172_vm0, %v530_v28 }
 0x4a2   : > { %v524_v40 = vpop.permute.xlu0 %523 }
 0x4a3   : > { %v528_v41 = vpop.permute.xlu1 %527 }
 0x4a4   : > { %v1194_v29 = vpop.eup %1193  ;;  %v538_v42 = vsel %vm172_vm0, %v528_v41, 0 }
 0x4a5   : > { %v440_v33 = vmul.f32 %v1194_v29, %v1188_v18 }
 0x4a7   : > { %v526_v43 = vpop.permute.xlu1 %525 }
 0x4a8   : > { %v1196_v30 = vpop.eup %1195 }
 0x4a9   : > { %v1198_v31 = vpop.eup %1197  ;;  %v442_v32 = vmul.f32 %v1196_v30, %v1190_v20 }
 0x4aa   : > { %v441_v36 = vmul.f32 %v1198_v31, %v1192_v21 }
 0x4ab   : > { %v444_v37 = vpack.c.bf16 %v442_v32, %v442_v32 }
 0x4ac   : > { %v443_v38 = vpack.c.bf16 %v441_v36, %v440_v33 }
 0x4ae   : > { %1089 = vmatprep.mubr.msk.bf16.mxu0 %vm236_vm2, %v443_v38 }
 0x4af   : > { %1090 = vmatmul.mubr.msk.bf16.vlgmr.msra.gmra.mxu0 %vm236_vm2, %v444_v37 }
 0x4b0   : > { %1094 = vmatpush3.bf16.xpose.msra.mxu0 %v541_v39  ;;  %1097 = vmatprep.mubr.msk.bf16.mxu0 %vm172_vm0, %v524_v40 }
 0x4b1   : > { %1132 = vmatprep.subr.msk.bf16.mxu0 %vm172_vm0, %v528_v41 }
 0x4b8   : > { %1096 = vmatpush3.bf16.xpose.msra.mxu0 %v538_v42 }
 0x4bf   : > { %1098 = vmatmul.mubr.msk.bf16.vlgmr.msra.gmra.mxu0 %vm172_vm0, %v526_v43 }
 0x56f   : > { %v1385_v44 = vpop.f32.mrf.mxu0 }
 0x571   : > { %v1387_v45 = vpop.f32.mrf.mxu0 }
 0x573   : > { %v1092_v46 = vpop.f32.mrf.mxu0 }
 0x575   : > { %v1389_v47 = vpop.f32.mrf.mxu0 }
 0x57f   : > { %v1099_v48 = vpop.f32.mrf.mxu0 }
 0x580   : > { %v593_v53 = vsel %vm159_vm1, %v1099_v48, -1e+30 }
 0x581   : > { %v577_v49 = vpop.f32.mrf.mxu0  ;;  %v600_v56 = vsel %vm236_vm2, %v593_v53, -inf }
 0x582   : > { %v591_v50 = vsel %vm159_vm1, %v577_v49, -1e+30 }
 0x583   : > { %v1100_v51 = vpop.f32.mrf.mxu0  ;;  %v594_v52 = vsel %vm236_vm2, %v591_v50, -inf }
 0x584   : > { %595 = vmax.xlane.f32.xlu0 %v594_v52 }
 0x585   : > { %v580_v54 = vpop.f32.mrf.mxu0 }
 0x586   : > { %v592_v55 = vsel %vm159_vm1, %v580_v54, -1e+30 }
 0x587   : > { %v597_v57 = vsel %vm236_vm2, %v592_v55, -inf }
 0x588   : > { %601 = vmax.xlane.f32.xlu0 %v600_v56  ;;  %598 = vmax.xlane.f32.xlu1 %v597_v57 }
 0x599   : > { %631 = vrot.lane.b32.xlu1 %v1323_v34, %s1251_s18 }
 0x60d   : > { %v596_v58 = vpop.xlane.xlu0 %595 }
 0x60e   : > { %v603_v59 = vsub.f32 %v591_v50, %v596_v58 }
 0x610   : > { %v606_v0 = vmul.f32 1.442695, %v603_v59 }
 0x611   : > { %v602_v60 = vpop.xlane.xlu0 %601  ;;  %v599_v61 = vpop.xlane.xlu1 %598 }
 0x612   : > { %v605_v62 = vsub.f32 %v593_v53, %v602_v60  ;;  %v604_v63 = vsub.f32 %v592_v55, %v599_v61 }
 0x614   : > { %v610_v3 = vmul.f32 1.442695, %v605_v62  ;;  %v608_v4 = vmul.f32 1.442695, %v604_v63 }
 0x615   : > { %v632_v5 = vpop.permute.xlu1 %631 }
 0x616   : > { %1199 = vpow2.f32 %v610_v3  ;;  %v641_v6 = vsel %vm284_vm3, %v632_v5, 0  ;;  %1133 = vmatprep.subr.msk.bf16.mxu1 %vm284_vm3, %v632_v5 }
 0x617   : > { %1201 = vpow2.f32 %v608_v4  ;;  %1102 = vmatpush3.bf16.msra.mxu1 %v641_v6 }
 0x618   : > { %1203 = vpow2.f32 %v606_v0 }
 0x623   : > { %v1200_v7 = vpop.eup %1199 }
 0x624   : > { %v1202_v9 = vpop.eup %1201  ;;  %v618_v10 = vsel %vm236_vm2, %v1200_v7, 0.0 }
 0x625   : > { %v1204_v11 = vpop.eup %1203  ;;  %619 = vadd.xlane.f32.xlu0 %v618_v10  ;;  %v615_v12 = vsel %vm236_vm2, %v1202_v9, 0.0 }
 0x626   : > { %616 = vadd.xlane.f32.xlu1 %v615_v12  ;;  %v612_v13 = vsel %vm236_vm2, %v1204_v11, 0.0 }
 0x629   : > { %613 = vadd.xlane.f32.xlu0 %v612_v13 }
 0x637   : > { %713 = vrot.lane.b32.xlu1 %v1291_v1, %s1252_s19 }
 0x63b   : > { %711 = vrot.lane.b32.xlu1 %v1294_v2, %s1252_s19 }
 0x63f   : > { %629 = vrot.lane.b32.xlu0 %v1326_v35, %s1251_s18  ;;  %709 = vrot.lane.b32.xlu1 %v1291_v1, %s1253_s20 }
 0x643   : > { %707 = vrot.lane.b32.xlu0 %v1294_v2, %s1253_s20 }
 0x6ae   : > { %v620_v14 = vpop.xlane.xlu0 %619 }
 0x6af   : > { %v617_v15 = vpop.xlane.xlu1 %616  ;;  %1205 = vrcp.f32 %v620_v14 }
 0x6b0   : > { %1207 = vrcp.f32 %v617_v15 }
 0x6b2   : > { %v614_v16 = vpop.xlane.xlu0 %613 }
 0x6b3   : > { %1209 = vrcp.f32 %v614_v16  ;;  %v714_v18 = vpop.permute.xlu1 %713 }
 0x6b4   : > { %v725_v2 = vsel %vm172_vm0, %v714_v18, 0 }
 0x6b6   : > { %v630_v17 = vpop.permute.xlu0 %629 }
 0x6b7   : > { %1103 = vmatprep.subr.bf16.mxu1 %v630_v17  ;;  %v712_v27 = vpop.permute.xlu1 %711 }
 0x6b8   : > { %1104 = vmatpush3.bf16.msra.mxu1 %v630_v17  ;;  %v722_v28 = vsel %vm172_vm0, %v712_v27, 0 }
 0x6b9   : > { %1134 = vmatprep.subr.msk.bf16.mxu1 %vm172_vm0, %v714_v18 }
 0x6ba   : > { %v708_v26 = vpop.permute.xlu0 %707 }
 0x6bb   : > { %v710_v29 = vpop.permute.xlu1 %709 }
 0x6bc   : > { %v1206_v19 = vpop.eup %1205 }
 0x6bd   : > { %v1208_v20 = vpop.eup %1207  ;;  %v626_v22 = vmul.f32 %v1206_v19, %v1200_v7 }
 0x6be   : > { %v625_v23 = vmul.f32 %v1208_v20, %v1202_v9 }
 0x6bf   : > { %v628_v25 = vpack.c.bf16 %v626_v22, %v626_v22 }
 0x6c0   : > { %v1210_v21 = vpop.eup %1209 }
 0x6c1   : > { %v624_v1 = vmul.f32 %v1210_v21, %v1204_v11 }
 0x6c3   : > { %v627_v24 = vpack.c.bf16 %v625_v23, %v624_v1 }
 0x6c5   : > { %1105 = vmatprep.mubr.msk.bf16.mxu1 %vm236_vm2, %v627_v24 }
 0x6c6   : > { %1106 = vmatmul.mubr.msk.bf16.vlgmr.msra.gmra.mxu1 %vm236_vm2, %v628_v25 }
 0x6c7   : > { %1110 = vmatpush3.bf16.xpose.msra.mxu1 %v725_v2  ;;  %1113 = vmatprep.mubr.msk.bf16.mxu1 %vm172_vm0, %v708_v26 }
 0x6c8   : > { %1135 = vmatprep.subr.msk.bf16.mxu1 %vm172_vm0, %v712_v27 }
 0x6cf   : > { %1112 = vmatpush3.bf16.xpose.msra.mxu1 %v722_v28 }
 0x6d6   : > { %1114 = vmatmul.mubr.msk.bf16.vlgmr.msra.gmra.mxu1 %vm172_vm0, %v710_v29 }
 0x786   : > { %v1107_v30 = vpop.f32.mrf.mxu1 }
 0x788   : > { %v677_v31 = vpop.f32.mrf.mxu1 }
 0x78a   : > { %v1108_v32 = vpop.f32.mrf.mxu1 }
 0x78c   : > { %v680_v33 = vpop.f32.mrf.mxu1 }
 0x796   : > { %v1115_v36 = vpop.f32.mrf.mxu1 }
 0x797   : > { %v777_v41 = vsel %vm159_vm1, %v1115_v36, -1e+30 }
 0x798   : > { %v761_v37 = vpop.f32.mrf.mxu1  ;;  %v784_v46 = vsel %vm236_vm2, %v777_v41, -inf }
 0x799   : > { %v775_v38 = vsel %vm159_vm1, %v761_v37, -1e+30 }
 0x79a   : > { %v1116_v39 = vpop.f32.mrf.mxu1  ;;  %v778_v40 = vsel %vm236_vm2, %v775_v38, -inf }
 0x79b   : > { %779 = vmax.xlane.f32.xlu0 %v778_v40 }
 0x79c   : > { %v764_v42 = vpop.f32.mrf.mxu1 }
 0x79d   : > { %v776_v43 = vsel %vm159_vm1, %v764_v42, -1e+30 }
 0x79e   : > { %v781_v48 = vsel %vm236_vm2, %v776_v43, -inf }
 0x79f   : > { %785 = vmax.xlane.f32.xlu0 %v784_v46  ;;  %782 = vmax.xlane.f32.xlu1 %v781_v48 }
 0x824   : > { %v780_v49 = vpop.xlane.xlu0 %779 }
 0x825   : > { %v787_v50 = vsub.f32 %v775_v38, %v780_v49 }
 0x827   : > { %v790_v55 = vmul.f32 1.442695, %v787_v50 }
 0x828   : > { %v786_v51 = vpop.xlane.xlu0 %785  ;;  %v783_v52 = vpop.xlane.xlu1 %782 }
 0x829   : > { %v789_v53 = vsub.f32 %v777_v41, %v786_v51  ;;  %v788_v54 = vsub.f32 %v776_v43, %v783_v52 }
 0x82b   : > { %v794_v56 = vmul.f32 1.442695, %v789_v53  ;;  %v792_v57 = vmul.f32 1.442695, %v788_v54 }
 0x82d   : > { %1211 = vpow2.f32 %v794_v56 }
 0x82e   : > { %1213 = vpow2.f32 %v792_v57 }
 0x82f   : > { %1215 = vpow2.f32 %v790_v55 }
 0x83a   : > { %v1212_v8 = vpop.eup %1211 }
 0x83b   : > { %v1214_v58 = vpop.eup %1213  ;;  %v802_v59 = vsel %vm236_vm2, %v1212_v8, 0.0 }
 0x83c   : > { %v1216_v60 = vpop.eup %1215  ;;  %803 = vadd.xlane.f32.xlu0 %v802_v59  ;;  %v799_v61 = vsel %vm236_vm2, %v1214_v58, 0.0 }
 0x83d   : > { %800 = vadd.xlane.f32.xlu1 %v799_v61  ;;  %v796_v62 = vsel %vm236_vm2, %v1216_v60, 0.0 }
 0x840   : > { %797 = vadd.xlane.f32.xlu0 %v796_v62 }
 0x84e   : > { %815 = vrot.lane.b32.xlu1 %v1323_v34, %s1253_s20 }
 0x852   : > { %510 = vrot.lane.b32.xlu1 %v1387_v45, %s1252_s19 }
 0x856   : > { %512 = vrot.lane.b32.xlu1 %v1389_v47, %s1252_s19  ;;  %813 = vrot.lane.b32.xlu0 %v1326_v35, %s1253_s20 }
 0x85a   : > { %694 = vrot.lane.b32.xlu1 %v677_v31, %s1250_s17  ;;  %514 = vrot.lane.b32.xlu0 %v1385_v44, %s1252_s19 }
 0x85e   : > { %698 = vrot.lane.b32.xlu1 %v1107_v30, %s1250_s17  ;;  %696 = vrot.lane.b32.xlu0 %v680_v33, %s1250_s17 }
 0x8c5   : > { %v804_v63 = vpop.xlane.xlu0 %803 }
 0x8c6   : > { %v801_v34 = vpop.xlane.xlu1 %800  ;;  %1217 = vrcp.f32 %v804_v63 }
 0x8c7   : > { %1219 = vrcp.f32 %v801_v34 }
 0x8c9   : > { %v798_v45 = vpop.xlane.xlu0 %797 }
 0x8ca   : > { %1221 = vrcp.f32 %v798_v45  ;;  %v816_v0 = vpop.permute.xlu1 %815 }
 0x8cb   : > { %v825_v47 = vsel %vm284_vm3, %v816_v0, 0  ;;  %1136 = vmatprep.subr.msk.bf16.mxu0 %vm284_vm3, %v816_v0 }
 0x8cc   : > { %1118 = vmatpush3.bf16.msra.mxu0 %v825_v47 }
 0x8cd   : > { %v814_v35 = vpop.permute.xlu0 %813 }
 0x8ce   : > { %v511_v3 = vpop.permute.xlu1 %510  ;;  %1119 = vmatprep.subr.bf16.mxu0 %v814_v35 }
 0x8cf   : > { %520 = vst.msk [vmem:[#allocation2] sm:$0xff] %vm519_vm4, %v511_v3 }
 0x8d0   : > { %1120 = vmatpush3.bf16.msra.mxu0 %v814_v35 }
 0x8d1   : > { %v515_v44 = vpop.permute.xlu0 %514 }
 0x8d2   : > { %522 = vst.msk [vmem:[#allocation2 + $0x10] sm:$0xff] %vm519_vm4, %v515_v44  ;;  %v513_v4 = vpop.permute.xlu1 %512 }
 0x8d3   : > { %521 = vst.msk [vmem:[#allocation2 + $0x8] sm:$0xff] %vm519_vm4, %v513_v4  ;;  %v1218_v5 = vpop.eup %1217 }
 0x8d4   : > { %v1220_v6 = vpop.eup %1219  ;;  %v810_v11 = vmul.f32 %v1218_v5, %v1212_v8 }
 0x8d5   : > { %v697_v7 = vpop.permute.xlu0 %696  ;;  %v809_v13 = vmul.f32 %v1220_v6, %v1214_v58 }
 0x8d6   : > { %705 = vst.msk [vmem:[#allocation2 + $0x8] sm:$0xff] %vm703_vm5, %v697_v7  ;;  %v695_v9 = vpop.permute.xlu1 %694  ;;  %v812_v16 = vpack.c.bf16 %v810_v11, %v810_v11 }
 0x8d7   : > { %v1222_v10 = vpop.eup %1221  ;;  %704 = vst.msk [vmem:[#allocation2] sm:$0xff] %vm703_vm5, %v695_v9 }
 0x8d8   : > { %v808_v12 = vmul.f32 %v1222_v10, %v1216_v60 }
 0x8da   : > { %v699_v14 = vpop.permute.xlu1 %698  ;;  %v811_v15 = vpack.c.bf16 %v809_v13, %v808_v12 }
 0x8db   : > { %706 = vst.msk [vmem:[#allocation2 + $0x10] sm:$0xff] %vm703_vm5, %v699_v14 }
 0x8dc   : > { %1121 = vmatprep.mubr.msk.bf16.mxu0 %vm236_vm2, %v811_v15 }
 0x8dd   : > { %1122 = vmatmul.mubr.msk.bf16.vlgmr.msra.gmra.mxu0 %vm236_vm2, %v812_v16 }
 0x99d   : > { %v1123_v17 = vpop.f32.mrf.mxu0 }
 0x99f   : > { %v861_v18 = vpop.f32.mrf.mxu0 }
 0x9a0   : > { %878 = vrot.lane.b32.xlu0 %v861_v18, %s1249_s16 }
 0x9a1   : > { %v1124_v19 = vpop.f32.mrf.mxu0 }
 0x9a3   : > { %v864_v20 = vpop.f32.mrf.mxu0 }
 0x9a4   : > { %882 = vrot.lane.b32.xlu0 %v1123_v17, %s1249_s16  ;;  %880 = vrot.lane.b32.xlu1 %v864_v20, %s1249_s16 }
 0xa12   : > { %v879_v21 = vpop.permute.xlu0 %878 }
 0xa13   : > { %888 = vst.msk [vmem:[#allocation2] sm:$0xff] %vm887_vm6, %v879_v21 }
 0xa16   : > { %v883_v22 = vpop.permute.xlu0 %882  ;;  %v881_v1 = vpop.permute.xlu1 %880 }
 0xa17   : > { %890 = vst.msk [vmem:[#allocation2 + $0x10] sm:$0xff] %vm887_vm6, %v883_v22  ;;  %889 = vst.msk [vmem:[#allocation2 + $0x8] sm:$0xff] %vm887_vm6, %v881_v1 }
 0xa1a   : > { %v891_v23 = vld [vmem:[#allocation2] sm:$0xff] }
 0xa1b   : > { %v1026_v24 = vpack.c.bf16 %v891_v23, %v891_v23 }
 0xa1d   : > { %908 = vst.msk [vmem:[%s152_s24] sm:$0xf] %vm907_vm7, %v1026_v24 }
 0xa1e   : > { %v893_v2 = vld [vmem:[#allocation2 + $0x10] sm:$0xff]  ;;  %v892_v25 = vld [vmem:[#allocation2 + $0x8] sm:$0xff] }
 0xa1f   : > { %v1028_v26 = vpack.c.bf16 %v893_v2, %v893_v2  ;;  %v1027_v27 = vpack.c.bf16 %v892_v25, %v892_v25 }
 0xa21   : > { %910 = vst.msk [vmem:[%s152_s24 + $0x8] sm:$0xf] %vm907_vm7, %v1028_v26  ;;  %909 = vst.msk [vmem:[%s152_s24 + $0x4] sm:$0xf] %vm907_vm7, %v1027_v27 }
 0xa22 PF: > { %s11_s8 = sadd.s32 1, %s1245_s8   ;;  %s1472_s6 = smov %s1241_s7 }
 0xa23   : > { %p8_p5 = scmp.ge.s32.totalorder %s11_s8, 4   ;;  %s1473_s7 = smov %s1475_s9 }
 0xa25   :  { %10 = sbr.rel (!%p8_p5) target bundleno = 2 (0x2), region = 54 }

// kernel: vision_transformer_forward.18
= control target key start
LH: loop header
LB: loop body
LE: loop exit
PB: predicated region body
PF: predicated region fallthrough
CT: control target
= control target key end

     0   :  { %vm22_vm0 = vcmask 523264   ;;  %v266_v0 = vmov 0.0   ;;  %vm267_vm1 = vmmov 0   ;;  %s377_s1 = inlined_call_operand.vmem [shape: bf16[64,64], index: 1, kind: input, shape index: {}]   ;;  %s378_s0 = inlined_call_operand.vmem [shape: bf16[48,64], index: 0, kind: input, shape index: {}]   ;;  %s379_s2 = inlined_call_operand.vmem [shape: f32[1,64], index: 2, kind: input, shape index: {}]   ;;  %s380_s3 = inlined_call_operand.vmem [shape: f32[48,64], index: 3, kind: input, shape index: {}]   ;;  %s381_s4 = inlined_call_operand.vmem [shape: f32[48,64], index: 4, kind: output, shape index: {}]  }
   0x1   :  { %249 = vmatprep.subr.bf16.mxu1 %v266_v0  ;;  %v259_v1 = vld [vmem:[%s377_s1 + $0x18] sm:$0xff]   ;;  %229 = vmatprep.subr.bf16.mxu0 %v266_v0  ;;  %23 = vst.msk [vmem:[#allocation2] sm:$0xff] %vm22_vm0, %v266_v0  ;;  %24 = vst.msk [vmem:[#allocation2 + $0x8] sm:$0xff] %vm22_vm0, %v266_v0  ;;  %v260_v2 = vld [vmem:[%s377_s1 + $0x10] sm:$0xff]  }
   0x2   :  { %25 = vst.msk [vmem:[#allocation2 + $0x10] sm:$0xff] %vm22_vm0, %v266_v0  ;;  %26 = vst.msk [vmem:[#allocation2 + $0x18] sm:$0xff] %vm22_vm0, %v266_v0  ;;  %241 = vmatprep.mubr.msk.bf16.mxu1 %vm267_vm1, %v266_v0  ;;  %237 = vmatprep.mubr.msk.bf16.mxu0 %vm267_vm1, %v266_v0  ;;  %v261_v3 = vld [vmem:[%s377_s1 + $0x8] sm:$0xff]   ;;  %v262_v4 = vld [vmem:[%s377_s1] sm:$0xff]  }
   0x3   :  { %27 = vst.msk [vmem:[#allocation2 + $0x20] sm:$0xff] %vm22_vm0, %v266_v0  ;;  %28 = vst.msk [vmem:[#allocation2 + $0x28] sm:$0xff] %vm22_vm0, %v266_v0  ;;  %253 = vmatpush3.bf16.msra.mxu1 %v259_v1  ;;  %230 = vmatpush3.bf16.msra.mxu0 %v259_v1  ;;  %v263_v5 = vld [vmem:[%s378_s0 + $0x8] sm:$0xff]   ;;  %v264_v6 = vld [vmem:[%s378_s0] sm:$0xff]  }
   0x4   :  { %250 = vmatprep.subr.bf16.mxu1 %v266_v0  ;;  %231 = vmatprep.subr.bf16.mxu0 %v266_v0  ;;  %v265_v7 = vld [vmem:[%s378_s0 + $0x10] sm:$0xff]   ;;  %v221_v25 = vld [vmem:[%s379_s2] ss:$0 sm:$0xff]  ;;  %v192_v39 = vld [vmem:[%s380_s3 + $0x18] sm:$0xff] }
   0x5   :  { %v191_v27 = vld [vmem:[%s380_s3 + $0x10] sm:$0xff]  ;;  %v189_v32 = vld [vmem:[%s380_s3] sm:$0xff]  ;;  %v190_v43 = vld [vmem:[%s380_s3 + $0x8] sm:$0xff] }
   0x6   :  { %v193_v50 = vld [vmem:[%s380_s3 + $0x20] sm:$0xff]  ;;  %v194_v54 = vld [vmem:[%s380_s3 + $0x28] sm:$0xff] }
   0x7   :  { %254 = vmatpush3.bf16.msra.mxu1 %v260_v2  ;;  %232 = vmatpush3.bf16.msra.mxu0 %v260_v2 }
   0x8   :  { %251 = vmatprep.subr.bf16.mxu1 %v266_v0  ;;  %233 = vmatprep.subr.bf16.mxu0 %v266_v0  ;;  %v35_v9 = vld [vmem:[#allocation2] sm:$0xff]  ;;  %v36_v17 = vld [vmem:[#allocation2 + $0x8] sm:$0xff] }
   0x9   :  { %v37_v8 = vld [vmem:[#allocation2 + $0x10] sm:$0xff]  ;;  %v38_v16 = vld [vmem:[#allocation2 + $0x18] sm:$0xff] }
   0xa   :  { %v39_v24 = vld [vmem:[#allocation2 + $0x20] sm:$0xff]  ;;  %v40_v29 = vld [vmem:[#allocation2 + $0x28] sm:$0xff] }
   0xb   :  { %255 = vmatpush3.bf16.msra.mxu1 %v261_v3  ;;  %234 = vmatpush3.bf16.msra.mxu0 %v261_v3 }
   0xc   :  { %252 = vmatprep.subr.bf16.mxu1 %v266_v0  ;;  %235 = vmatprep.subr.bf16.mxu0 %v266_v0 }
   0xf   :  { %256 = vmatpush3.bf16.msra.mxu1 %v262_v4  ;;  %236 = vmatpush3.bf16.msra.mxu0 %v262_v4 }
  0x12   :  { %242 = vmatmul.mubr.msk.bf16.vlgmr.msra.gmra.mxu1 %vm22_vm0, %v263_v5  ;;  %238 = vmatmul.mubr.msk.bf16.vlgmr.msra.gmra.mxu0 %vm22_vm0, %v264_v6 }
  0x13   :  { %245 = vmatprep.mubr.msk.bf16.mxu1 %vm267_vm1, %v266_v0 }
  0x1a   :  { %246 = vmatmul.mubr.msk.bf16.gmra.mxu1 %vm22_vm0, %v265_v7 }
  0xd2   :  { %v140_v10 = vpop.f32.mrf.mxu1  ;;  %v132_v11 = vpop.f32.mrf.mxu0 }
  0xd3   :  { %v157_v12 = vadd.f32 %v140_v10, %v37_v8  ;;  %v155_v13 = vadd.f32 %v132_v11, %v35_v9 }
  0xd4   :  { %v243_v14 = vpop.f32.mrf.mxu1  ;;  %v239_v15 = vpop.f32.mrf.mxu0 }
  0xd5   :  { %163 = vst.msk [vmem:[#allocation2 + $0x10] sm:$0xff] %vm22_vm0, %v157_v12  ;;  %161 = vst.msk [vmem:[#allocation2] sm:$0xff] %vm22_vm0, %v155_v13 }
  0xd6   :  { %v143_v18 = vpop.f32.mrf.mxu1  ;;  %v135_v19 = vpop.f32.mrf.mxu0 }
  0xd7   :  { %v158_v20 = vadd.f32 %v143_v18, %v38_v16  ;;  %v156_v21 = vadd.f32 %v135_v19, %v36_v17 }
  0xd8   :  { %v244_v22 = vpop.f32.mrf.mxu1  ;;  %v240_v23 = vpop.f32.mrf.mxu0 }
  0xd9   :  { %164 = vst.msk [vmem:[#allocation2 + $0x18] sm:$0xff] %vm22_vm0, %v158_v20  ;;  %162 = vst.msk [vmem:[#allocation2 + $0x8] sm:$0xff] %vm22_vm0, %v156_v21 }
  0xda   :  { %v148_v26 = vpop.f32.mrf.mxu1 }
  0xdb   :  { %v159_v28 = vadd.f32 %v148_v26, %v39_v24 }
  0xdc   :  { %v172_v30 = vld [vmem:[#allocation2 + $0x10] sm:$0xff]  ;;  %v170_v31 = vld [vmem:[#allocation2] sm:$0xff]  ;;  %v247_v33 = vpop.f32.mrf.mxu1 }
  0xdd   :  { %v185_v34 = vadd.f32 %v221_v25, %v172_v30  ;;  %v183_v35 = vadd.f32 %v221_v25, %v170_v31  ;;  %165 = vst.msk [vmem:[#allocation2 + $0x20] sm:$0xff] %vm22_vm0, %v159_v28 }
  0xde   :  { %v151_v36 = vpop.f32.mrf.mxu1 }
  0xdf   :  { %v197_v37 = vadd.f32 %v191_v27, %v185_v34  ;;  %v195_v38 = vadd.f32 %v189_v32, %v183_v35  ;;  %v160_v40 = vadd.f32 %v151_v36, %v40_v29 }
  0xe0   :  { %v173_v41 = vld [vmem:[#allocation2 + $0x18] sm:$0xff]  ;;  %v171_v42 = vld [vmem:[#allocation2 + $0x8] sm:$0xff]  ;;  %v248_v44 = vpop.f32.mrf.mxu1 }
  0xe1   :  { %203 = vst.msk [vmem:[%s381_s4 + $0x10] sm:$0xff] %vm22_vm0, %v197_v37  ;;  %201 = vst.msk [vmem:[%s381_s4] sm:$0xff] %vm22_vm0, %v195_v38  ;;  %v186_v45 = vadd.f32 %v221_v25, %v173_v41  ;;  %v184_v46 = vadd.f32 %v221_v25, %v171_v42 }
  0xe2   :  { %166 = vst.msk [vmem:[#allocation2 + $0x28] sm:$0xff] %vm22_vm0, %v160_v40 }
  0xe3   :  { %v198_v47 = vadd.f32 %v192_v39, %v186_v45  ;;  %v196_v48 = vadd.f32 %v190_v43, %v184_v46 }
  0xe4   :  { %v174_v49 = vld [vmem:[#allocation2 + $0x20] sm:$0xff] }
  0xe5   :  { %204 = vst.msk [vmem:[%s381_s4 + $0x18] sm:$0xff] %vm22_vm0, %v198_v47  ;;  %202 = vst.msk [vmem:[%s381_s4 + $0x8] sm:$0xff] %vm22_vm0, %v196_v48  ;;  %v187_v51 = vadd.f32 %v221_v25, %v174_v49 }
  0xe7   :  { %v199_v52 = vadd.f32 %v193_v50, %v187_v51 }
  0xe9   :  { %v175_v53 = vld [vmem:[#allocation2 + $0x28] sm:$0xff]  ;;  %205 = vst.msk [vmem:[%s381_s4 + $0x20] sm:$0xff] %vm22_vm0, %v199_v52 }
  0xea   :  { %v188_v55 = vadd.f32 %v221_v25, %v175_v53 }
  0xec   :  { %v200_v56 = vadd.f32 %v194_v54, %v188_v55 }
  0xee   :  { %206 = vst.msk [vmem:[%s381_s4 + $0x28] sm:$0xff] %vm22_vm0, %v200_v56 }

// kernel: vision_transformer_forward.19
= control target key start
LH: loop header
LB: loop body
LE: loop exit
PB: predicated region body
PF: predicated region fallthrough
CT: control target
= control target key end

     0   :  { %vm43_vm0 = vcmask 523264   ;;  %v535_v47 = vmov 0   ;;  %s683_s0 = inlined_call_operand.vmem [shape: f32[48,64], index: 0, kind: input, shape index: {}]   ;;  %s684_s1 = inlined_call_operand.vmem [shape: bf16[64,256], index: 1, kind: input, shape index: {}]   ;;  %s685_s3 = inlined_call_operand.vmem [shape: f32[1,64], index: 3, kind: input, shape index: {}]   ;;  %s686_s4 = inlined_call_operand.vmem [shape: f32[1,64], index: 4, kind: input, shape index: {}]   ;;  %s687_s2 = inlined_call_operand.vmem [shape: f32[1,256], index: 2, kind: input, shape index: {}]   ;;  %s688_s5 = inlined_call_operand.vmem [shape: bf16[48,256], index: 5, kind: output, shape index: {}]  }
   0x1   :  { %v39_v0 = vld [vmem:[%s683_s0 + $0x10] sm:$0xff]  ;;  %v40_v1 = vld [vmem:[%s683_s0 + $0x18] sm:$0xff]  ;;  %v37_v2 = vld [vmem:[%s683_s0] sm:$0xff]  ;;  %263 = vmatprep.mubr.bf16.mxu1 %v535_v47  ;;  %253 = vmatprep.mubr.bf16.mxu0 %v535_v47 }
   0x2   :  { %v50_v3 = vsel %vm43_vm0, %v39_v0, 0.0  ;;  %v44_v4 = vsel %vm43_vm0, %v37_v2, 0.0  ;;  %v38_v5 = vld [vmem:[%s683_s0 + $0x8] sm:$0xff]  ;;  %v53_v6 = vsel %vm43_vm0, %v40_v1, 0.0  ;;  %v41_v8 = vld [vmem:[%s683_s0 + $0x20] sm:$0xff] }
   0x3   :  { %51 = vadd.xlane.f32.xlu0 %v50_v3  ;;  %45 = vadd.xlane.f32.xlu1 %v44_v4  ;;  %v47_v7 = vsel %vm43_vm0, %v38_v5, 0.0  ;;  %v42_v9 = vld [vmem:[%s683_s0 + $0x28] sm:$0xff]  ;;  %v56_v10 = vsel %vm43_vm0, %v41_v8, 0.0  ;;  %v487_v42 = vld [vmem:[%s684_s1 + $0x34] ss:$8 sps:$4 sm:$0xff]  }
   0x4   :  { %v59_v11 = vsel %vm43_vm0, %v42_v9, 0.0  ;;  %v489_v43 = vld [vmem:[%s684_s1 + $0x30] ss:$8 sps:$4 sm:$0xff]   ;;  %478 = vmatprep.subr.bf16.mxu1 %v487_v42  ;;  %229 = vmatprep.subr.bf16.mxu0 %v487_v42  ;;  %v490_v44 = vld [vmem:[%s684_s1 + $0x24] ss:$8 sps:$4 sm:$0xff]  }
   0x5   :  { %482 = vmatpush1.bf16.msra.mxu1 %v489_v43  ;;  %230 = vmatpush1.bf16.msra.mxu0 %v489_v43  ;;  %v492_v45 = vld [vmem:[%s684_s1 + $0x20] ss:$8 sps:$4 sm:$0xff]   ;;  %v493_v46 = vld [vmem:[%s684_s1 + $0x14] ss:$8 sps:$4 sm:$0xff]   ;;  %v495_v48 = vld [vmem:[%s684_s1 + $0x10] ss:$8 sps:$4 sm:$0xff]  }
   0x6   :  { %479 = vmatprep.subr.bf16.mxu1 %v490_v44  ;;  %231 = vmatprep.subr.bf16.mxu0 %v490_v44  ;;  %v496_v49 = vld [vmem:[%s684_s1 + $0x4] ss:$8 sps:$4 sm:$0xff]   ;;  %v498_v50 = vld [vmem:[%s684_s1] ss:$8 sps:$4 sm:$0xff]  }
   0x7   :  { %54 = vadd.xlane.f32.xlu0 %v53_v6  ;;  %48 = vadd.xlane.f32.xlu1 %v47_v7  ;;  %v453_v7 = vld [vmem:[%s685_s3] ss:$0 sm:$0xff] }
   0x9   :  { %483 = vmatpush1.bf16.msra.mxu1 %v492_v45  ;;  %232 = vmatpush1.bf16.msra.mxu0 %v492_v45 }
   0xa   :  { %480 = vmatprep.subr.bf16.mxu1 %v493_v46  ;;  %233 = vmatprep.subr.bf16.mxu0 %v493_v46 }
   0xb   :  { %57 = vadd.xlane.f32.xlu0 %v56_v10  ;;  %60 = vadd.xlane.f32.xlu1 %v59_v11 }
   0xd   :  { %484 = vmatpush1.bf16.msra.mxu1 %v495_v48  ;;  %234 = vmatpush1.bf16.msra.mxu0 %v495_v48 }
   0xe   :  { %481 = vmatprep.subr.bf16.mxu1 %v496_v49  ;;  %235 = vmatprep.subr.bf16.mxu0 %v496_v49 }
  0x11   :  { %485 = vmatpush1.bf16.msra.mxu1 %v498_v50  ;;  %236 = vmatpush1.bf16.msra.mxu0 %v498_v50 }
  0x8c   :  { %v52_v12 = vpop.xlane.xlu0 %51  ;;  %v46_v13 = vpop.xlane.xlu1 %45 }
  0x8d   :  { %v65_v14 = vmul.f32 0.015625, %v52_v12  ;;  %v63_v15 = vmul.f32 0.015625, %v46_v13  ;;  %v454_v13 = vld [vmem:[%s686_s4] ss:$0 sm:$0xff] }
  0x8f   :  { %v590_v16 = vsub.f32 %v39_v0, %v65_v14  ;;  %v592_v17 = vsub.f32 %v37_v2, %v63_v15 }
  0x90   :  { %v55_v18 = vpop.xlane.xlu0 %54  ;;  %v49_v19 = vpop.xlane.xlu1 %48 }
  0x91   :  { %v66_v20 = vmul.f32 0.015625, %v55_v18  ;;  %v77_v21 = vmul.f32 %v590_v16, %v590_v16  ;;  %v64_v22 = vmul.f32 0.015625, %v49_v19  ;;  %v75_v23 = vmul.f32 %v592_v17, %v592_v17 }
  0x93   :  { %v598_v24 = vsub.f32 %v40_v1, %v66_v20  ;;  %v87_v25 = vsel %vm43_vm0, %v77_v21, 0.0  ;;  %v601_v26 = vsub.f32 %v38_v5, %v64_v22  ;;  %v81_v28 = vsel %vm43_vm0, %v75_v23, 0.0 }
  0x94   :  { %88 = vadd.xlane.f32.xlu0 %v87_v25  ;;  %v58_v27 = vpop.xlane.xlu0 %57  ;;  %v61_v29 = vpop.xlane.xlu1 %60 }
  0x95   :  { %v67_v30 = vmul.f32 0.015625, %v58_v27  ;;  %v78_v31 = vmul.f32 %v598_v24, %v598_v24  ;;  %v68_v32 = vmul.f32 0.015625, %v61_v29  ;;  %v76_v33 = vmul.f32 %v601_v26, %v601_v26 }
  0x97   :  { %v608_v34 = vsub.f32 %v41_v8, %v67_v30  ;;  %v90_v35 = vsel %vm43_vm0, %v78_v31, 0.0  ;;  %v611_v36 = vsub.f32 %v42_v9, %v68_v32  ;;  %v84_v38 = vsel %vm43_vm0, %v76_v33, 0.0 }
  0x98   :  { %91 = vadd.xlane.f32.xlu1 %v90_v35  ;;  %82 = vadd.xlane.f32.xlu0 %v81_v28 }
  0x99   :  { %v79_v37 = vmul.f32 %v608_v34, %v608_v34  ;;  %v80_v39 = vmul.f32 %v611_v36, %v611_v36 }
  0x9b   :  { %v93_v40 = vsel %vm43_vm0, %v79_v37, 0.0  ;;  %v96_v41 = vsel %vm43_vm0, %v80_v39, 0.0 }
  0x9c   :  { %94 = vadd.xlane.f32.xlu0 %v93_v40  ;;  %85 = vadd.xlane.f32.xlu1 %v84_v38 }
  0xa0   :  { %97 = vadd.xlane.f32.xlu1 %v96_v41 }
 0x11d   :  { %v89_v51 = vpop.xlane.xlu0 %88 }
 0x11e   :  { %v101_v52 = vmul.f32 0.015625, %v89_v51 }
 0x120   :  { %v107_v53 = vadd.f32 1e-05, %v101_v52 }
 0x121   :  { %v83_v54 = vpop.xlane.xlu0 %82  ;;  %v92_v55 = vpop.xlane.xlu1 %91 }
 0x122   :  { %499 = vrsqrt.f32 %v107_v53  ;;  %v99_v56 = vmul.f32 0.015625, %v83_v54  ;;  %v102_v57 = vmul.f32 0.015625, %v92_v55 }
 0x124   :  { %v105_v58 = vadd.f32 1e-05, %v99_v56  ;;  %v108_v59 = vadd.f32 1e-05, %v102_v57 }
 0x125   :  { %v95_v60 = vpop.xlane.xlu0 %94  ;;  %v86_v61 = vpop.xlane.xlu1 %85 }
 0x126   :  { %501 = vrsqrt.f32 %v105_v58  ;;  %v103_v62 = vmul.f32 0.015625, %v95_v60  ;;  %v100_v63 = vmul.f32 0.015625, %v86_v61 }
 0x127   :  { %503 = vrsqrt.f32 %v108_v59 }
 0x128   :  { %v109_v0 = vadd.f32 1e-05, %v103_v62  ;;  %v106_v1 = vadd.f32 1e-05, %v100_v63 }
 0x129   :  { %v98_v2 = vpop.xlane.xlu1 %97 }
 0x12a   :  { %505 = vrsqrt.f32 %v109_v0  ;;  %v104_v3 = vmul.f32 0.015625, %v98_v2 }
 0x12b   :  { %507 = vrsqrt.f32 %v106_v1 }
 0x12c   :  { %v110_v4 = vadd.f32 1e-05, %v104_v3 }
 0x12e   :  { %509 = vrsqrt.f32 %v110_v4 }
 0x12f   :  { %v500_v5 = vpop.eup %499 }
 0x130   :  { %v119_v6 = vmul.f32 %v500_v5, %v590_v16 }
 0x132   :  { %v132_v11 = vmul.f32 %v453_v7, %v119_v6 }
 0x133   :  { %v502_v8 = vpop.eup %501 }
 0x134   :  { %v504_v9 = vpop.eup %503  ;;  %v117_v12 = vmul.f32 %v502_v8, %v592_v17  ;;  %v145_v19 = vadd.f32 %v454_v13, %v132_v11 }
 0x135   :  { %v120_v10 = vmul.f32 %v504_v9, %v598_v24 }
 0x136   :  { %v130_v22 = vmul.f32 %v453_v7, %v117_v12 }
 0x137   :  { %v506_v14 = vpop.eup %505  ;;  %v133_v15 = vmul.f32 %v453_v7, %v120_v10 }
 0x138   :  { %v508_v18 = vpop.eup %507  ;;  %v121_v16 = vmul.f32 %v506_v14, %v608_v34  ;;  %v143_v28 = vadd.f32 %v454_v13, %v130_v22  ;;  %v325_v34 = vlaneseq }
 0x139   :  { %v146_v20 = vadd.f32 %v454_v13, %v133_v15  ;;  %v118_v21 = vmul.f32 %v508_v18, %v601_v26 }
 0x13a   :  { %v134_v17 = vmul.f32 %v453_v7, %v121_v16  ;;  %v326_v35 = vshrl.u32 %v325_v34, 7 }
 0x13b   :  { %v510_v23 = vpop.eup %509  ;;  %v150_v25 = vpack.c.bf16 %v146_v20, %v145_v19  ;;  %v131_v24 = vmul.f32 %v453_v7, %v118_v21 }
 0x13c   :  { %v122_v27 = vmul.f32 %v510_v23, %v611_v36  ;;  %v147_v32 = vadd.f32 %v454_v13, %v134_v17  ;;  %v327_v37 = vsub.s32 0, %v326_v35  ;;  %v323_v36 = vld [vmem:[%s687_s2] sm:$0x3]  ;;  %v331_v38 = vsub.s32 1, %v326_v35 }
 0x13d   :  { %464 = vmatmul.mubr.msk.bf16.vlgmr.msra.gmra.mxu1 %vm43_vm0, %v150_v25  ;;  %v144_v29 = vadd.f32 %v454_v13, %v131_v24 }
 0x13e   :  { %273 = vmatprep.mubr.bf16.mxu1 %v535_v47  ;;  %v135_v30 = vmul.f32 %v453_v7, %v122_v27  ;;  %v328_v39 = vrot.slane %v323_v36, %v327_v37  ;;  %v332_v40 = vrot.slane %v323_v36, %v331_v38 }
 0x13f   :  { %v149_v31 = vpack.c.bf16 %v144_v29, %v143_v28 }
 0x140   :  { %v148_v33 = vadd.f32 %v454_v13, %v135_v30 }
 0x141   :  { %463 = vmatmul.mubr.msk.bf16.vlgmr.msra.gmra.mxu0 %vm43_vm0, %v149_v31 }
 0x142   :  { %v151_v26 = vpack.c.bf16 %v148_v33, %v147_v32 }
 0x145   :  { %465 = vmatmul.mubr.msk.bf16.gmra.mxu1 %vm43_vm0, %v151_v26 }
 0x1fd   :  { %v265_v41 = vpop.f32.mrf.mxu1 }
 0x1fe   :  { %v339_v42 = vadd.f32 %v328_v39, %v265_v41 }
 0x1ff   :  { %v267_v43 = vpop.f32.mrf.mxu1 }
 0x200   :  { %v363_v44 = vmul.f32 0.70710677, %v339_v42  ;;  %v340_v45 = vadd.f32 %v332_v40, %v267_v43  ;;  %v351_v18 = vmul.f32 0.5, %v339_v42 }
 0x201   :  { %v255_v46 = vpop.f32.mrf.mxu0  ;;  %v269_v47 = vpop.f32.mrf.mxu1 }
 0x202   :  { %511 = verf.f32 %v363_v44  ;;  %v364_v48 = vmul.f32 0.70710677, %v340_v45  ;;  %v335_v49 = vadd.f32 %v328_v39, %v255_v46  ;;  %v341_v50 = vadd.f32 %v328_v39, %v269_v47 }
 0x203   :  { %v257_v51 = vpop.f32.mrf.mxu0  ;;  %v271_v52 = vpop.f32.mrf.mxu1  ;;  %v352_v16 = vmul.f32 0.5, %v340_v45 }
 0x204   :  { %513 = verf.f32 %v364_v48  ;;  %v359_v53 = vmul.f32 0.70710677, %v335_v49  ;;  %v336_v54 = vadd.f32 %v332_v40, %v257_v51  ;;  %v365_v55 = vmul.f32 0.70710677, %v341_v50 }
 0x205   :  { %v342_v56 = vadd.f32 %v332_v40, %v271_v52  ;;  %v259_v57 = vpop.f32.mrf.mxu0  ;;  %v275_v58 = vpop.f32.mrf.mxu1  ;;  %v347_v29 = vmul.f32 0.5, %v335_v49  ;;  %v353_v33 = vmul.f32 0.5, %v341_v50 }
 0x206   :  { %515 = verf.f32 %v359_v53  ;;  %v360_v59 = vmul.f32 0.70710677, %v336_v54  ;;  %v337_v60 = vadd.f32 %v328_v39, %v259_v57  ;;  %v343_v62 = vadd.f32 %v328_v39, %v275_v58 }
 0x207   :  { %517 = verf.f32 %v365_v55  ;;  %v366_v61 = vmul.f32 0.70710677, %v342_v56  ;;  %v261_v63 = vpop.f32.mrf.mxu0  ;;  %v277_v0 = vpop.f32.mrf.mxu1  ;;  %v348_v30 = vmul.f32 0.5, %v336_v54  ;;  %v354_v26 = vmul.f32 0.5, %v342_v56 }
 0x208   :  { %519 = verf.f32 %v360_v59  ;;  %v361_v1 = vmul.f32 0.70710677, %v337_v60  ;;  %v338_v2 = vadd.f32 %v332_v40, %v261_v63  ;;  %v367_v3 = vmul.f32 0.70710677, %v343_v62 }
 0x209   :  { %521 = verf.f32 %v366_v61  ;;  %v344_v4 = vadd.f32 %v332_v40, %v277_v0  ;;  %v279_v5 = vpop.f32.mrf.mxu1  ;;  %v349_v45 = vmul.f32 0.5, %v337_v60  ;;  %v355_v50 = vmul.f32 0.5, %v343_v62 }
 0x20a   :  { %523 = verf.f32 %v361_v1  ;;  %v362_v6 = vmul.f32 0.70710677, %v338_v2  ;;  %v345_v7 = vadd.f32 %v328_v39, %v279_v5  ;;  %v350_v46 = vmul.f32 0.5, %v338_v2 }
 0x20b   :  { %525 = verf.f32 %v367_v3  ;;  %v368_v8 = vmul.f32 0.70710677, %v344_v4  ;;  %v281_v9 = vpop.f32.mrf.mxu1  ;;  %v356_v51 = vmul.f32 0.5, %v344_v4 }
 0x20c   :  { %527 = verf.f32 %v362_v6  ;;  %v369_v10 = vmul.f32 0.70710677, %v345_v7  ;;  %v346_v11 = vadd.f32 %v332_v40, %v281_v9  ;;  %v357_v60 = vmul.f32 0.5, %v345_v7 }
 0x20d   :  { %529 = verf.f32 %v368_v8 }
 0x20e   :  { %531 = verf.f32 %v369_v10  ;;  %v370_v12 = vmul.f32 0.70710677, %v346_v11  ;;  %v358_v61 = vmul.f32 0.5, %v346_v11 }
 0x20f   :  { %v512_v13 = vpop.eup %511 }
 0x210   :  { %v387_v14 = vadd.f32 1.0, %v512_v13  ;;  %533 = verf.f32 %v370_v12 }
 0x211   :  { %v514_v15 = vpop.eup %513 }
 0x212   :  { %v388_v19 = vadd.f32 1.0, %v514_v15  ;;  %v399_v22 = vmul.f32 %v387_v14, %v351_v18 }
 0x213   :  { %v516_v20 = vpop.eup %515 }
 0x214   :  { %v518_v21 = vpop.eup %517  ;;  %v400_v23 = vmul.f32 %v388_v19, %v352_v16  ;;  %v383_v25 = vadd.f32 1.0, %v516_v20 }
 0x215   :  { %v520_v24 = vpop.eup %519  ;;  %v389_v27 = vadd.f32 1.0, %v518_v21 }
 0x216   :  { %v522_v17 = vpop.eup %521  ;;  %v474_v28 = vpack.c.bf16 %v400_v23, %v399_v22  ;;  %v384_v31 = vadd.f32 1.0, %v520_v24  ;;  %v395_v37 = vmul.f32 %v383_v25, %v347_v29 }
 0x217   :  { %v524_v32 = vpop.eup %523  ;;  %v390_v34 = vadd.f32 1.0, %v522_v17  ;;  %v401_v40 = vmul.f32 %v389_v27, %v353_v33 }
 0x218   :  { %v526_v35 = vpop.eup %525  ;;  %445 = vst [vmem:[%s688_s5 + $0x10] sm:$0xff] %v474_v28  ;;  %v396_v36 = vmul.f32 %v384_v31, %v348_v30  ;;  %v385_v38 = vadd.f32 1.0, %v524_v32 }
 0x219   :  { %v528_v39 = vpop.eup %527  ;;  %v402_v41 = vmul.f32 %v390_v34, %v354_v26  ;;  %v391_v42 = vadd.f32 1.0, %v526_v35 }
 0x21a   :  { %v530_v43 = vpop.eup %529  ;;  %v472_v44 = vpack.c.bf16 %v396_v36, %v395_v37  ;;  %v386_v47 = vadd.f32 1.0, %v528_v39  ;;  %v397_v53 = vmul.f32 %v385_v38, %v349_v45 }
 0x21b   :  { %v532_v48 = vpop.eup %531  ;;  %v475_v49 = vpack.c.bf16 %v402_v41, %v401_v40  ;;  %v392_v52 = vadd.f32 1.0, %v530_v43  ;;  %v403_v57 = vmul.f32 %v391_v42, %v355_v50 }
 0x21c   :  { %443 = vst [vmem:[%s688_s5] sm:$0xff] %v472_v44  ;;  %v398_v54 = vmul.f32 %v386_v47, %v350_v46  ;;  %v393_v55 = vadd.f32 1.0, %v532_v48 }
 0x21d   :  { %v534_v56 = vpop.eup %533  ;;  %446 = vst [vmem:[%s688_s5 + $0x18] sm:$0xff] %v475_v49  ;;  %v404_v58 = vmul.f32 %v392_v52, %v356_v51 }
 0x21e   :  { %v473_v59 = vpack.c.bf16 %v398_v54, %v397_v53  ;;  %v394_v62 = vadd.f32 1.0, %v534_v56  ;;  %v405_v0 = vmul.f32 %v393_v55, %v357_v60 }
 0x21f   :  { %v476_v63 = vpack.c.bf16 %v404_v58, %v403_v57 }
 0x220   :  { %444 = vst [vmem:[%s688_s5 + $0x8] sm:$0xff] %v473_v59  ;;  %v406_v1 = vmul.f32 %v394_v62, %v358_v61 }
 0x221   :  { %447 = vst [vmem:[%s688_s5 + $0x20] sm:$0xff] %v476_v63 }
 0x222   :  { %v477_v2 = vpack.c.bf16 %v406_v1, %v405_v0 }
 0x224   :  { %448 = vst [vmem:[%s688_s5 + $0x28] sm:$0xff] %v477_v2 }

// kernel: vision_transformer_forward.20
= control target key start
LH: loop header
LB: loop body
LE: loop exit
PB: predicated region body
PF: predicated region fallthrough
CT: control target
= control target key end

     0   :  { %vm22_vm0 = vcmask 523264   ;;  %v412_v22 = vmov 0.0   ;;  %s561_s1 = inlined_call_operand.vmem [shape: bf16[256,64], index: 1, kind: input, shape index: {}]   ;;  %s562_s0 = inlined_call_operand.vmem [shape: bf16[48,256], index: 0, kind: input, shape index: {}]   ;;  %s563_s2 = inlined_call_operand.vmem [shape: f32[1,64], index: 2, kind: input, shape index: {}]   ;;  %s564_s3 = inlined_call_operand.vmem [shape: f32[48,64], index: 3, kind: input, shape index: {}]   ;;  %s565_s4 = inlined_call_operand.vmem [shape: f32[48,64], index: 4, kind: output, shape index: {}]  }
   0x1   :  { %v387_v0 = vld [vmem:[%s561_s1 + $0x78] sm:$0xff]   ;;  %v389_v2 = vld [vmem:[%s561_s1 + $0x70] sm:$0xff]   ;;  %v391_v4 = vld [vmem:[%s561_s1 + $0x68] sm:$0xff]   ;;  %25 = vst.msk [vmem:[#allocation2 + $0x10] sm:$0xff] %vm22_vm0, %v412_v22 }
   0x2   :  { %v388_v1 = vld [vmem:[%s561_s1 + $0x38] sm:$0xff]   ;;  %370 = vmatprep.subr.bf16.mxu1 %v387_v0  ;;  %336 = vmatprep.subr.bf16.mxu0 %v387_v0  ;;  %v390_v3 = vld [vmem:[%s561_s1 + $0x30] sm:$0xff]   ;;  %v392_v5 = vld [vmem:[%s561_s1 + $0x28] sm:$0xff]   ;;  %23 = vst.msk [vmem:[#allocation2] sm:$0xff] %vm22_vm0, %v412_v22 }
   0x3   :  { %378 = vmatpush3.bf16.msra.mxu1 %v388_v1  ;;  %337 = vmatpush3.bf16.msra.mxu0 %v388_v1  ;;  %v393_v6 = vld [vmem:[%s561_s1 + $0x60] sm:$0xff]   ;;  %v395_v8 = vld [vmem:[%s561_s1 + $0x58] sm:$0xff]   ;;  %v397_v10 = vld [vmem:[%s561_s1 + $0x50] sm:$0xff]   ;;  %24 = vst.msk [vmem:[#allocation2 + $0x8] sm:$0xff] %vm22_vm0, %v412_v22 }
   0x4   :  { %371 = vmatprep.subr.bf16.mxu1 %v389_v2  ;;  %338 = vmatprep.subr.bf16.mxu0 %v389_v2  ;;  %v394_v7 = vld [vmem:[%s561_s1 + $0x20] sm:$0xff]   ;;  %v396_v9 = vld [vmem:[%s561_s1 + $0x18] sm:$0xff]   ;;  %v398_v13 = vld [vmem:[%s561_s1 + $0x10] sm:$0xff]   ;;  %26 = vst.msk [vmem:[#allocation2 + $0x18] sm:$0xff] %vm22_vm0, %v412_v22 }
   0x5   :  { %v405_v11 = vld [vmem:[%s562_s0 + $0x14] ss:$8 sps:$4 sm:$0xff]   ;;  %v408_v12 = vld [vmem:[%s562_s0 + $0x4] ss:$8 sps:$4 sm:$0xff]   ;;  %v403_v18 = vld [vmem:[%s562_s0 + $0x10] ss:$8 sps:$4 sm:$0xff]  }
   0x6   :  { %v399_v14 = vld [vmem:[%s561_s1 + $0x48] sm:$0xff]   ;;  %239 = vmatprep.mubr.bf16.mxu1 %v405_v11  ;;  %231 = vmatprep.mubr.bf16.mxu0 %v408_v12  ;;  %v401_v16 = vld [vmem:[%s561_s1 + $0x40] sm:$0xff]   ;;  %27 = vst.msk [vmem:[#allocation2 + $0x20] sm:$0xff] %vm22_vm0, %v412_v22  ;;  %28 = vst.msk [vmem:[#allocation2 + $0x28] sm:$0xff] %vm22_vm0, %v412_v22 }
   0x7   :  { %379 = vmatpush3.bf16.msra.mxu1 %v390_v3  ;;  %339 = vmatpush3.bf16.msra.mxu0 %v390_v3  ;;  %v400_v15 = vld [vmem:[%s561_s1 + $0x8] sm:$0xff]   ;;  %v402_v17 = vld [vmem:[%s561_s1] sm:$0xff]   ;;  %v293_v49 = vld [vmem:[%s564_s3 + $0x10] sm:$0xff] }
   0x8   :  { %372 = vmatprep.subr.bf16.mxu1 %v391_v4  ;;  %340 = vmatprep.subr.bf16.mxu0 %v391_v4  ;;  %v406_v19 = vld [vmem:[%s562_s0] ss:$8 sps:$4 sm:$0xff]   ;;  %v409_v20 = vld [vmem:[%s562_s0 + $0x24] ss:$8 sps:$4 sm:$0xff]   ;;  %v37_v25 = vld [vmem:[#allocation2 + $0x10] sm:$0xff] }
   0x9   :  { %v411_v21 = vld [vmem:[%s562_s0 + $0x20] ss:$8 sps:$4 sm:$0xff]   ;;  %v294_v61 = vld [vmem:[%s564_s3 + $0x18] sm:$0xff] }
   0xa   :  { %v35_v27 = vld [vmem:[#allocation2] sm:$0xff]  ;;  %v36_v37 = vld [vmem:[#allocation2 + $0x8] sm:$0xff] }
   0xb   :  { %380 = vmatpush3.bf16.msra.mxu1 %v392_v5  ;;  %341 = vmatpush3.bf16.msra.mxu0 %v392_v5  ;;  %v38_v35 = vld [vmem:[#allocation2 + $0x18] sm:$0xff]  ;;  %v335_v47 = vld [vmem:[%s563_s2] ss:$0 sm:$0xff]  ;;  %v292_v1 = vld [vmem:[%s564_s3 + $0x8] sm:$0xff] }
   0xc   :  { %373 = vmatprep.subr.bf16.mxu1 %v393_v6  ;;  %342 = vmatprep.subr.bf16.mxu0 %v393_v6  ;;  %v291_v54 = vld [vmem:[%s564_s3] sm:$0xff]  ;;  %v296_v11 = vld [vmem:[%s564_s3 + $0x28] sm:$0xff] }
   0xd   :  { %v39_v44 = vld [vmem:[#allocation2 + $0x20] sm:$0xff]  ;;  %v40_v51 = vld [vmem:[#allocation2 + $0x28] sm:$0xff] }
   0xf   :  { %381 = vmatpush3.bf16.msra.mxu1 %v394_v7  ;;  %343 = vmatpush3.bf16.msra.mxu0 %v394_v7  ;;  %v295_v7 = vld [vmem:[%s564_s3 + $0x20] sm:$0xff] }
  0x10   :  { %374 = vmatprep.subr.bf16.mxu1 %v395_v8  ;;  %344 = vmatprep.subr.bf16.mxu0 %v395_v8 }
  0x13   :  { %382 = vmatpush3.bf16.msra.mxu1 %v396_v9  ;;  %345 = vmatpush3.bf16.msra.mxu0 %v396_v9 }
  0x14   :  { %375 = vmatprep.subr.bf16.mxu1 %v397_v10  ;;  %346 = vmatprep.subr.bf16.mxu0 %v397_v10 }
  0x17   :  { %383 = vmatpush3.bf16.msra.mxu1 %v398_v13  ;;  %347 = vmatpush3.bf16.msra.mxu0 %v398_v13 }
  0x18   :  { %376 = vmatprep.subr.bf16.mxu1 %v399_v14  ;;  %348 = vmatprep.subr.bf16.mxu0 %v399_v14 }
  0x1b   :  { %384 = vmatpush3.bf16.msra.mxu1 %v400_v15  ;;  %349 = vmatpush3.bf16.msra.mxu0 %v400_v15 }
  0x1c   :  { %377 = vmatprep.subr.bf16.mxu1 %v401_v16  ;;  %350 = vmatprep.subr.bf16.mxu0 %v401_v16 }
  0x1f   :  { %385 = vmatpush3.bf16.msra.mxu1 %v402_v17  ;;  %351 = vmatpush3.bf16.msra.mxu0 %v402_v17 }
  0x22   :  { %240 = vmatmul.mubr.bf16.vlgmr.msra.gmra.mxu1 %v403_v18  ;;  %232 = vmatmul.mubr.bf16.vlgmr.msra.gmra.mxu0 %v406_v19 }
  0x23   :  { %247 = vmatprep.mubr.bf16.mxu1 %v409_v20 }
  0x2a   :  { %248 = vmatmul.mubr.bf16.gmra.mxu1 %v411_v21 }
  0xe2   :  { %v358_v23 = vpop.f32.mrf.mxu1  ;;  %v352_v24 = vpop.f32.mrf.mxu0 }
  0xe4   :  { %v359_v26 = vpop.f32.mrf.mxu1  ;;  %v353_v28 = vpop.f32.mrf.mxu0 }
  0xe5   :  { %v360_v29 = vadd.f32 %v359_v26, %v358_v23  ;;  %v354_v30 = vadd.f32 %v353_v28, %v352_v24 }
  0xe6   :  { %v361_v31 = vpop.f32.mrf.mxu1  ;;  %v355_v32 = vpop.f32.mrf.mxu0 }
  0xe7   :  { %v258_v33 = vadd.f32 %v360_v29, %v37_v25  ;;  %v256_v34 = vadd.f32 %v354_v30, %v35_v27 }
  0xe8   :  { %v362_v36 = vpop.f32.mrf.mxu1  ;;  %v356_v38 = vpop.f32.mrf.mxu0 }
  0xe9   :  { %265 = vst.msk [vmem:[#allocation2 + $0x10] sm:$0xff] %vm22_vm0, %v258_v33  ;;  %263 = vst.msk [vmem:[#allocation2] sm:$0xff] %vm22_vm0, %v256_v34  ;;  %v363_v39 = vadd.f32 %v362_v36, %v361_v31  ;;  %v357_v40 = vadd.f32 %v356_v38, %v355_v32 }
  0xea   :  { %v364_v41 = vpop.f32.mrf.mxu1 }
  0xeb   :  { %v259_v42 = vadd.f32 %v363_v39, %v38_v35  ;;  %v257_v43 = vadd.f32 %v357_v40, %v36_v37 }
  0xec   :  { %v365_v45 = vpop.f32.mrf.mxu1 }
  0xed   :  { %266 = vst.msk [vmem:[#allocation2 + $0x18] sm:$0xff] %vm22_vm0, %v259_v42  ;;  %264 = vst.msk [vmem:[#allocation2 + $0x8] sm:$0xff] %vm22_vm0, %v257_v43  ;;  %v366_v46 = vadd.f32 %v365_v45, %v364_v41 }
  0xee   :  { %v367_v48 = vpop.f32.mrf.mxu1 }
  0xef   :  { %v260_v50 = vadd.f32 %v366_v46, %v39_v44 }
  0xf0   :  { %v274_v52 = vld [vmem:[#allocation2 + $0x10] sm:$0xff]  ;;  %v272_v53 = vld [vmem:[#allocation2] sm:$0xff]  ;;  %v368_v55 = vpop.f32.mrf.mxu1 }
  0xf1   :  { %v287_v56 = vadd.f32 %v335_v47, %v274_v52  ;;  %v285_v57 = vadd.f32 %v335_v47, %v272_v53  ;;  %267 = vst.msk [vmem:[#allocation2 + $0x20] sm:$0xff] %vm22_vm0, %v260_v50  ;;  %v369_v58 = vadd.f32 %v368_v55, %v367_v48 }
  0xf3   :  { %v299_v59 = vadd.f32 %v293_v49, %v287_v56  ;;  %v297_v60 = vadd.f32 %v291_v54, %v285_v57  ;;  %v261_v62 = vadd.f32 %v369_v58, %v40_v51 }
  0xf4   :  { %v275_v63 = vld [vmem:[#allocation2 + $0x18] sm:$0xff]  ;;  %v273_v0 = vld [vmem:[#allocation2 + $0x8] sm:$0xff] }
  0xf5   :  { %305 = vst.msk [vmem:[%s565_s4 + $0x10] sm:$0xff] %vm22_vm0, %v299_v59  ;;  %303 = vst.msk [vmem:[%s565_s4] sm:$0xff] %vm22_vm0, %v297_v60  ;;  %v288_v2 = vadd.f32 %v335_v47, %v275_v63  ;;  %v286_v3 = vadd.f32 %v335_v47, %v273_v0 }
  0xf6   :  { %268 = vst.msk [vmem:[#allocation2 + $0x28] sm:$0xff] %vm22_vm0, %v261_v62 }
  0xf7   :  { %v300_v4 = vadd.f32 %v294_v61, %v288_v2  ;;  %v298_v5 = vadd.f32 %v292_v1, %v286_v3 }
  0xf8   :  { %v276_v6 = vld [vmem:[#allocation2 + $0x20] sm:$0xff] }
  0xf9   :  { %306 = vst.msk [vmem:[%s565_s4 + $0x18] sm:$0xff] %vm22_vm0, %v300_v4  ;;  %304 = vst.msk [vmem:[%s565_s4 + $0x8] sm:$0xff] %vm22_vm0, %v298_v5  ;;  %v289_v8 = vadd.f32 %v335_v47, %v276_v6 }
  0xfb   :  { %v301_v9 = vadd.f32 %v295_v7, %v289_v8 }
  0xfd   :  { %v277_v10 = vld [vmem:[#allocation2 + $0x28] sm:$0xff]  ;;  %307 = vst.msk [vmem:[%s565_s4 + $0x20] sm:$0xff] %vm22_vm0, %v301_v9 }
  0xfe   :  { %v290_v12 = vadd.f32 %v335_v47, %v277_v10 }
 0x100   :  { %v302_v13 = vadd.f32 %v296_v11, %v290_v12 }
 0x102   :  { %308 = vst.msk [vmem:[%s565_s4 + $0x28] sm:$0xff] %vm22_vm0, %v302_v13 }

// kernel: vision_transformer_forward.27
= control target key start
LH: loop header
LB: loop body
LE: loop exit
PB: predicated region body
PF: predicated region fallthrough
CT: control target
= control target key end

     0   :  { %v183_v1 = vmov 0.0   ;;  %vm184_vm0 = vmmov 0   ;;  %vm20_vm1 = vcmask 254976   ;;  %s230_s0 = inlined_call_operand.vmem [shape: f32[2,64], index: 0, kind: input, shape index: {}]   ;;  %s231_s1 = inlined_call_operand.vmem [shape: bf16[64,32], index: 1, kind: input, shape index: {}]   ;;  %s232_s2 = inlined_call_operand.vmem [shape: f32[1,32], index: 2, kind: input, shape index: {}]   ;;  %s233_s3 = inlined_call_operand.hbm [shape: f32[2,32], index: 3, kind: output, shape index: {}]  }
   0x1   :  { %v157_v0 = vld [vmem:[%s231_s1 + $0x18] sm:$0xff]   ;;  %142 = vmatprep.subr.bf16.mxu0 %v183_v1  ;;  %v158_v2 = vld [vmem:[%s231_s1 + $0x10] sm:$0xff]   ;;  %150 = vmatprep.mubr.msk.bf16.mxu0 %vm184_vm0, %v183_v1  ;;  %21 = vst.msk [vmem:[#allocation2] sm:$0x3] %vm20_vm1, %v183_v1 }
   0x2   :  { %143 = vmatpush3.bf16.msra.mxu0 %v157_v0 }
   0x3   :  { %144 = vmatprep.subr.bf16.mxu0 %v183_v1 }
   0x4   :  { %8 = vsyncpa [#allocation4], 0  ;;  %v159_v3 = vld [vmem:[%s231_s1 + $0x8] sm:$0xff]   ;;  %v160_v4 = vld [vmem:[%s231_s1] sm:$0xff]   ;;  %vm57_vm2 = vcmask 523264   ;;  %s185_s1 = smov [#allocation3]  }
   0x5   :  { %v22_v5 = vld [vmem:[%s230_s0] sm:$0x3]  ;;  %s123_s24 = sshll.u32 %s185_s1, 4  ;;  %s124_s24 = int_to_ptr.vmem [resolvable:$true] %s123_s24 }
   0x6   :  { %145 = vmatpush3.bf16.msra.mxu0 %v158_v2  ;;  %v23_v6 = vpack.c.bf16 %v22_v5, %v22_v5  ;;  %v136_v13 = vld [vmem:[%s232_s2] ss:$0 sm:$0xff]  ;;  %s161_s0 = scalar_lea.vmem %s124_s24, 32  ;;  %p166_p1 = scmp.lt.s32.totalorder %s124_s24, %s124_s24 }
   0x7   :  { %146 = vmatprep.subr.bf16.mxu0 %v183_v1  ;;  %p162_p0 = scmp.ne.s32.totalorder %s124_s24, %s161_s0  ;;  %p167_p2 = scmp.lt.s32.totalorder %s161_s0, %s161_s0 }
   0x8   :  { %v24_v7 = vld [vmem:[#allocation2] sm:$0x3] }
   0x9   :  { %p168_p3 = por %p167_p2, %p166_p1 }
   0xa   :  { %147 = vmatpush3.bf16.msra.mxu0 %v159_v3 }
   0xb   :  { %148 = vmatprep.subr.bf16.mxu0 %v183_v1  ;;  %p169_p4 = pnand %p168_p3, %p162_p0 }
   0xe   :  { %149 = vmatpush3.bf16.msra.mxu0 %v160_v4 }
  0x11   :  { %151 = vmatmul.mubr.msk.bf16.vlgmr.msra.gmra.mxu0 %vm57_vm2, %v23_v6 }
  0xd1   :  { %v95_v8 = vpop.f32.mrf.mxu0 }
  0xd2   :  { %v101_v9 = vadd.f32 %v95_v8, %v24_v7 }
  0xd3   :  { %v152_v10 = vpop.f32.mrf.mxu0 }
  0xd4   :  { %103 = vst.msk [vmem:[#allocation2] sm:$0x3] %vm20_vm1, %v101_v9 }
  0xd5   :  { %v98_v11 = vpop.f32.mrf.mxu0 }
  0xd7   :  { %v153_v12 = vpop.f32.mrf.mxu0 }
  0xdb   :  { %v107_v14 = vld [vmem:[#allocation2] sm:$0x3] }
  0xdc   :  { %v115_v15 = vadd.f32 %v136_v13, %v107_v14 }
  0xde   :  { %116 = vst.msk [vmem:[#allocation3] sm:$0x3] %vm20_vm1, %v115_v15 }
  0xdf   :  { %172 = shalt.err (!%p169_p4)
}
  0xe0   :  { %126 = dma.vmem_to_hbm [thread:$0]  %s124_s24, 32, %s233_s3, [#allocation4]  }
  0xe1   :  { %181 = dma.done.wait [#allocation4], 32  }
  0xe2   :  { %182 = vsyncadd [#allocation4], 4294967264 }
  0xe3   :  { %130 = vsyncpa [#allocation4], 1 }

// kernel: vision_transformer_forward.26
= control target key start
LH: loop header
LB: loop body
LE: loop exit
PB: predicated region body
PF: predicated region fallthrough
CT: control target
= control target key end

     0   :  { %vm15_vm0 = vcmask 517120   ;;  %s90_s0 = inlined_call_operand.vmem [shape: f32[2,64], index: 0, kind: input, shape index: {}]   ;;  %s91_s1 = inlined_call_operand.vmem [shape: f32[1,64], index: 1, kind: input, shape index: {}]   ;;  %s92_s2 = inlined_call_operand.vmem [shape: f32[1,64], index: 2, kind: input, shape index: {}]   ;;  %s93_s3 = inlined_call_operand.vmem [shape: f32[2,64], index: 3, kind: output, shape index: {}]  }
   0x1   :  { %v14_v0 = vld [vmem:[%s90_s0] sm:$0x3] }
   0x2   :  { %v16_v1 = vsel %vm15_vm0, %v14_v0, 0.0  ;;  %v51_v11 = vld [vmem:[%s91_s1] ss:$0 sm:$0xff] }
   0x3   :  { %17 = vadd.xlane.f32.xlu0 %v16_v1  ;;  %v52_v13 = vld [vmem:[%s92_s2] ss:$0 sm:$0xff] }
  0x8c   :  { %v18_v2 = vpop.xlane.xlu0 %17 }
  0x8d   :  { %v20_v3 = vmul.f32 0.015625, %v18_v2 }
  0x8f   :  { %v21_v4 = vsub.f32 %v14_v0, %v20_v3 }
  0x91   :  { %v22_v5 = vmul.f32 %v21_v4, %v21_v4 }
  0x93   :  { %v23_v6 = vsel %vm15_vm0, %v22_v5, 0.0 }
  0x94   :  { %24 = vadd.xlane.f32.xlu0 %v23_v6 }
 0x11d   :  { %v25_v7 = vpop.xlane.xlu0 %24 }
 0x11e   :  { %v26_v8 = vmul.f32 0.015625, %v25_v7 }
 0x120   :  { %v27_v9 = vadd.f32 1e-05, %v26_v8 }
 0x122   :  { %53 = vrsqrt.f32 %v27_v9 }
 0x12f   :  { %v54_v10 = vpop.eup %53 }
 0x130   :  { %v29_v12 = vmul.f32 %v54_v10, %v21_v4 }
 0x132   :  { %v37_v14 = vmul.f32 %v51_v11, %v29_v12 }
 0x134   :  { %v45_v15 = vadd.f32 %v52_v13, %v37_v14 }
 0x136   :  { %46 = vst.msk [vmem:[%s93_s3] sm:$0x3] %vm15_vm0, %v45_v15 }

</bundles_post_ra>
